<compile_context>
chip_gen: v5e
topology: v5e:2x2
jax: 0.10.0
libtpu: 0.0.40
codegen_flags: <defaults>
</compile_context>

<pallas_src>
import functools

import jax
import jax.numpy as jnp
from jax.experimental import pallas as pl
from jax.experimental.pallas import tpu as pltpu

_EPS = 1e-5                       # nn.BatchNorm2d default eps
_PADL = 8                         # sublane-aligned left margin of the in-VMEM halo scratch
_CONV_VMEM_LIMIT = 48 * 1024 * 1024   # explicit scoped-VMEM limit (> 16/32 MiB defaults, < 64 MiB v7x)
_EW_VMEM_LIMIT = 32 * 1024 * 1024


# --------------- fused conv (+prologue BN/ReLU) + per-image BN-statistics kernel ---------------

def _conv_bn_stats_kernel(x_ref, ps_ref, pb_ref, w_ref,
                          y_ref, ssum_ref, m2_ref, xpad_ref,
                          *, apply_input_bnrelu):
    # x_ref   : (1, H, W, Cin)         raw input image for this batch element
    # ps/pb   : (1, Cin)               folded BN scale/bias of the *previous* layer (maybe unused)
    # w_ref   : (3, 3*Cin, Cout)       fused-K conv weights (rows ordered (dx, cin))
    # y_ref   : (1, H*W, Cout)         conv output (rows = flattened pixels)
    # ssum_ref: (1, 1, Cout)           per-image channel sum
    # m2_ref  : (1, 1, Cout)           per-image centered sum of squares (Chan M2)
    # xpad_ref: (H+2, W+2*_PADL, Cin)  VMEM scratch holding the zero-padded (halo) image
    _, H, W, Cin = x_ref.shape
    Cout = ssum_ref.shape[-1]
    HW = H * W

    x = x_ref[0]                                                     # (H, W, Cin) f32
    if apply_input_bnrelu:
        # fused folded-BatchNorm affine + ReLU of the previous layer (VPU, f32)
        x = jnp.maximum(x * ps_ref[0][None, None, :] + pb_ref[0][None, None, :], 0.0)

    # Zero ONLY the halo cells that are read (2 rows + 2 columns) -- tiny masked stores instead
    # of a full scratch-sized store pass every step.  Interior store is sublane-aligned (_PADL=8).
    zrow = jnp.zeros((1, W + 2 * _PADL, Cin), xpad_ref.dtype)
    zcol = jnp.zeros((H, 1, Cin), xpad_ref.dtype)
    xpad_ref[0:1, :, :] = zrow                                       # top halo row
    xpad_ref[H + 1:H + 2, :, :] = zrow                               # bottom halo row
    xpad_ref[1:H + 1, _PADL - 1:_PADL, :] = zcol                     # left halo column
    xpad_ref[1:H + 1, _PADL + W:_PADL + W + 1, :] = zcol             # right halo column
    xpad_ref[1:H + 1, _PADL:_PADL + W, :] = x                        # interior (aligned store)

    # Fused-K operand: concatenate the three dx-shifted W-wide windows on the lane (K) axis,
    # built once per step directly from ref slices.  The per-dy operand below is then a cheap
    # row-range slice (offsets 0, W, 2W) feeding one MXU matmul with K = 3*Cin.
    xs = [xpad_ref[:, _PADL - 1 + dx:_PADL - 1 + dx + W, :] for dx in range(3)]
    x3 = jnp.concatenate(xs, axis=-1).reshape((H + 2) * W, 3 * Cin)  # leading-dim collapse only

    acc = jnp.dot(x3[0:HW], w_ref[0], preferred_element_type=jnp.float32)
    acc = acc + jnp.dot(x3[W:W + HW], w_ref[1], preferred_element_type=jnp.float32)
    acc = acc + jnp.dot(x3[2 * W:2 * W + HW], w_ref[2], preferred_element_type=jnp.float32)

    y_ref[0] = acc.astype(y_ref.dtype)                               # (H*W, Cout) store, no reshape

    # BatchNorm statistics epilogue while the accumulator is still live (f32):
    # per-image channel sum and *centered* M2 (robust; combined across images with Chan's formula).
    s = jnp.sum(acc, axis=0)                                         # (Cout,)
    mu = s * (1.0 / HW)
    d = acc - mu[None, :]
    ssum_ref[...] = s[None, None, :]
    m2_ref[...] = jnp.sum(d * d, axis=0)[None, None, :]


def conv3x3_bn_stats(x, w, pre_scale=None, pre_bias=None):
    """3x3 'same' conv (stride 1, no bias) with fused optional input BN+ReLU and stats epilogue.

    x: (N, H, W, Cin) f32; w: (3, 3, Cin, Cout) HWIO (reshaped here to fused-K (3, 3*Cin, Cout)).
    If pre_scale / pre_bias are given, relu(x * pre_scale + pre_bias) is applied per input channel
    before the conv (the previous layer's folded BatchNorm + ReLU).
    Returns (y, ssum, m2): y (N, H*W, Cout); ssum / centered-M2 (N, 1, Cout), both over H*W.
    """
    N, H, W, Cin = x.shape
    Cout = w.shape[-1]
    wf = w.reshape(3, 3 * Cin, Cout)                 # rows ordered (dx, cin) == LHS lane order
    fused = pre_scale is not None
    if not fused:
        pre_scale = jnp.ones((Cin,), jnp.float32)
        pre_bias = jnp.zeros((Cin,), jnp.float32)
    kernel = functools.partial(_conv_bn_stats_kernel, apply_input_bnrelu=fused)
    # TODO(synk): add a row-tile grid axis (grid=(N, H//TH), 2-row halo) for production H*W*C.
    return pl.pallas_call(
        kernel,
        out_shape=(
            jax.ShapeDtypeStruct((N, H * W, Cout), jnp.float32),
            jax.ShapeDtypeStruct((N, 1, Cout), jnp.float32),
            jax.ShapeDtypeStruct((N, 1, Cout), jnp.float32),
        ),
        grid=(N,),
        in_specs=[
            pl.BlockSpec((1, H, W, Cin), lambda n: (n, 0, 0, 0)),
            pl.BlockSpec((1, Cin), lambda n: (0, 0)),
            pl.BlockSpec((1, Cin), lambda n: (0, 0)),
            pl.BlockSpec((3, 3 * Cin, Cout), lambda n: (0, 0, 0)),
        ],
        out_specs=(
            pl.BlockSpec((1, H * W, Cout), lambda n: (n, 0, 0)),
            pl.BlockSpec((1, 1, Cout), lambda n: (n, 0, 0)),
            pl.BlockSpec((1, 1, Cout), lambda n: (n, 0, 0)),
        ),
        scratch_shapes=[pltpu.VMEM((H + 2, W + 2 * _PADL, Cin), jnp.float32)],
        compiler_params=pltpu.CompilerParams(
            dimension_semantics=("parallel",),
            vmem_limit_bytes=_CONV_VMEM_LIMIT),
    )(x, pre_scale.reshape(1, Cin), pre_bias.reshape(1, Cin), wf)


# --------------- final fused BN + ReLU (lane-dense elementwise, VMEM-budgeted tiles) ---------------

def _bn_relu_kernel(x_ref, s_ref, b_ref, o_ref):
    # x_ref/o_ref: (rows_tile, W*C) lane-dense; s/b: (1, W*C) per-channel params tiled over W.
    o_ref[...] = jnp.maximum(x_ref[...] * s_ref[...] + b_ref[...], 0.0).astype(o_ref.dtype)


def _pick_row_tile(rows, bytes_per_row, budget_bytes=8 << 20):
    """Largest multiple-of-8 divisor of `rows` whose tile fits the VMEM byte budget."""
    cap = max(8, budget_bytes // max(bytes_per_row, 1))
    if rows <= cap:
        return rows
    best = None
    d = 8
    while d <= cap:
        if rows % d == 0:
            best = d
        d += 8
    return best if best is not None else rows


def bn_relu_lanedense(y, scale, bias, H, W):
    """Fused folded-BatchNorm affine + ReLU. y: (N, H*W, C); scale/bias: (C,). Returns (N, H*W, C)."""
    N, HW, C = y.shape
    rows, WC = N * H, W * C
    y2 = y.reshape(rows, WC)                        # same row-major bytes: free reshape
    s = jnp.tile(scale, W).reshape(1, WC)           # lane index = w*C + c  ->  scale[c]
    b = jnp.tile(bias, W).reshape(1, WC)
    # in + out blocks, double-buffered -> ~16 bytes/row/lane of f32
    tr = _pick_row_tile(rows, WC * 4 * 4, budget_bytes=8 << 20)
    # TODO(synk): fuse the NHWC->NCHW output transpose here (lane-dense (1, C, H*W) store).
    out = pl.pallas_call(
        _bn_relu_kernel,
        out_shape=jax.ShapeDtypeStruct((rows, WC), jnp.float32),
        grid=(rows // tr,),
        in_specs=[
            pl.BlockSpec((tr, WC), lambda i: (i, 0)),
            pl.BlockSpec((1, WC), lambda i: (0, 0)),
            pl.BlockSpec((1, WC), lambda i: (0, 0)),
        ],
        out_specs=pl.BlockSpec((tr, WC), lambda i: (i, 0)),
        compiler_params=pltpu.CompilerParams(
            dimension_semantics=("parallel",),
            vmem_limit_bytes=_EW_VMEM_LIMIT),
    )(y2, s, b)
    return out.reshape(N, HW, C)


# --------------- BatchNorm folding (tiny (N, C) reductions, Chan's parallel variance) ---------------

def _fold_bn(ssum, m2, gamma, beta, hw):
    """Fold train-mode BatchNorm2d (batch mean, biased variance) into per-channel scale/bias.

    ssum / m2: (N, 1, C) per-image channel sum and centered sum-of-squares over hw pixels.
    """
    mean_i = ssum[:, 0, :] / hw                                     # (N, C) per-image means
    n_img = mean_i.shape[0]
    mean = jnp.mean(mean_i, axis=0)                                 # (C,) equal counts
    m2_tot = jnp.sum(m2[:, 0, :], axis=0) + hw * jnp.sum((mean_i - mean) ** 2, axis=0)
    var = jnp.maximum(m2_tot / (hw * n_img), 0.0)                   # biased variance (PyTorch norm)
    scale = gamma * jax.lax.rsqrt(var + _EPS)
    bias = beta - mean * scale
    return scale, bias


# --------------- encoding_block forward ---------------

def encoding_block_forward(x_nchw, params):
    """Pallas implementation of encoding_block.forward. Input / output are NCHW like PyTorch."""
    # TODO(synk): in a full U-Net keep activations NHWC end-to-end (or fold this layout change
    # into the first conv's DMA) to avoid this extra HBM pass over the input.
    x = jnp.transpose(x_nchw, (0, 2, 3, 1)).astype(jnp.float32)     # NCHW -> NHWC
    N, H, W, _ = x.shape
    C1 = params["w1"].shape[-1]
    C2 = params["w2"].shape[-1]
    hw = H * W

    # layer 1: conv with in-kernel halo + per-image channel stats (no HBM pad, no full reductions)
    y1, s1, m21 = conv3x3_bn_stats(x, params["w1"])
    sc1, bi1 = _fold_bn(s1, m21, params["g1"], params["b1"], hw)

    # layer 2: layer-1 BN + ReLU fused into the conv prologue (saves a full HBM round trip)
    y2, s2, m22 = conv3x3_bn_stats(y1.reshape(N, H, W, C1), params["w2"], sc1, bi1)
    sc2, bi2 = _fold_bn(s2, m22, params["g2"], params["b2"], hw)

    # final BN + ReLU as a lane-dense flattened elementwise kernel
    out = bn_relu_lanedense(y2, sc2, bi2, H, W)                     # (N, H*W, C2)
    out = out.reshape(N, H, W, C2)
    return jnp.transpose(out, (0, 3, 1, 2))                         # NHWC -> NCHW


# --------------- pure-JAX reference (correctness check only) ---------------

def encoding_block_reference(x_nchw, params):
    def conv(h, w):
        return jax.lax.conv_general_dilated(
            h, w, (1, 1), "SAME", dimension_numbers=("NHWC", "HWIO", "NHWC"))

    x = jnp.transpose(x_nchw, (0, 2, 3, 1))
    for i in (1, 2):
        y = conv(x, params[f"w{i}"])
        m = y.mean((0, 1, 2))
        v = ((y - m) ** 2).mean((0, 1, 2))
        x = jnp.maximum((y - m) * jax.lax.rsqrt(v + _EPS) * params[f"g{i}"] + params[f"b{i}"], 0.0)
    return jnp.transpose(x, (0, 3, 1, 2))


def init_params(key, in_channels, out_channels):
    k1, k2, k3, k4 = jax.random.split(key, 4)
    return {
        # Conv weights stored HWIO (3, 3, Cin, Cout); bias=False as in the module.
        "w1": 0.1 * jax.random.normal(k1, (3, 3, in_channels, out_channels), jnp.float32),
        "w2": 0.1 * jax.random.normal(k2, (3, 3, out_channels, out_channels), jnp.float32),
        # BatchNorm affine params (nontrivial values to exercise the folded affine path).
        "g1": 1.0 + 0.1 * jax.random.normal(k3, (out_channels,), jnp.float32),
        "b1": 0.1 * jax.random.normal(k4, (out_channels,), jnp.float32),
        "g2": 1.0 + 0.1 * jax.random.normal(jax.random.fold_in(k3, 1), (out_channels,), jnp.float32),
        "b2": 0.1 * jax.random.normal(jax.random.fold_in(k4, 1), (out_channels,), jnp.float32),
    }


if __name__ == "__main__":
    key = jax.random.PRNGKey(0)
    kx, kp = jax.random.split(key)

    N, Cin, Cout, H, W = 2, 4, 8, 16, 16
    x = jax.random.normal(kx, (N, Cin, H, W), jnp.float32)   # NCHW, like the PyTorch module
    params = init_params(kp, Cin, Cout)

    fwd = jax.jit(encoding_block_forward)
    out = jax.block_until_ready(fwd(x, params))
    ref = jax.block_until_ready(encoding_block_reference(x, params))

    assert out.shape == (N, Cout, H, W), out.shape
    assert jnp.allclose(out, ref, atol=1e-3, rtol=1e-3), float(jnp.max(jnp.abs(out - ref)))

    print("KERNEL_OK")
</pallas_src>

<mosaic_0001>
module attributes {stable_mosaic.version = 11 : i64} {
  func.func @_conv_bn_stats_kernel(%arg0: i32, %arg1: memref<1x16x16x4xf32, #tpu.memory_space<vmem>>, %arg2: memref<1x4xf32, #tpu.memory_space<vmem>>, %arg3: memref<1x4xf32, #tpu.memory_space<vmem>>, %arg4: memref<3x12x8xf32, #tpu.memory_space<vmem>>, %arg5: memref<1x256x8xf32, #tpu.memory_space<vmem>>, %arg6: memref<1x1x8xf32, #tpu.memory_space<vmem>>, %arg7: memref<1x1x8xf32, #tpu.memory_space<vmem>>, %arg8: memref<18x32x4xf32, #tpu.memory_space<vmem>>) attributes {dimension_semantics = [#tpu.dimension_semantics<parallel>], iteration_bounds = array<i64: 2>, scalar_prefetch = 0 : i64, scratch_operands = 1 : i64, tpu.core_type = #tpu.core_type<tc>, window_params = [{transform_indices = @transform_0, window_bounds = array<i64: 1, 16, 16, 4>}, {pipeline_mode = #tpu.pipeline_mode<synchronous>, transform_indices = @transform_1, window_bounds = array<i64: 1, 4>}, {pipeline_mode = #tpu.pipeline_mode<synchronous>, transform_indices = @transform_2, window_bounds = array<i64: 1, 4>}, {pipeline_mode = #tpu.pipeline_mode<synchronous>, transform_indices = @transform_3, window_bounds = array<i64: 3, 12, 8>}, {transform_indices = @transform_4, window_bounds = array<i64: 1, 256, 8>}, {transform_indices = @transform_5, window_bounds = array<i64: 1, 1, 8>}, {transform_indices = @transform_6, window_bounds = array<i64: 1, 1, 8>}]} {
    %c0 = arith.constant 0 : index
    %c0_0 = arith.constant 0 : index
    %c0_1 = arith.constant 0 : index
    %c0_2 = arith.constant 0 : index
    %0 = vector.load %arg1[%c0, %c0_0, %c0_1, %c0_2] : memref<1x16x16x4xf32, #tpu.memory_space<vmem>>, vector<1x16x16x4xf32>
    %1 = vector.shape_cast %0 : vector<1x16x16x4xf32> to vector<16x16x4xf32>
    %cst = arith.constant 0.000000e+00 : f32
    %2 = vector.broadcast %cst : f32 to vector<1x32x4xf32>
    %cst_3 = arith.constant 0.000000e+00 : f32
    %3 = vector.broadcast %cst_3 : f32 to vector<16x1x4xf32>
    %c0_4 = arith.constant 0 : index
    %c0_5 = arith.constant 0 : index
    %c0_6 = arith.constant 0 : index
    %4 = vector.load %arg8[%c0_4, %c0_5, %c0_6] : memref<18x32x4xf32, #tpu.memory_space<vmem>>, vector<1x32x4xf32>
    tpu.vector_store %arg8[%c0_4, %c0_5, %c0_6], %2 {strides = array<i32>} : memref<18x32x4xf32, #tpu.memory_space<vmem>>, vector<1x32x4xf32>,
    %c17 = arith.constant 17 : index
    %c0_7 = arith.constant 0 : index
    %c0_8 = arith.constant 0 : index
    %5 = vector.load %arg8[%c17, %c0_7, %c0_8] : memref<18x32x4xf32, #tpu.memory_space<vmem>>, vector<1x32x4xf32>
    tpu.vector_store %arg8[%c17, %c0_7, %c0_8], %2 {strides = array<i32>} : memref<18x32x4xf32, #tpu.memory_space<vmem>>, vector<1x32x4xf32>,
    %c1 = arith.constant 1 : index
    %c7 = arith.constant 7 : index
    %c0_9 = arith.constant 0 : index
    %6 = vector.load %arg8[%c1, %c7, %c0_9] : memref<18x32x4xf32, #tpu.memory_space<vmem>>, vector<16x1x4xf32>
    tpu.vector_store %arg8[%c1, %c7, %c0_9], %3 {strides = array<i32>} : memref<18x32x4xf32, #tpu.memory_space<vmem>>, vector<16x1x4xf32>,
    %c1_10 = arith.constant 1 : index
    %c24 = arith.constant 24 : index
    %c0_11 = arith.constant 0 : index
    %7 = vector.load %arg8[%c1_10, %c24, %c0_11] : memref<18x32x4xf32, #tpu.memory_space<vmem>>, vector<16x1x4xf32>
    tpu.vector_store %arg8[%c1_10, %c24, %c0_11], %3 {strides = array<i32>} : memref<18x32x4xf32, #tpu.memory_space<vmem>>, vector<16x1x4xf32>,
    %c1_12 = arith.constant 1 : index
    %c8 = arith.constant 8 : index
    %c0_13 = arith.constant 0 : index
    %8 = vector.load %arg8[%c1_12, %c8, %c0_13] : memref<18x32x4xf32, #tpu.memory_space<vmem>>, vector<16x16x4xf32>
    tpu.vector_store %arg8[%c1_12, %c8, %c0_13], %1 {strides = array<i32>} : memref<18x32x4xf32, #tpu.memory_space<vmem>>, vector<16x16x4xf32>,
    %c0_14 = arith.constant 0 : index
    %c7_15 = arith.constant 7 : index
    %c0_16 = arith.constant 0 : index
    %9 = vector.load %arg8[%c0_14, %c7_15, %c0_16] : memref<18x32x4xf32, #tpu.memory_space<vmem>>, vector<18x16x4xf32>
    %c0_17 = arith.constant 0 : index
    %c8_18 = arith.constant 8 : index
    %c0_19 = arith.constant 0 : index
    %10 = vector.load %arg8[%c0_17, %c8_18, %c0_19] : memref<18x32x4xf32, #tpu.memory_space<vmem>>, vector<18x16x4xf32>
    %c0_20 = arith.constant 0 : index
    %c9 = arith.constant 9 : index
    %c0_21 = arith.constant 0 : index
    %11 = vector.load %arg8[%c0_20, %c9, %c0_21] : memref<18x32x4xf32, #tpu.memory_space<vmem>>, vector<18x16x4xf32>
    %12 = tpu.concatenate %9, %10, %11 in 2 : vector<18x16x4xf32>, vector<18x16x4xf32>, vector<18x16x4xf32> -> vector<18x16x12xf32>
    %13 = vector.shape_cast %12 : vector<18x16x12xf32> to vector<288x12xf32>
    %14 = vector.extract_strided_slice %13 {offsets = [0, 0], sizes = [256, 12], strides = [1, 1]} : vector<288x12xf32> to vector<256x12xf32>
    %c0_22 = arith.constant 0 : index
    %c0_23 = arith.constant 0 : index
    %c0_24 = arith.constant 0 : index
    %15 = vector.load %arg4[%c0_22, %c0_23, %c0_24] : memref<3x12x8xf32, #tpu.memory_space<vmem>>, vector<1x12x8xf32>
    %16 = vector.shape_cast %15 : vector<1x12x8xf32> to vector<12x8xf32>
    %cst_25 = arith.constant dense<0.000000e+00> : vector<256x8xf32>
    %17 = tpu.matmul %14, %16, %cst_25 {dimension_numbers = #tpu.dot_dimension_numbers<[1], [0], [0], [1], [0, 0, 1, 1], [], []>} : vector<256x12xf32>, vector<12x8xf32>, vector<256x8xf32> -> vector<256x8xf32>
    %18 = vector.extract_strided_slice %13 {offsets = [16, 0], sizes = [256, 12], strides = [1, 1]} : vector<288x12xf32> to vector<256x12xf32>
    %c1_26 = arith.constant 1 : index
    %c0_27 = arith.constant 0 : index
    %c0_28 = arith.constant 0 : index
    %19 = vector.load %arg4[%c1_26, %c0_27, %c0_28] : memref<3x12x8xf32, #tpu.memory_space<vmem>>, vector<1x12x8xf32>
    %20 = vector.shape_cast %19 : vector<1x12x8xf32> to vector<12x8xf32>
    %cst_29 = arith.constant dense<0.000000e+00> : vector<256x8xf32>
    %21 = tpu.matmul %18, %20, %cst_29 {dimension_numbers = #tpu.dot_dimension_numbers<[1], [0], [0], [1], [0, 0, 1, 1], [], []>} : vector<256x12xf32>, vector<12x8xf32>, vector<256x8xf32> -> vector<256x8xf32>
    %22 = arith.addf %17, %21 : vector<256x8xf32>
    %23 = vector.extract_strided_slice %13 {offsets = [32, 0], sizes = [256, 12], strides = [1, 1]} : vector<288x12xf32> to vector<256x12xf32>
    %c2 = arith.constant 2 : index
    %c0_30 = arith.constant 0 : index
    %c0_31 = arith.constant 0 : index
    %24 = vector.load %arg4[%c2, %c0_30, %c0_31] : memref<3x12x8xf32, #tpu.memory_space<vmem>>, vector<1x12x8xf32>
    %25 = vector.shape_cast %24 : vector<1x12x8xf32> to vector<12x8xf32>
    %cst_32 = arith.constant dense<0.000000e+00> : vector<256x8xf32>
    %26 = tpu.matmul %23, %25, %cst_32 {dimension_numbers = #tpu.dot_dimension_numbers<[1], [0], [0], [1], [0, 0, 1, 1], [], []>} : vector<256x12xf32>, vector<12x8xf32>, vector<256x8xf32> -> vector<256x8xf32>
    %27 = arith.addf %22, %26 : vector<256x8xf32>
    %c0_33 = arith.constant 0 : index
    %c0_34 = arith.constant 0 : index
    %c0_35 = arith.constant 0 : index
    %28 = vector.load %arg5[%c0_33, %c0_34, %c0_35] : memref<1x256x8xf32, #tpu.memory_space<vmem>>, vector<1x256x8xf32>
    %29 = vector.shape_cast %28 : vector<1x256x8xf32> to vector<256x8xf32>
    %30 = vector.shape_cast %27 : vector<256x8xf32> to vector<1x256x8xf32>
    tpu.vector_store %arg5[%c0_33, %c0_34, %c0_35], %30 {strides = array<i32>} : memref<1x256x8xf32, #tpu.memory_space<vmem>>, vector<1x256x8xf32>,
    %cst_36 = arith.constant dense<0.000000e+00> : vector<8xf32>
    %31 = vector.multi_reduction <add>, %27, %cst_36 [0] : vector<256x8xf32> to vector<8xf32>
    %cst_37 = arith.constant 3.906250e-03 : f32
    %32 = vector.broadcast %cst_37 : f32 to vector<8xf32>
    %33 = arith.mulf %31, %32 : vector<8xf32>
    %34 = vector.shape_cast %33 : vector<8xf32> to vector<1x8xf32>
    %35 = vector.broadcast %34 : vector<1x8xf32> to vector<256x8xf32>
    %36 = arith.subf %27, %35 : vector<256x8xf32>
    %37 = vector.shape_cast %31 : vector<8xf32> to vector<1x1x8xf32>
    %c0_38 = arith.constant 0 : index
    %c0_39 = arith.constant 0 : index
    %c0_40 = arith.constant 0 : index
    %38 = vector.load %arg6[%c0_38, %c0_39, %c0_40] : memref<1x1x8xf32, #tpu.memory_space<vmem>>, vector<1x1x8xf32>
    tpu.vector_store %arg6[%c0_38, %c0_39, %c0_40], %37 {strides = array<i32>} : memref<1x1x8xf32, #tpu.memory_space<vmem>>, vector<1x1x8xf32>,
    %39 = arith.mulf %36, %36 : vector<256x8xf32>
    %cst_41 = arith.constant dense<0.000000e+00> : vector<8xf32>
    %40 = vector.multi_reduction <add>, %39, %cst_41 [0] : vector<256x8xf32> to vector<8xf32>
    %41 = vector.shape_cast %40 : vector<8xf32> to vector<1x1x8xf32>
    %c0_42 = arith.constant 0 : index
    %c0_43 = arith.constant 0 : index
    %c0_44 = arith.constant 0 : index
    %42 = vector.load %arg7[%c0_42, %c0_43, %c0_44] : memref<1x1x8xf32, #tpu.memory_space<vmem>>, vector<1x1x8xf32>
    tpu.vector_store %arg7[%c0_42, %c0_43, %c0_44], %41 {strides = array<i32>} : memref<1x1x8xf32, #tpu.memory_space<vmem>>, vector<1x1x8xf32>,
    return
  }
  func.func @transform_0(%arg0: i32) -> (i32, i32, i32, i32) {
    %c0_i32 = arith.constant 0 : i32
    %c0_i32_0 = arith.constant 0 : i32
    %c0_i32_1 = arith.constant 0 : i32
    %c0_i32_2 = arith.constant 0 : i32
    return %arg0, %c0_i32, %c0_i32_0, %c0_i32_1 : i32, i32, i32, i32
  }
  func.func @transform_1(%arg0: i32) -> (i32, i32) {
    %c0_i32 = arith.constant 0 : i32
    %c0_i32_0 = arith.constant 0 : i32
    %c0_i32_1 = arith.constant 0 : i32
    return %c0_i32, %c0_i32_0 : i32, i32
  }
  func.func @transform_2(%arg0: i32) -> (i32, i32) {
    %c0_i32 = arith.constant 0 : i32
    %c0_i32_0 = arith.constant 0 : i32
    %c0_i32_1 = arith.constant 0 : i32
    return %c0_i32, %c0_i32_0 : i32, i32
  }
  func.func @transform_3(%arg0: i32) -> (i32, i32, i32) {
    %c0_i32 = arith.constant 0 : i32
    %c0_i32_0 = arith.constant 0 : i32
    %c0_i32_1 = arith.constant 0 : i32
    %c0_i32_2 = arith.constant 0 : i32
    return %c0_i32, %c0_i32_0, %c0_i32_1 : i32, i32, i32
  }
  func.func @transform_4(%arg0: i32) -> (i32, i32, i32) {
    %c0_i32 = arith.constant 0 : i32
    %c0_i32_0 = arith.constant 0 : i32
    %c0_i32_1 = arith.constant 0 : i32
    return %arg0, %c0_i32, %c0_i32_0 : i32, i32, i32
  }
  func.func @transform_5(%arg0: i32) -> (i32, i32, i32) {
    %c0_i32 = arith.constant 0 : i32
    %c0_i32_0 = arith.constant 0 : i32
    %c0_i32_1 = arith.constant 0 : i32
    return %arg0, %c0_i32, %c0_i32_0 : i32, i32, i32
  }
  func.func @transform_6(%arg0: i32) -> (i32, i32, i32) {
    %c0_i32 = arith.constant 0 : i32
    %c0_i32_0 = arith.constant 0 : i32
    %c0_i32_1 = arith.constant 0 : i32
    return %arg0, %c0_i32, %c0_i32_0 : i32, i32, i32
  }
}

module attributes {stable_mosaic.version = 11 : i64} {
  func.func @_conv_bn_stats_kernel(%arg0: i32, %arg1: memref<1x16x16x8xf32, #tpu.memory_space<vmem>>, %arg2: memref<1x8xf32, #tpu.memory_space<vmem>>, %arg3: memref<1x8xf32, #tpu.memory_space<vmem>>, %arg4: memref<3x24x8xf32, #tpu.memory_space<vmem>>, %arg5: memref<1x256x8xf32, #tpu.memory_space<vmem>>, %arg6: memref<1x1x8xf32, #tpu.memory_space<vmem>>, %arg7: memref<1x1x8xf32, #tpu.memory_space<vmem>>, %arg8: memref<18x32x8xf32, #tpu.memory_space<vmem>>) attributes {dimension_semantics = [#tpu.dimension_semantics<parallel>], iteration_bounds = array<i64: 2>, scalar_prefetch = 0 : i64, scratch_operands = 1 : i64, tpu.core_type = #tpu.core_type<tc>, window_params = [{transform_indices = @transform_0, window_bounds = array<i64: 1, 16, 16, 8>}, {pipeline_mode = #tpu.pipeline_mode<synchronous>, transform_indices = @transform_1, window_bounds = array<i64: 1, 8>}, {pipeline_mode = #tpu.pipeline_mode<synchronous>, transform_indices = @transform_2, window_bounds = array<i64: 1, 8>}, {pipeline_mode = #tpu.pipeline_mode<synchronous>, transform_indices = @transform_3, window_bounds = array<i64: 3, 24, 8>}, {transform_indices = @transform_4, window_bounds = array<i64: 1, 256, 8>}, {transform_indices = @transform_5, window_bounds = array<i64: 1, 1, 8>}, {transform_indices = @transform_6, window_bounds = array<i64: 1, 1, 8>}]} {
    %c0 = arith.constant 0 : index
    %c0_0 = arith.constant 0 : index
    %c0_1 = arith.constant 0 : index
    %c0_2 = arith.constant 0 : index
    %0 = vector.load %arg1[%c0, %c0_0, %c0_1, %c0_2] : memref<1x16x16x8xf32, #tpu.memory_space<vmem>>, vector<1x16x16x8xf32>
    %1 = vector.shape_cast %0 : vector<1x16x16x8xf32> to vector<16x16x8xf32>
    %c0_3 = arith.constant 0 : index
    %c0_4 = arith.constant 0 : index
    %2 = vector.load %arg2[%c0_3, %c0_4] : memref<1x8xf32, #tpu.memory_space<vmem>>, vector<1x8xf32>
    %3 = vector.shape_cast %2 : vector<1x8xf32> to vector<8xf32>
    %4 = vector.shape_cast %3 : vector<8xf32> to vector<1x1x8xf32>
    %5 = vector.broadcast %4 : vector<1x1x8xf32> to vector<16x16x8xf32>
    %6 = arith.mulf %1, %5 : vector<16x16x8xf32>
    %c0_5 = arith.constant 0 : index
    %c0_6 = arith.constant 0 : index
    %7 = vector.load %arg3[%c0_5, %c0_6] : memref<1x8xf32, #tpu.memory_space<vmem>>, vector<1x8xf32>
    %8 = vector.shape_cast %7 : vector<1x8xf32> to vector<8xf32>
    %9 = vector.shape_cast %8 : vector<8xf32> to vector<1x1x8xf32>
    %10 = vector.broadcast %9 : vector<1x1x8xf32> to vector<16x16x8xf32>
    %11 = arith.addf %6, %10 : vector<16x16x8xf32>
    %cst = arith.constant 0.000000e+00 : f32
    %12 = vector.broadcast %cst : f32 to vector<16x16x8xf32>
    %13 = arith.maximumf %11, %12 : vector<16x16x8xf32>
    %cst_7 = arith.constant 0.000000e+00 : f32
    %14 = vector.broadcast %cst_7 : f32 to vector<1x32x8xf32>
    %cst_8 = arith.constant 0.000000e+00 : f32
    %15 = vector.broadcast %cst_8 : f32 to vector<16x1x8xf32>
    %c0_9 = arith.constant 0 : index
    %c0_10 = arith.constant 0 : index
    %c0_11 = arith.constant 0 : index
    %16 = vector.load %arg8[%c0_9, %c0_10, %c0_11] : memref<18x32x8xf32, #tpu.memory_space<vmem>>, vector<1x32x8xf32>
    tpu.vector_store %arg8[%c0_9, %c0_10, %c0_11], %14 {strides = array<i32>} : memref<18x32x8xf32, #tpu.memory_space<vmem>>, vector<1x32x8xf32>,
    %c17 = arith.constant 17 : index
    %c0_12 = arith.constant 0 : index
    %c0_13 = arith.constant 0 : index
    %17 = vector.load %arg8[%c17, %c0_12, %c0_13] : memref<18x32x8xf32, #tpu.memory_space<vmem>>, vector<1x32x8xf32>
    tpu.vector_store %arg8[%c17, %c0_12, %c0_13], %14 {strides = array<i32>} : memref<18x32x8xf32, #tpu.memory_space<vmem>>, vector<1x32x8xf32>,
    %c1 = arith.constant 1 : index
    %c7 = arith.constant 7 : index
    %c0_14 = arith.constant 0 : index
    %18 = vector.load %arg8[%c1, %c7, %c0_14] : memref<18x32x8xf32, #tpu.memory_space<vmem>>, vector<16x1x8xf32>
    tpu.vector_store %arg8[%c1, %c7, %c0_14], %15 {strides = array<i32>} : memref<18x32x8xf32, #tpu.memory_space<vmem>>, vector<16x1x8xf32>,
    %c1_15 = arith.constant 1 : index
    %c24 = arith.constant 24 : index
    %c0_16 = arith.constant 0 : index
    %19 = vector.load %arg8[%c1_15, %c24, %c0_16] : memref<18x32x8xf32, #tpu.memory_space<vmem>>, vector<16x1x8xf32>
    tpu.vector_store %arg8[%c1_15, %c24, %c0_16], %15 {strides = array<i32>} : memref<18x32x8xf32, #tpu.memory_space<vmem>>, vector<16x1x8xf32>,
    %c1_17 = arith.constant 1 : index
    %c8 = arith.constant 8 : index
    %c0_18 = arith.constant 0 : index
    %20 = vector.load %arg8[%c1_17, %c8, %c0_18] : memref<18x32x8xf32, #tpu.memory_space<vmem>>, vector<16x16x8xf32>
    tpu.vector_store %arg8[%c1_17, %c8, %c0_18], %13 {strides = array<i32>} : memref<18x32x8xf32, #tpu.memory_space<vmem>>, vector<16x16x8xf32>,
    %c0_19 = arith.constant 0 : index
    %c7_20 = arith.constant 7 : index
    %c0_21 = arith.constant 0 : index
    %21 = vector.load %arg8[%c0_19, %c7_20, %c0_21] : memref<18x32x8xf32, #tpu.memory_space<vmem>>, vector<18x16x8xf32>
    %c0_22 = arith.constant 0 : index
    %c8_23 = arith.constant 8 : index
    %c0_24 = arith.constant 0 : index
    %22 = vector.load %arg8[%c0_22, %c8_23, %c0_24] : memref<18x32x8xf32, #tpu.memory_space<vmem>>, vector<18x16x8xf32>
    %c0_25 = arith.constant 0 : index
    %c9 = arith.constant 9 : index
    %c0_26 = arith.constant 0 : index
    %23 = vector.load %arg8[%c0_25, %c9, %c0_26] : memref<18x32x8xf32, #tpu.memory_space<vmem>>, vector<18x16x8xf32>
    %24 = tpu.concatenate %21, %22, %23 in 2 : vector<18x16x8xf32>, vector<18x16x8xf32>, vector<18x16x8xf32> -> vector<18x16x24xf32>
    %25 = vector.shape_cast %24 : vector<18x16x24xf32> to vector<288x24xf32>
    %26 = vector.extract_strided_slice %25 {offsets = [0, 0], sizes = [256, 24], strides = [1, 1]} : vector<288x24xf32> to vector<256x24xf32>
    %c0_27 = arith.constant 0 : index
    %c0_28 = arith.constant 0 : index
    %c0_29 = arith.constant 0 : index
    %27 = vector.load %arg4[%c0_27, %c0_28, %c0_29] : memref<3x24x8xf32, #tpu.memory_space<vmem>>, vector<1x24x8xf32>
    %28 = vector.shape_cast %27 : vector<1x24x8xf32> to vector<24x8xf32>
    %cst_30 = arith.constant dense<0.000000e+00> : vector<256x8xf32>
    %29 = tpu.matmul %26, %28, %cst_30 {dimension_numbers = #tpu.dot_dimension_numbers<[1], [0], [0], [1], [0, 0, 1, 1], [], []>} : vector<256x24xf32>, vector<24x8xf32>, vector<256x8xf32> -> vector<256x8xf32>
    %30 = vector.extract_strided_slice %25 {offsets = [16, 0], sizes = [256, 24], strides = [1, 1]} : vector<288x24xf32> to vector<256x24xf32>
    %c1_31 = arith.constant 1 : index
    %c0_32 = arith.constant 0 : index
    %c0_33 = arith.constant 0 : index
    %31 = vector.load %arg4[%c1_31, %c0_32, %c0_33] : memref<3x24x8xf32, #tpu.memory_space<vmem>>, vector<1x24x8xf32>
    %32 = vector.shape_cast %31 : vector<1x24x8xf32> to vector<24x8xf32>
    %cst_34 = arith.constant dense<0.000000e+00> : vector<256x8xf32>
    %33 = tpu.matmul %30, %32, %cst_34 {dimension_numbers = #tpu.dot_dimension_numbers<[1], [0], [0], [1], [0, 0, 1, 1], [], []>} : vector<256x24xf32>, vector<24x8xf32>, vector<256x8xf32> -> vector<256x8xf32>
    %34 = arith.addf %29, %33 : vector<256x8xf32>
    %35 = vector.extract_strided_slice %25 {offsets = [32, 0], sizes = [256, 24], strides = [1, 1]} : vector<288x24xf32> to vector<256x24xf32>
    %c2 = arith.constant 2 : index
    %c0_35 = arith.constant 0 : index
    %c0_36 = arith.constant 0 : index
    %36 = vector.load %arg4[%c2, %c0_35, %c0_36] : memref<3x24x8xf32, #tpu.memory_space<vmem>>, vector<1x24x8xf32>
    %37 = vector.shape_cast %36 : vector<1x24x8xf32> to vector<24x8xf32>
    %cst_37 = arith.constant dense<0.000000e+00> : vector<256x8xf32>
    %38 = tpu.matmul %35, %37, %cst_37 {dimension_numbers = #tpu.dot_dimension_numbers<[1], [0], [0], [1], [0, 0, 1, 1], [], []>} : vector<256x24xf32>, vector<24x8xf32>, vector<256x8xf32> -> vector<256x8xf32>
    %39 = arith.addf %34, %38 : vector<256x8xf32>
    %c0_38 = arith.constant 0 : index
    %c0_39 = arith.constant 0 : index
    %c0_40 = arith.constant 0 : index
    %40 = vector.load %arg5[%c0_38, %c0_39, %c0_40] : memref<1x256x8xf32, #tpu.memory_space<vmem>>, vector<1x256x8xf32>
    %41 = vector.shape_cast %40 : vector<1x256x8xf32> to vector<256x8xf32>
    %42 = vector.shape_cast %39 : vector<256x8xf32> to vector<1x256x8xf32>
    tpu.vector_store %arg5[%c0_38, %c0_39, %c0_40], %42 {strides = array<i32>} : memref<1x256x8xf32, #tpu.memory_space<vmem>>, vector<1x256x8xf32>,
    %cst_41 = arith.constant dense<0.000000e+00> : vector<8xf32>
    %43 = vector.multi_reduction <add>, %39, %cst_41 [0] : vector<256x8xf32> to vector<8xf32>
    %cst_42 = arith.constant 3.906250e-03 : f32
    %44 = vector.broadcast %cst_42 : f32 to vector<8xf32>
    %45 = arith.mulf %43, %44 : vector<8xf32>
    %46 = vector.shape_cast %45 : vector<8xf32> to vector<1x8xf32>
    %47 = vector.broadcast %46 : vector<1x8xf32> to vector<256x8xf32>
    %48 = arith.subf %39, %47 : vector<256x8xf32>
    %49 = vector.shape_cast %43 : vector<8xf32> to vector<1x1x8xf32>
    %c0_43 = arith.constant 0 : index
    %c0_44 = arith.constant 0 : index
    %c0_45 = arith.constant 0 : index
    %50 = vector.load %arg6[%c0_43, %c0_44, %c0_45] : memref<1x1x8xf32, #tpu.memory_space<vmem>>, vector<1x1x8xf32>
    tpu.vector_store %arg6[%c0_43, %c0_44, %c0_45], %49 {strides = array<i32>} : memref<1x1x8xf32, #tpu.memory_space<vmem>>, vector<1x1x8xf32>,
    %51 = arith.mulf %48, %48 : vector<256x8xf32>
    %cst_46 = arith.constant dense<0.000000e+00> : vector<8xf32>
    %52 = vector.multi_reduction <add>, %51, %cst_46 [0] : vector<256x8xf32> to vector<8xf32>
    %53 = vector.shape_cast %52 : vector<8xf32> to vector<1x1x8xf32>
    %c0_47 = arith.constant 0 : index
    %c0_48 = arith.constant 0 : index
    %c0_49 = arith.constant 0 : index
    %54 = vector.load %arg7[%c0_47, %c0_48, %c0_49] : memref<1x1x8xf32, #tpu.memory_space<vmem>>, vector<1x1x8xf32>
    tpu.vector_store %arg7[%c0_47, %c0_48, %c0_49], %53 {strides = array<i32>} : memref<1x1x8xf32, #tpu.memory_space<vmem>>, vector<1x1x8xf32>,
    return
  }
  func.func @transform_0(%arg0: i32) -> (i32, i32, i32, i32) {
    %c0_i32 = arith.constant 0 : i32
    %c0_i32_0 = arith.constant 0 : i32
    %c0_i32_1 = arith.constant 0 : i32
    %c0_i32_2 = arith.constant 0 : i32
    return %arg0, %c0_i32, %c0_i32_0, %c0_i32_1 : i32, i32, i32, i32
  }
  func.func @transform_1(%arg0: i32) -> (i32, i32) {
    %c0_i32 = arith.constant 0 : i32
    %c0_i32_0 = arith.constant 0 : i32
    %c0_i32_1 = arith.constant 0 : i32
    return %c0_i32, %c0_i32_0 : i32, i32
  }
  func.func @transform_2(%arg0: i32) -> (i32, i32) {
    %c0_i32 = arith.constant 0 : i32
    %c0_i32_0 = arith.constant 0 : i32
    %c0_i32_1 = arith.constant 0 : i32
    return %c0_i32, %c0_i32_0 : i32, i32
  }
  func.func @transform_3(%arg0: i32) -> (i32, i32, i32) {
    %c0_i32 = arith.constant 0 : i32
    %c0_i32_0 = arith.constant 0 : i32
    %c0_i32_1 = arith.constant 0 : i32
    %c0_i32_2 = arith.constant 0 : i32
    return %c0_i32, %c0_i32_0, %c0_i32_1 : i32, i32, i32
  }
  func.func @transform_4(%arg0: i32) -> (i32, i32, i32) {
    %c0_i32 = arith.constant 0 : i32
    %c0_i32_0 = arith.constant 0 : i32
    %c0_i32_1 = arith.constant 0 : i32
    return %arg0, %c0_i32, %c0_i32_0 : i32, i32, i32
  }
  func.func @transform_5(%arg0: i32) -> (i32, i32, i32) {
    %c0_i32 = arith.constant 0 : i32
    %c0_i32_0 = arith.constant 0 : i32
    %c0_i32_1 = arith.constant 0 : i32
    return %arg0, %c0_i32, %c0_i32_0 : i32, i32, i32
  }
  func.func @transform_6(%arg0: i32) -> (i32, i32, i32) {
    %c0_i32 = arith.constant 0 : i32
    %c0_i32_0 = arith.constant 0 : i32
    %c0_i32_1 = arith.constant 0 : i32
    return %arg0, %c0_i32, %c0_i32_0 : i32, i32, i32
  }
}

module attributes {stable_mosaic.version = 11 : i64} {
  func.func @_bn_relu_kernel(%arg0: i32, %arg1: memref<32x128xf32, #tpu.memory_space<vmem>>, %arg2: memref<1x128xf32, #tpu.memory_space<vmem>>, %arg3: memref<1x128xf32, #tpu.memory_space<vmem>>, %arg4: memref<32x128xf32, #tpu.memory_space<vmem>>) attributes {dimension_semantics = [#tpu.dimension_semantics<parallel>], iteration_bounds = array<i64: 1>, scalar_prefetch = 0 : i64, scratch_operands = 0 : i64, tpu.core_type = #tpu.core_type<tc>, window_params = [{transform_indices = @transform_0, window_bounds = array<i64: 32, 128>}, {pipeline_mode = #tpu.pipeline_mode<synchronous>, transform_indices = @transform_1, window_bounds = array<i64: 1, 128>}, {pipeline_mode = #tpu.pipeline_mode<synchronous>, transform_indices = @transform_2, window_bounds = array<i64: 1, 128>}, {transform_indices = @transform_3, window_bounds = array<i64: 32, 128>}]} {
    %c0 = arith.constant 0 : index
    %c0_0 = arith.constant 0 : index
    %0 = vector.load %arg1[%c0, %c0_0] : memref<32x128xf32, #tpu.memory_space<vmem>>, vector<32x128xf32>
    %c0_1 = arith.constant 0 : index
    %c0_2 = arith.constant 0 : index
    %1 = vector.load %arg2[%c0_1, %c0_2] : memref<1x128xf32, #tpu.memory_space<vmem>>, vector<1x128xf32>
    %2 = vector.broadcast %1 : vector<1x128xf32> to vector<32x128xf32>
    %3 = arith.mulf %0, %2 : vector<32x128xf32>
    %c0_3 = arith.constant 0 : index
    %c0_4 = arith.constant 0 : index
    %4 = vector.load %arg3[%c0_3, %c0_4] : memref<1x128xf32, #tpu.memory_space<vmem>>, vector<1x128xf32>
    %5 = vector.broadcast %4 : vector<1x128xf32> to vector<32x128xf32>
    %6 = arith.addf %3, %5 : vector<32x128xf32>
    %cst = arith.constant 0.000000e+00 : f32
    %7 = vector.broadcast %cst : f32 to vector<32x128xf32>
    %8 = arith.maximumf %6, %7 : vector<32x128xf32>
    %c0_5 = arith.constant 0 : index
    %c0_6 = arith.constant 0 : index
    %9 = vector.load %arg4[%c0_5, %c0_6] : memref<32x128xf32, #tpu.memory_space<vmem>>, vector<32x128xf32>
    tpu.vector_store %arg4[%c0_5, %c0_6], %8 {strides = array<i32>} : memref<32x128xf32, #tpu.memory_space<vmem>>, vector<32x128xf32>,
    return
  }
  func.func @transform_0(%arg0: i32) -> (i32, i32) {
    %c0_i32 = arith.constant 0 : i32
    %c0_i32_0 = arith.constant 0 : i32
    return %arg0, %c0_i32 : i32, i32
  }
  func.func @transform_1(%arg0: i32) -> (i32, i32) {
    %c0_i32 = arith.constant 0 : i32
    %c0_i32_0 = arith.constant 0 : i32
    %c0_i32_1 = arith.constant 0 : i32
    return %c0_i32, %c0_i32_0 : i32, i32
  }
  func.func @transform_2(%arg0: i32) -> (i32, i32) {
    %c0_i32 = arith.constant 0 : i32
    %c0_i32_0 = arith.constant 0 : i32
    %c0_i32_1 = arith.constant 0 : i32
    return %c0_i32, %c0_i32_0 : i32, i32
  }
  func.func @transform_3(%arg0: i32) -> (i32, i32) {
    %c0_i32 = arith.constant 0 : i32
    %c0_i32_0 = arith.constant 0 : i32
    return %arg0, %c0_i32 : i32, i32
  }
}

</mosaic_0001>

<bundles_post_ra>
// kernel: tile.18
= control target key start
LH: loop header
LB: loop body
LE: loop exit
PB: predicated region body
PF: predicated region fallthrough
CT: control target
= control target key end

     0   :  { %s28_s0 = inlined_call_operand.vmem [shape: f32[8], index: 0, kind: input, shape index: {}]   ;;  %s29_s1 = inlined_call_operand.vmem [shape: f32[16,8], index: 1, kind: output, shape index: {}]  }
   0x1   :  { %v4_v0 = vld [vmem:[%s28_s0] ss:$0 sm:$0xff] }
   0x2   :  { %5 = vst [vmem:[%s29_s1] sm:$0xff] %v4_v0 }
   0x3   :  { %8 = vst [vmem:[%s29_s1 + $0x8] sm:$0xff] %v4_v0 }

// kernel: tile.19
= control target key start
LH: loop header
LB: loop body
LE: loop exit
PB: predicated region body
PF: predicated region fallthrough
CT: control target
= control target key end

     0   :  { %s131_s10 = smov 120   ;;  %s132_s11 = smov 104   ;;  %vm3_vm0 = vcmask 64512   ;;  %vm9_vm1 = vcmask 1048512   ;;  %vm15_vm2 = vcmask 982912   ;;  %vm21_vm3 = vcmask 917312   ;;  %s207_s0 = inlined_call_operand.vmem [shape: f32[16,8], index: 0, kind: input, shape index: {}]   ;;  %s208_s1 = inlined_call_operand.vmem [shape: f32[1,128], index: 1, kind: output, shape index: {}]  }
   0x1   :  { %v101_v0 = vld [vmem:[%s207_s0 + $0xf] sm:$0x1]   ;;  %v103_v1 = vld [vmem:[%s207_s0 + $0xd] sm:$0x1]   ;;  %v105_v2 = vld [vmem:[%s207_s0 + $0xb] sm:$0x1]  }
   0x2   :  { %7 = vrot.lane.b32.xlu0 %v101_v0, %s131_s10  ;;  %19 = vrot.lane.b32.xlu1 %v103_v1, %s132_s11  ;;  %s133_s14 = smov 88   ;;  %v102_v3 = vld [vmem:[%s207_s0 + $0xe] sm:$0x1]   ;;  %v104_v4 = vld [vmem:[%s207_s0 + $0xc] sm:$0x1]   ;;  %s134_s19 = smov 112  }
   0x3   :  { %31 = vrot.lane.b32.xlu2 %v105_v2, %s133_s14  ;;  %s135_s20 = smov 96   ;;  %v106_v5 = vld [vmem:[%s207_s0 + $0xa] sm:$0x1]   ;;  %s136_s23 = smov 80   ;;  %v107_v6 = vld [vmem:[%s207_s0 + $0x9] sm:$0x1]  }
   0x4   :  { %v108_v7 = vld [vmem:[%s207_s0 + $0x8] sm:$0x1]   ;;  %s137_s28 = smov 72   ;;  %s138_s29 = smov 64   ;;  %v109_v8 = vld [vmem:[%s207_s0 + $0x7] sm:$0x1]  }
   0x5   :  { %s139_s3 = smov 56   ;;  %v110_v9 = vld [vmem:[%s207_s0 + $0x6] sm:$0x1]   ;;  %v111_v10 = vld [vmem:[%s207_s0 + $0x5] sm:$0x1]   ;;  %s140_s8 = smov 48  }
   0x6   :  { %s141_s9 = smov 40   ;;  %v112_v11 = vld [vmem:[%s207_s0 + $0x4] sm:$0x1]   ;;  %s142_s12 = smov 32   ;;  %v113_v12 = vld [vmem:[%s207_s0 + $0x3] sm:$0x1]  }
   0x7   :  { %v114_v13 = vld [vmem:[%s207_s0 + $0x2] sm:$0x1]   ;;  %s143_s17 = smov 24   ;;  %s144_s18 = smov 16   ;;  %v115_v14 = vld [vmem:[%s207_s0 + $0x1] sm:$0x1]  }
   0x8   :  { %s145_s21 = smov 8   ;;  %v2_v15 = vld [vmem:[%s207_s0] sm:$0x1]   ;;  %vm27_vm4 = vcmask 851712   ;;  %vm33_vm5 = vcmask 786112   ;;  %vm39_vm6 = vcmask 720512  }
   0x9   :  { %4 = vst.msk [vmem:[#allocation0] sm:$0x1] %vm3_vm0, %v2_v15   ;;  %vm45_vm7 = vcmask 654912   ;;  %vm51_vm8 = vcmask 589312   ;;  %vm57_vm9 = vcmask 523712   ;;  %vm63_vm10 = vcmask 458112  }
   0xa   :  { %13 = vrot.lane.b32.xlu0 %v102_v3, %s134_s19  ;;  %25 = vrot.lane.b32.xlu1 %v104_v4, %s135_s20  ;;  %vm69_vm11 = vcmask 392512   ;;  %vm75_vm12 = vcmask 326912   ;;  %vm81_vm13 = vcmask 261312   ;;  %vm87_vm14 = vcmask 195712  }
   0xb   :  { %37 = vrot.lane.b32.xlu2 %v106_v5, %s136_s23  ;;  %vm93_vm15 = vcmask 130112  }
  0x12   :  { %43 = vrot.lane.b32.xlu0 %v107_v6, %s137_s28  ;;  %49 = vrot.lane.b32.xlu1 %v108_v7, %s138_s29 }
  0x13   :  { %55 = vrot.lane.b32.xlu2 %v109_v8, %s139_s3 }
  0x1a   :  { %61 = vrot.lane.b32.xlu0 %v110_v9, %s140_s8  ;;  %67 = vrot.lane.b32.xlu1 %v111_v10, %s141_s9 }
  0x1b   :  { %73 = vrot.lane.b32.xlu2 %v112_v11, %s142_s12 }
  0x22   :  { %79 = vrot.lane.b32.xlu0 %v113_v12, %s143_s17  ;;  %85 = vrot.lane.b32.xlu1 %v114_v13, %s144_s18 }
  0x23   :  { %91 = vrot.lane.b32.xlu2 %v115_v14, %s145_s21 }
  0x5d   :  { %v32_v16 = vpop.permute.xlu2 %31  }
  0x65   :  { %v38_v17 = vpop.permute.xlu2 %37  }
  0x6d   :  { %v56_v18 = vpop.permute.xlu2 %55  }
  0x74   :  { %v8_v19 = vpop.permute.xlu0 %7   ;;  %v20_v20 = vpop.permute.xlu1 %19  }
  0x75   :  { %10 = vst.msk [vmem:[#allocation0] sm:$0x1] %vm9_vm1, %v8_v19   ;;  %v74_v21 = vpop.permute.xlu2 %73  }
  0x7c   :  { %v14_v22 = vpop.permute.xlu0 %13   ;;  %v26_v23 = vpop.permute.xlu1 %25  }
  0x7d   :  { %16 = vst.msk [vmem:[#allocation0] sm:$0x1] %vm15_vm2, %v14_v22   ;;  %v92_v24 = vpop.permute.xlu2 %91  }
  0x7e   :  { %22 = vst.msk [vmem:[#allocation0] sm:$0x1] %vm21_vm3, %v20_v20  }
  0x7f   :  { %28 = vst.msk [vmem:[#allocation0] sm:$0x1] %vm27_vm4, %v26_v23  }
  0x80   :  { %34 = vst.msk [vmem:[#allocation0] sm:$0x1] %vm33_vm5, %v32_v16  }
  0x81   :  { %40 = vst.msk [vmem:[#allocation0] sm:$0x1] %vm39_vm6, %v38_v17  }
  0x84   :  { %v44_v25 = vpop.permute.xlu0 %43   ;;  %v50_v26 = vpop.permute.xlu1 %49  }
  0x85   :  { %46 = vst.msk [vmem:[#allocation0] sm:$0x1] %vm45_vm7, %v44_v25  }
  0x86   :  { %52 = vst.msk [vmem:[#allocation0] sm:$0x1] %vm51_vm8, %v50_v26  }
  0x87   :  { %58 = vst.msk [vmem:[#allocation0] sm:$0x1] %vm57_vm9, %v56_v18  }
  0x8c   :  { %v62_v27 = vpop.permute.xlu0 %61   ;;  %v68_v28 = vpop.permute.xlu1 %67  }
  0x8d   :  { %64 = vst.msk [vmem:[#allocation0] sm:$0x1] %vm63_vm10, %v62_v27  }
  0x8e   :  { %70 = vst.msk [vmem:[#allocation0] sm:$0x1] %vm69_vm11, %v68_v28  }
  0x8f   :  { %76 = vst.msk [vmem:[#allocation0] sm:$0x1] %vm75_vm12, %v74_v21  }
  0x94   :  { %v80_v29 = vpop.permute.xlu0 %79   ;;  %v86_v30 = vpop.permute.xlu1 %85  }
  0x95   :  { %82 = vst.msk [vmem:[#allocation0] sm:$0x1] %vm81_vm13, %v80_v29  }
  0x96   :  { %88 = vst.msk [vmem:[#allocation0] sm:$0x1] %vm87_vm14, %v86_v30  }
  0x97   :  { %94 = vst.msk [vmem:[#allocation0] sm:$0x1] %vm93_vm15, %v92_v24  }
  0x9e   :  { %v97_v31 = vld [vmem:[#allocation0] sm:$0x1] }
  0x9f   :  { %100 = vst [vmem:[%s208_s1] sm:$0x1] %v97_v31 }

// kernel: encoding_block_forward.5
= control target key start
LH: loop header
LB: loop body
LE: loop exit
PB: predicated region body
PF: predicated region fallthrough
CT: control target
= control target key end

     0   :  { %s98_s0 = inlined_call_operand.vmem [shape: f32[32,128], index: 0, kind: input, shape index: {}]   ;;  %s99_s1 = inlined_call_operand.vmem [shape: f32[1,128], index: 1, kind: input, shape index: {}]   ;;  %s100_s2 = inlined_call_operand.vmem [shape: f32[1,128], index: 2, kind: input, shape index: {}]   ;;  %s101_s3 = inlined_call_operand.vmem [shape: f32[32,128], index: 3, kind: output, shape index: {}]  }
   0x1   :  { %v14_v0 = vld [vmem:[%s98_s0] sm:$0xff]  ;;  %v15_v3 = vld [vmem:[%s98_s0 + $0x8] sm:$0xff]  ;;  %v16_v6 = vld [vmem:[%s98_s0 + $0x10] sm:$0xff] }
   0x2   :  { %v46_v1 = vld [vmem:[%s99_s1] ss:$0 sm:$0xff]  ;;  %v17_v7 = vld [vmem:[%s98_s0 + $0x18] sm:$0xff] }
   0x3   :  { %v47_v2 = vld [vmem:[%s100_s2] ss:$0 sm:$0xff]  ;;  %v22_v4 = vmul.f32 %v46_v1, %v14_v0  ;;  %v23_v5 = vmul.f32 %v46_v1, %v15_v3  ;;  %v24_v8 = vmul.f32 %v46_v1, %v16_v6  ;;  %v25_v9 = vmul.f32 %v46_v1, %v17_v7 }
   0x5   :  { %v30_v10 = vadd.f32 %v47_v2, %v22_v4  ;;  %v31_v11 = vadd.f32 %v47_v2, %v23_v5  ;;  %v32_v12 = vadd.f32 %v47_v2, %v24_v8  ;;  %v33_v13 = vadd.f32 %v47_v2, %v25_v9 }
   0x7   :  { %v34_v14 = vmax.f32 %v30_v10, 0.0  ;;  %v35_v15 = vmax.f32 %v31_v11, 0.0  ;;  %v36_v16 = vmax.f32 %v32_v12, 0.0  ;;  %v37_v17 = vmax.f32 %v33_v13, 0.0 }
   0x9   :  { %38 = vst [vmem:[%s101_s3] sm:$0xff] %v34_v14 }
   0xa   :  { %39 = vst [vmem:[%s101_s3 + $0x8] sm:$0xff] %v35_v15 }
   0xb   :  { %40 = vst [vmem:[%s101_s3 + $0x10] sm:$0xff] %v36_v16 }
   0xc   :  { %41 = vst [vmem:[%s101_s3 + $0x18] sm:$0xff] %v37_v17 }

// kernel: encoding_block_forward.3
= control target key start
LH: loop header
LB: loop body
LE: loop exit
PB: predicated region body
PF: predicated region fallthrough
CT: control target
= control target key end

     0   :  { %s1866_s21 = smov 0   ;;  %s2751_s0 = inlined_call_operand.vmem [shape: f32[2,16,16,4], index: 0, kind: input, shape index: {}]   ;;  %s2752_s1 = inlined_call_operand.vmem [shape: f32[1,4], index: 1, kind: input, shape index: {}]   ;;  %s2753_s2 = inlined_call_operand.vmem [shape: f32[1,4], index: 2, kind: input, shape index: {}]   ;;  %s2754_s3 = inlined_call_operand.vmem [shape: f32[3,12,8], index: 3, kind: input, shape index: {}]   ;;  %s2755_s4 = inlined_call_operand.vmem [shape: f32[2,256,8], index: 4, kind: output, shape index: {0}]   ;;  %s2756_s5 = inlined_call_operand.vmem [shape: f32[2,1,8], index: 5, kind: output, shape index: {1}]   ;;  %s2757_s6 = inlined_call_operand.vmem [shape: f32[2,1,8], index: 6, kind: output, shape index: {2}]  }
   0x1 LB: > { %s1687_s1 = sadd.s32 4294967295, %s1826_s21   ;;  %p1691_p0 = scmp.ge.s32.totalorder %s1826_s21, 1  ;;  %s1826_s21 = sphi %s1866_s21, %s17_s21  }
   0x2   : > { %p217_p1 = scmp.lt.s32.totalorder %s1826_s21, 3 }
   0x4   : > { %p218_p2 = pnand %p1691_p0, %p217_p1 }
   0x5   : > { %p253_p3 = scmp.lt.s32.totalorder (!%p218_p2), %s1687_s1, 1  ;;  %s1829_s25 = smov (!%p218_p2), 4  }
   0x6   : > { %221 = sbr.rel (%p218_p2) target bundleno = 636 (0x27c), region = 36  ;;  %s1830_s26 = smov (!%p218_p2), 8  }
   0xb   : > { %vm301_vm0 = vcmask 31744   ;;  %v1828_v0 = vmov 0.0   ;;  %s2759_s1 = smov (!%p253_p3, %s1687_s1), 1  ;;  %vm312_vm1 = vcmask 24576   ;;  %v1697_v60 = vld [vmem:[%s2754_s3 + $0x18] sm:$0xf] }
   0xc   : > { %303 = vst.msk [vmem:[#allocation2 + $0x8] sm:$0xff] %vm301_vm0, %v1828_v0  ;;  %s1801_s2 = sshll.u32 %s2759_s1, 8  ;;  %vm948_vm2 = vcmask 1043456   ;;  %v847_v61 = vld [vmem:[%s2754_s3 + $0x8] sm:$0xf]  ;;  %v1696_v63 = vld [vmem:[%s2754_s3 + $0x10] sm:$0xff]  ;;  %s265_s20 = scalar_lea.vmem %s2756_s5, %s2759_s1 }
   0xd   : > { %302 = vst.msk [vmem:[#allocation2] sm:$0xff] %vm301_vm0, %v1828_v0  ;;  %s1892_s24 = scalar_lea.vmem %s2751_s0, %s1801_s2  ;;  %1698 = vmatpush.msk.msra.mxu0 %vm948_vm2, %v1697_v60  ;;  %1731 = vmatpush.msk.msra.mxu1 %vm948_vm2, %v847_v61  ;;  %v2056_v62 = vld [vmem:[%s2754_s3 + $0x28] sm:$0xf]  ;;  %vm809_vm3 = vcmask 64512   ;;  %vm851_vm4 = vcmask 97280   ;;  %s2272_s17 = scalar_lea.vmem %s2755_s4, %s1801_s2  ;;  %vm1478_vm5 = vcmask 57344  }
   0xe   : > { %304 = vst.msk [vmem:[#allocation2 + $0x10] sm:$0xff] %vm301_vm0, %v1828_v0  ;;  %v271_v1 = vld [vmem:[%s1892_s24 + $0x10] sm:$0xff]  ;;  %v269_v2 = vld [vmem:[%s1892_s24] sm:$0xff]  ;;  %v272_v4 = vld [vmem:[%s1892_s24 + $0x18] sm:$0xff]  ;;  %1766 = vmatpush.msk.msra.mxu2 %vm948_vm2, %v2056_v62  ;;  %1803 = vmatpush.msk.msra.mxu3 %vm948_vm2, %v1697_v60  ;;  %s268_s23 = scalar_lea.vmem %s2757_s6, %s2759_s1 }
   0xf   : > { %305 = vst.msk [vmem:[#allocation2 + $0x18] sm:$0xff] %vm301_vm0, %v1828_v0  ;;  %v270_v12 = vld [vmem:[%s1892_s24 + $0x8] sm:$0xff]  ;;  %v273_v13 = vld [vmem:[%s1892_s24 + $0x20] sm:$0xff]  ;;  %v295_v17 = vld [vmem:[%s1892_s24 + $0xd0] sm:$0xff]  ;;  %967 = vmatpush.msra.mxu0 %v1696_v63 }
  0x10   : > { %307 = vst.msk [vmem:[#allocation2 + $0x220] sm:$0xff] %vm301_vm0, %v1828_v0  ;;  %v293_v14 = vld [vmem:[%s1892_s24 + $0xc0] sm:$0xff]  ;;  %v294_v15 = vld [vmem:[%s1892_s24 + $0xc8] sm:$0xff]  ;;  %v275_v18 = vld [vmem:[%s1892_s24 + $0x30] sm:$0xff]  ;;  %1804 = vmatpush.msra.mxu3 %v1696_v63 }
  0x11   : > { %308 = vst.msk [vmem:[#allocation2 + $0x228] sm:$0xff] %vm301_vm0, %v1828_v0  ;;  %v274_v16 = vld [vmem:[%s1892_s24 + $0x28] sm:$0xff]  ;;  %v276_v19 = vld [vmem:[%s1892_s24 + $0x38] sm:$0xff]  ;;  %v277_v27 = vld [vmem:[%s1892_s24 + $0x40] sm:$0xff] }
  0x12   : > { %309 = vst.msk [vmem:[#allocation2 + $0x230] sm:$0xff] %vm301_vm0, %v1828_v0  ;;  %v296_v22 = vld [vmem:[%s1892_s24 + $0xd8] sm:$0xff]  ;;  %v278_v31 = vld [vmem:[%s1892_s24 + $0x48] sm:$0xff]  ;;  %v297_v32 = vld [vmem:[%s1892_s24 + $0xe0] sm:$0xff]  ;;  %1805 = vmatpush.msk.msrb.mxu3 %vm948_vm2, %v847_v61 }
  0x13   : > { %v413_v3 = vld [vmem:[#allocation2 + $0x8] sm:$0xff]  ;;  %310 = vst.msk [vmem:[#allocation2 + $0x238] sm:$0xff] %vm301_vm0, %v1828_v0  ;;  %v279_v40 = vld [vmem:[%s1892_s24 + $0x50] sm:$0xff]  ;;  %v300_v45 = vld [vmem:[%s1892_s24 + $0xf8] sm:$0xff] }
  0x14   : > { %521 = vrot.lane.b32.xlu1 %v413_v3, %s1829_s25  ;;  %347 = vst.msk [vmem:[#allocation2 + $0x48] sm:$0xff] %vm301_vm0, %v271_v1  ;;  %v298_v33 = vld [vmem:[%s1892_s24 + $0xe8] sm:$0xff]  ;;  %v299_v41 = vld [vmem:[%s1892_s24 + $0xf0] sm:$0xff]  ;;  %v280_v46 = vld [vmem:[%s1892_s24 + $0x58] sm:$0xff] }
  0x15   : > { %345 = vst.msk [vmem:[#allocation2 + $0x28] sm:$0xff] %vm301_vm0, %v269_v2  ;;  %v449_v5 = vld [vmem:[#allocation2 + $0x9] sm:$0xff]  ;;  %v281_v54 = vld [vmem:[%s1892_s24 + $0x60] sm:$0xff]  ;;  %v292_v59 = vld [vmem:[%s1892_s24 + $0xb8] sm:$0xff] }
  0x16   : > { %348 = vst.msk [vmem:[#allocation2 + $0x50] sm:$0xff] %vm301_vm0, %v272_v4  ;;  %665 = vrot.lane.b32.xlu2 %v449_v5, %s1830_s26  ;;  %v450_v11 = vld [vmem:[#allocation2 + $0x11] sm:$0xff]  ;;  %v282_v55 = vld [vmem:[%s1892_s24 + $0x68] sm:$0xff]  ;;  %v2070_v1 = vld [vmem:[%s2754_s3 + $0x20] sm:$0xff] }
  0x17   : > { %330 = vst.msk [vmem:[#allocation2 + $0x58] sm:$0x1] %vm312_vm1, %v1828_v0  ;;  %v414_v25 = vld [vmem:[#allocation2 + $0x10] sm:$0xff]  ;;  %1214 = vmatpush.msra.mxu2 %v2070_v1  ;;  %v377_v4 = vld [vmem:[#allocation2 + $0x7] sm:$0xff] }
  0x18   : > { %313 = vst.msk [vmem:[#allocation2 + $0x27] sm:$0x1] %vm312_vm1, %v1828_v0  ;;  %v291_v53 = vld [vmem:[%s1892_s24 + $0xb0] sm:$0xff]  ;;  %v289_v61 = vld [vmem:[%s1892_s24 + $0xa0] sm:$0xff] }
  0x19   : > { %314 = vst.msk [vmem:[#allocation2 + $0x47] sm:$0x1] %vm312_vm1, %v1828_v0 }
  0x1a   : > { %315 = vst.msk [vmem:[#allocation2 + $0x67] sm:$0x1] %vm312_vm1, %v1828_v0 }
  0x1b   : > { %v417_v6 = vld [vmem:[#allocation2 + $0x48] sm:$0xff]  ;;  %316 = vst.msk [vmem:[#allocation2 + $0x87] sm:$0x1] %vm312_vm1, %v1828_v0 }
  0x1c   : > { %529 = vrot.lane.b32.xlu0 %v417_v6, %s1829_s25  ;;  %v415_v7 = vld [vmem:[#allocation2 + $0x28] sm:$0xff]  ;;  %317 = vst.msk [vmem:[#allocation2 + $0xa7] sm:$0x1] %vm312_vm1, %v1828_v0 }
  0x1d   : > { %525 = vrot.lane.b32.xlu1 %v415_v7, %s1829_s25  ;;  %318 = vst.msk [vmem:[#allocation2 + $0xc7] sm:$0x1] %vm312_vm1, %v1828_v0  ;;  %v453_v8 = vld [vmem:[#allocation2 + $0x49] sm:$0xff] }
  0x1e   : > { %319 = vst.msk [vmem:[#allocation2 + $0xe7] sm:$0x1] %vm312_vm1, %v1828_v0  ;;  %v454_v9 = vld [vmem:[#allocation2 + $0x51] sm:$0xff] }
  0x1f   : > { %320 = vst.msk [vmem:[#allocation2 + $0x107] sm:$0x1] %vm312_vm1, %v1828_v0  ;;  %v418_v10 = vld [vmem:[#allocation2 + $0x50] sm:$0xff] }
  0x20   : > { %321 = vst.msk [vmem:[#allocation2 + $0x127] sm:$0x1] %vm312_vm1, %v1828_v0  ;;  %v283_v7 = vld [vmem:[%s1892_s24 + $0x70] sm:$0xff] }
  0x21   : > { %322 = vst.msk [vmem:[#allocation2 + $0x147] sm:$0x1] %vm312_vm1, %v1828_v0 }
  0x22   : > { %323 = vst.msk [vmem:[#allocation2 + $0x167] sm:$0x1] %vm312_vm1, %v1828_v0 }
  0x23   : > { %324 = vst.msk [vmem:[#allocation2 + $0x187] sm:$0x1] %vm312_vm1, %v1828_v0 }
  0x24   : > { %673 = vrot.lane.b32.xlu0 %v453_v8, %s1830_s26  ;;  %325 = vst.msk [vmem:[#allocation2 + $0x1a7] sm:$0x1] %vm312_vm1, %v1828_v0 }
  0x25   : > { %675 = vrot.lane.b32.xlu1 %v454_v9, %s1830_s26  ;;  %326 = vst.msk [vmem:[#allocation2 + $0x1c7] sm:$0x1] %vm312_vm1, %v1828_v0 }
  0x26   : > { %327 = vst.msk [vmem:[#allocation2 + $0x1e7] sm:$0x1] %vm312_vm1, %v1828_v0 }
  0x27   : > { %328 = vst.msk [vmem:[#allocation2 + $0x207] sm:$0x1] %vm312_vm1, %v1828_v0 }
  0x28   : > { %329 = vst.msk [vmem:[#allocation2 + $0x38] sm:$0x1] %vm312_vm1, %v1828_v0 }
  0x29   : > { %331 = vst.msk [vmem:[#allocation2 + $0x78] sm:$0x1] %vm312_vm1, %v1828_v0 }
  0x2a   : > { %332 = vst.msk [vmem:[#allocation2 + $0x98] sm:$0x1] %vm312_vm1, %v1828_v0 }
  0x2b   : > { %333 = vst.msk [vmem:[#allocation2 + $0xb8] sm:$0x1] %vm312_vm1, %v1828_v0 }
  0x2c   : > { %334 = vst.msk [vmem:[#allocation2 + $0xd8] sm:$0x1] %vm312_vm1, %v1828_v0  ;;  %531 = vrot.lane.b32.xlu0 %v418_v10, %s1829_s25 }
  0x2d   : > { %335 = vst.msk [vmem:[#allocation2 + $0xf8] sm:$0x1] %vm312_vm1, %v1828_v0  ;;  %667 = vrot.lane.b32.xlu1 %v450_v11, %s1830_s26 }
  0x2e   : > { %336 = vst.msk [vmem:[#allocation2 + $0x118] sm:$0x1] %vm312_vm1, %v1828_v0 }
  0x2f   : > { %337 = vst.msk [vmem:[#allocation2 + $0x138] sm:$0x1] %vm312_vm1, %v1828_v0 }
  0x30   : > { %338 = vst.msk [vmem:[#allocation2 + $0x158] sm:$0x1] %vm312_vm1, %v1828_v0 }
  0x31   : > { %339 = vst.msk [vmem:[#allocation2 + $0x178] sm:$0x1] %vm312_vm1, %v1828_v0 }
  0x32   : > { %340 = vst.msk [vmem:[#allocation2 + $0x198] sm:$0x1] %vm312_vm1, %v1828_v0 }
  0x33   : > { %341 = vst.msk [vmem:[#allocation2 + $0x1b8] sm:$0x1] %vm312_vm1, %v1828_v0 }
  0x34   : > { %342 = vst.msk [vmem:[#allocation2 + $0x1d8] sm:$0x1] %vm312_vm1, %v1828_v0 }
  0x35   : > { %343 = vst.msk [vmem:[#allocation2 + $0x1f8] sm:$0x1] %vm312_vm1, %v1828_v0 }
  0x36   : > { %344 = vst.msk [vmem:[#allocation2 + $0x218] sm:$0x1] %vm312_vm1, %v1828_v0  ;;  %v846_v0 = vld [vmem:[%s2754_s3] sm:$0xff] }
  0x37   : > { %346 = vst.msk [vmem:[#allocation2 + $0x30] sm:$0xff] %vm301_vm0, %v270_v12  ;;  %1089 = vmatpush.msra.mxu1 %v846_v0  ;;  %1806 = vmatpush.msrb.mxu3 %v846_v0 }
  0x38   : > { %349 = vst.msk [vmem:[#allocation2 + $0x68] sm:$0xff] %vm301_vm0, %v273_v13 }
  0x39   : > { %369 = vst.msk [vmem:[#allocation2 + $0x1a8] sm:$0xff] %vm301_vm0, %v293_v14 }
  0x3a   : > { %370 = vst.msk [vmem:[#allocation2 + $0x1b0] sm:$0xff] %vm301_vm0, %v294_v15  ;;  %v284_v15 = vld [vmem:[%s1892_s24 + $0x78] sm:$0xff] }
  0x3b   : > { %350 = vst.msk [vmem:[#allocation2 + $0x70] sm:$0xff] %vm301_vm0, %v274_v16 }
  0x3c   : > { %371 = vst.msk [vmem:[#allocation2 + $0x1c8] sm:$0xff] %vm301_vm0, %v295_v17  ;;  %v381_v17 = vld [vmem:[#allocation2 + $0x47] sm:$0xff] }
  0x3d   : > { %351 = vst.msk [vmem:[#allocation2 + $0x88] sm:$0xff] %vm301_vm0, %v275_v18 }
  0x3e   : > { %v416_v20 = vld [vmem:[#allocation2 + $0x30] sm:$0xff]  ;;  %352 = vst.msk [vmem:[#allocation2 + $0x90] sm:$0xff] %vm301_vm0, %v276_v19  ;;  %v379_v19 = vld [vmem:[#allocation2 + $0x27] sm:$0xff] }
  0x3f   : > { %v451_v21 = vld [vmem:[#allocation2 + $0x29] sm:$0xff]  ;;  %527 = vrot.lane.b32.xlu0 %v416_v20, %s1829_s25  ;;  %372 = vst.msk [vmem:[#allocation2 + $0x1d0] sm:$0xff] %vm301_vm0, %v296_v22  ;;  %v452_v29 = vld [vmem:[#allocation2 + $0x31] sm:$0xff] }
  0x40   : > { %669 = vrot.lane.b32.xlu2 %v451_v21, %s1830_s26  ;;  %v439_v23 = vld [vmem:[#allocation2 + $0x1a8] sm:$0xff]  ;;  %353 = vst.msk [vmem:[#allocation2 + $0xa8] sm:$0xff] %vm301_vm0, %v277_v27  ;;  %v285_v27 = vld [vmem:[%s1892_s24 + $0x80] sm:$0xff] }
  0x41   : > { %573 = vrot.lane.b32.xlu1 %v439_v23, %s1829_s25  ;;  %v419_v24 = vld [vmem:[#allocation2 + $0x68] sm:$0xff]  ;;  %v476_v30 = vld [vmem:[#allocation2 + $0x1b1] sm:$0xff]  ;;  %354 = vst.msk [vmem:[#allocation2 + $0xb0] sm:$0xff] %vm301_vm0, %v278_v31 }
  0x42   : > { %v420_v26 = vld [vmem:[#allocation2 + $0x70] sm:$0xff]  ;;  %373 = vst.msk [vmem:[#allocation2 + $0x1e8] sm:$0xff] %vm301_vm0, %v297_v32  ;;  %v383_v63 = vld [vmem:[#allocation2 + $0x67] sm:$0xff] }
  0x43   : > { %v475_v28 = vld [vmem:[#allocation2 + $0x1a9] sm:$0xff]  ;;  %374 = vst.msk [vmem:[#allocation2 + $0x1f0] sm:$0xff] %vm301_vm0, %v298_v33  ;;  %v456_v34 = vld [vmem:[#allocation2 + $0x71] sm:$0xff] }
  0x44   : > { %v455_v35 = vld [vmem:[#allocation2 + $0x69] sm:$0xff]  ;;  %355 = vst.msk [vmem:[#allocation2 + $0xc8] sm:$0xff] %vm301_vm0, %v279_v40 }
  0x45   : > { %v457_v36 = vld [vmem:[#allocation2 + $0x89] sm:$0xff]  ;;  %375 = vst.msk [vmem:[#allocation2 + $0x208] sm:$0xff] %vm301_vm0, %v299_v41  ;;  %v458_v51 = vld [vmem:[#allocation2 + $0x91] sm:$0xff] }
  0x46   : > { %v441_v37 = vld [vmem:[#allocation2 + $0x1c8] sm:$0xff]  ;;  %v440_v38 = vld [vmem:[#allocation2 + $0x1b0] sm:$0xff]  ;;  %376 = vst.msk [vmem:[#allocation2 + $0x210] sm:$0xff] %vm301_vm0, %v300_v45 }
  0x47   : > { %533 = vrot.lane.b32.xlu0 %v419_v24, %s1829_s25  ;;  %v442_v39 = vld [vmem:[#allocation2 + $0x1d0] sm:$0xff]  ;;  %v421_v43 = vld [vmem:[#allocation2 + $0x88] sm:$0xff]  ;;  %356 = vst.msk [vmem:[#allocation2 + $0xd0] sm:$0xff] %vm301_vm0, %v280_v46 }
  0x48   : > { %523 = vrot.lane.b32.xlu2 %v414_v25, %s1829_s25  ;;  %v422_v42 = vld [vmem:[#allocation2 + $0x90] sm:$0xff]  ;;  %v423_v44 = vld [vmem:[#allocation2 + $0xa8] sm:$0xff]  ;;  %367 = vst.msk [vmem:[#allocation2 + $0x188] sm:$0xff] %vm301_vm0, %v291_v53 }
  0x49   : > { %535 = vrot.lane.b32.xlu1 %v420_v26, %s1829_s25  ;;  %v478_v47 = vld [vmem:[#allocation2 + $0x1d1] sm:$0xff]  ;;  %v477_v48 = vld [vmem:[#allocation2 + $0x1c9] sm:$0xff]  ;;  %357 = vst.msk [vmem:[#allocation2 + $0xe8] sm:$0xff] %vm301_vm0, %v281_v54 }
  0x4a   : > { %v479_v49 = vld [vmem:[#allocation2 + $0x1e9] sm:$0xff]  ;;  %v460_v52 = vld [vmem:[#allocation2 + $0xb1] sm:$0xff]  ;;  %358 = vst.msk [vmem:[#allocation2 + $0xf0] sm:$0xff] %vm301_vm0, %v282_v55 }
  0x4b   : > { %v459_v50 = vld [vmem:[#allocation2 + $0xa9] sm:$0xff]  ;;  %368 = vst.msk [vmem:[#allocation2 + $0x190] sm:$0xff] %vm301_vm0, %v292_v59  ;;  %v480_v12 = vld [vmem:[#allocation2 + $0x1f1] sm:$0xff] }
  0x4c   : > { %v444_v56 = vld [vmem:[#allocation2 + $0x1f0] sm:$0xff]  ;;  %v443_v57 = vld [vmem:[#allocation2 + $0x1e8] sm:$0xff]  ;;  %359 = vst.msk [vmem:[#allocation2 + $0x108] sm:$0xff] %vm301_vm0, %v283_v7 }
  0x4d   : > { %v445_v58 = vld [vmem:[#allocation2 + $0x208] sm:$0xff]  ;;  %v424_v3 = vld [vmem:[#allocation2 + $0xb0] sm:$0xff]  ;;  %360 = vst.msk [vmem:[#allocation2 + $0x110] sm:$0xff] %vm301_vm0, %v284_v15 }
  0x4e   : > { %v425_v2 = vld [vmem:[#allocation2 + $0xc8] sm:$0xff]  ;;  %v426_v5 = vld [vmem:[#allocation2 + $0xd0] sm:$0xff]  ;;  %361 = vst.msk [vmem:[#allocation2 + $0x128] sm:$0xff] %vm301_vm0, %v285_v27 }
  0x4f   : > { %717 = vrot.lane.b32.xlu0 %v475_v28, %s1830_s26  ;;  %v481_v11 = vld [vmem:[#allocation2 + $0x209] sm:$0xff]  ;;  %v482_v13 = vld [vmem:[#allocation2 + $0x211] sm:$0xff]  ;;  %365 = vst.msk [vmem:[#allocation2 + $0x168] sm:$0xff] %vm301_vm0, %v289_v61 }
  0x50   : > { %671 = vrot.lane.b32.xlu2 %v452_v29, %s1830_s26  ;;  %v462_v18 = vld [vmem:[#allocation2 + $0xd1] sm:$0xff]  ;;  %v461_v20 = vld [vmem:[#allocation2 + $0xc9] sm:$0xff] }
  0x51   : > { %719 = vrot.lane.b32.xlu1 %v476_v30, %s1830_s26  ;;  %v463_v22 = vld [vmem:[#allocation2 + $0xe9] sm:$0xff]  ;;  %v464_v59 = vld [vmem:[#allocation2 + $0xf1] sm:$0xff] }
  0x52   : > { %v286_v28 = vld [vmem:[%s1892_s24 + $0x88] sm:$0xff]  ;;  %v446_v32 = vld [vmem:[#allocation2 + $0x210] sm:$0xff] }
  0x53   : > { %362 = vst.msk [vmem:[#allocation2 + $0x130] sm:$0xff] %vm301_vm0, %v286_v28  ;;  %v437_v31 = vld [vmem:[#allocation2 + $0x188] sm:$0xff]  ;;  %v287_v46 = vld [vmem:[%s1892_s24 + $0x90] sm:$0xff] }
  0x54   : > { %v382_v33 = vld [vmem:[#allocation2 + $0x4f] sm:$0xff]  ;;  %363 = vst.msk [vmem:[#allocation2 + $0x148] sm:$0xff] %vm301_vm0, %v287_v46 }
  0x55   : > { %v429_v45 = vld [vmem:[#allocation2 + $0x108] sm:$0xff] }
  0x56   : > { %v406_v46 = vld [vmem:[#allocation2 + $0x1cf] sm:$0xff] }
  0x57   : > { %679 = vrot.lane.b32.xlu0 %v456_v34, %s1830_s26  ;;  %v438_v34 = vld [vmem:[#allocation2 + $0x190] sm:$0xff] }
  0x58   : > { %677 = vrot.lane.b32.xlu2 %v455_v35, %s1830_s26 }
  0x59   : > { %681 = vrot.lane.b32.xlu1 %v457_v36, %s1830_s26 }
  0x5a   : > { %v432_v60 = vld [vmem:[#allocation2 + $0x130] sm:$0xff] }
  0x5b   : > { %v467_v7 = vld [vmem:[#allocation2 + $0x129] sm:$0xff]  ;;  %v468_v28 = vld [vmem:[#allocation2 + $0x131] sm:$0xff] }
  0x5f   : > { %577 = vrot.lane.b32.xlu0 %v441_v37, %s1829_s25  ;;  %v378_v37 = vld [vmem:[#allocation2 + $0xf] sm:$0xff] }
  0x60   : > { %575 = vrot.lane.b32.xlu2 %v440_v38, %s1829_s25 }
  0x61   : > { %579 = vrot.lane.b32.xlu1 %v442_v39, %s1829_s25 }
  0x67   : > { %539 = vrot.lane.b32.xlu0 %v422_v42, %s1829_s25 }
  0x68   : > { %537 = vrot.lane.b32.xlu2 %v421_v43, %s1829_s25  ;;  %v428_v43 = vld [vmem:[#allocation2 + $0xf0] sm:$0xff] }
  0x69   : > { %541 = vrot.lane.b32.xlu1 %v423_v44, %s1829_s25  ;;  %v427_v44 = vld [vmem:[#allocation2 + $0xe8] sm:$0xff] }
  0x6f   : > { %723 = vrot.lane.b32.xlu0 %v478_v47, %s1830_s26  ;;  %v288_v47 = vld [vmem:[%s1892_s24 + $0x98] sm:$0xff] }
  0x70   : > { %721 = vrot.lane.b32.xlu2 %v477_v48, %s1830_s26  ;;  %v666_v9 = vpop.permute.xlu2 %665  ;;  %364 = vst.msk [vmem:[#allocation2 + $0x150] sm:$0xff] %vm301_vm0, %v288_v47 }
  0x71   : > { %725 = vrot.lane.b32.xlu1 %v479_v49, %s1830_s26  ;;  %v474_v49 = vld [vmem:[#allocation2 + $0x191] sm:$0xff] }
  0x77   : > { %685 = vrot.lane.b32.xlu0 %v459_v50, %s1830_s26  ;;  %v473_v50 = vld [vmem:[#allocation2 + $0x189] sm:$0xff]  ;;  %v470_v27 = vld [vmem:[#allocation2 + $0x151] sm:$0xff] }
  0x78   : > { %683 = vrot.lane.b32.xlu2 %v458_v51, %s1830_s26  ;;  %v466_v51 = vld [vmem:[#allocation2 + $0x111] sm:$0xff] }
  0x79   : > { %687 = vrot.lane.b32.xlu1 %v460_v52, %s1830_s26  ;;  %v380_v52 = vld [vmem:[#allocation2 + $0x2f] sm:$0xff] }
  0x7f   : > { %583 = vrot.lane.b32.xlu0 %v444_v56, %s1829_s25 }
  0x80   : > { %581 = vrot.lane.b32.xlu2 %v443_v57, %s1829_s25 }
  0x81   : > { %585 = vrot.lane.b32.xlu1 %v445_v58, %s1829_s25  ;;  %v430_v58 = vld [vmem:[#allocation2 + $0x110] sm:$0xff] }
  0x86   : > { %v522_v6 = vpop.permute.xlu1 %521 }
  0x87   : > { %545 = vrot.lane.b32.xlu0 %v425_v2, %s1829_s25  ;;  %v773_v8 = vsel %vm301_vm0, %v377_v4, %v522_v6  ;;  %v403_v6 = vld [vmem:[#allocation2 + $0x1a7] sm:$0xff] }
  0x88   : > { %543 = vrot.lane.b32.xlu2 %v424_v3, %s1829_s25  ;;  %v810_v10 = vsel %vm809_vm3, %v773_v8, %v666_v9  ;;  %v465_v8 = vld [vmem:[#allocation2 + $0x109] sm:$0xff] }
  0x89   : > { %547 = vrot.lane.b32.xlu1 %v426_v5, %s1829_s25  ;;  %1732 = vmatmul.msk.f32.vlgmr.msra.gmra.mxu1 %vm851_vm4, %v810_v10  ;;  %v469_v9 = vld [vmem:[#allocation2 + $0x149] sm:$0xff] }
  0x8a   : > { %v290_v10 = vld [vmem:[%s1892_s24 + $0xa8] sm:$0xff] }
  0x8b   : > { %366 = vst.msk [vmem:[#allocation2 + $0x170] sm:$0xff] %vm301_vm0, %v290_v10  ;;  %v389_v10 = vld [vmem:[#allocation2 + $0xc7] sm:$0xff] }
  0x8e   : > { %v530_v14 = vpop.permute.xlu0 %529 }
  0x8f   : > { %729 = vrot.lane.b32.xlu0 %v481_v11, %s1830_s26  ;;  %v526_v16 = vpop.permute.xlu1 %525  ;;  %v777_v21 = vsel %vm301_vm0, %v381_v17, %v530_v14  ;;  %v404_v14 = vld [vmem:[#allocation2 + $0x1af] sm:$0xff] }
  0x90   : > { %727 = vrot.lane.b32.xlu2 %v480_v12, %s1830_s26  ;;  %v775_v24 = vsel %vm301_vm0, %v379_v19, %v526_v16  ;;  %v384_v17 = vld [vmem:[#allocation2 + $0x6f] sm:$0xff] }
  0x91   : > { %731 = vrot.lane.b32.xlu1 %v482_v13, %s1830_s26  ;;  %v431_v19 = vld [vmem:[#allocation2 + $0x128] sm:$0xff] }
  0x92   : > { %v471_v47 = vld [vmem:[#allocation2 + $0x169] sm:$0xff] }
  0x96   : > { %v674_v23 = vpop.permute.xlu0 %673 }
  0x97   : > { %691 = vrot.lane.b32.xlu0 %v462_v18, %s1830_s26  ;;  %v2094_v25 = vsel %vm809_vm3, %v777_v21, %v674_v23  ;;  %v676_v26 = vpop.permute.xlu1 %675  ;;  %v433_v18 = vld [vmem:[#allocation2 + $0x148] sm:$0xff] }
  0x98   : > { %689 = vrot.lane.b32.xlu2 %v461_v20, %s1830_s26  ;;  %1767 = vmatmul.msk.f32.vlgmr.msra.gmra.mxu2 %vm851_vm4, %v2094_v25  ;;  %v435_v21 = vld [vmem:[#allocation2 + $0x168] sm:$0xff] }
  0x99   : > { %693 = vrot.lane.b32.xlu1 %v463_v22, %s1830_s26 }
  0x9a   : > { %v670_v29 = vpop.permute.xlu2 %669 }
  0x9b   : > { %v812_v30 = vsel %vm809_vm3, %v775_v24, %v670_v29 }
  0x9c   : > { %1699 = vmatmul.msk.f32.vlgmr.msra.gmra.mxu0 %vm851_vm4, %v812_v30 }
  0x9e   : > { %v532_v35 = vpop.permute.xlu0 %531 }
  0x9f   : > { %569 = vrot.lane.b32.xlu0 %v437_v31, %s1829_s25  ;;  %v778_v36 = vsel %vm301_vm0, %v382_v33, %v532_v35  ;;  %v668_v38 = vpop.permute.xlu1 %667  ;;  %v405_v31 = vld [vmem:[#allocation2 + $0x1c7] sm:$0xff] }
  0xa0   : > { %587 = vrot.lane.b32.xlu2 %v446_v32, %s1829_s25  ;;  %v2109_v39 = vsel %vm809_vm3, %v778_v36, %v676_v26 }
  0xa1   : > { %571 = vrot.lane.b32.xlu1 %v438_v34, %s1829_s25  ;;  %1768 = vmatmul.msk.f32.gmra.mxu2 %vm851_vm4, %v2109_v39 }
  0xa2   : > { %v524_v40 = vpop.permute.xlu2 %523 }
  0xa3   : > { %v774_v41 = vsel %vm301_vm0, %v378_v37, %v524_v40  ;;  %v386_v40 = vld [vmem:[#allocation2 + $0x8f] sm:$0xff] }
  0xa4   : > { %v811_v42 = vsel %vm809_vm3, %v774_v41, %v668_v38  ;;  %v436_v38 = vld [vmem:[#allocation2 + $0x170] sm:$0xff] }
  0xa5   : > { %1733 = vmatmul.msk.f32.gmra.mxu1 %vm851_vm4, %v811_v42 }
  0xa7   : > { %551 = vrot.lane.b32.xlu0 %v428_v43, %s1829_s25 }
  0xa8   : > { %549 = vrot.lane.b32.xlu2 %v427_v44, %s1829_s25 }
  0xa9   : > { %553 = vrot.lane.b32.xlu1 %v429_v45, %s1829_s25 }
  0xaa   : > { %v672_v48 = vpop.permute.xlu2 %671 }
  0xad   : > { %1734 = vmatmul.msk.f32.gmra.mxu1 %vm851_vm4, %v812_v30  ;;  %v472_v30 = vld [vmem:[#allocation2 + $0x171] sm:$0xff] }
  0xaf   : > { %715 = vrot.lane.b32.xlu0 %v474_v49, %s1830_s26 }
  0xb0   : > { %713 = vrot.lane.b32.xlu2 %v473_v50, %s1830_s26 }
  0xb1   : > { %v528_v53 = vpop.permute.xlu0 %527  ;;  %699 = vrot.lane.b32.xlu1 %v466_v51, %s1830_s26  ;;  %v407_v51 = vld [vmem:[#allocation2 + $0x1e7] sm:$0xff] }
  0xb2   : > { %v678_v54 = vpop.permute.xlu2 %677  ;;  %v776_v55 = vsel %vm301_vm0, %v380_v52, %v528_v53 }
  0xb3   : > { %v813_v56 = vsel %vm809_vm3, %v776_v55, %v672_v48  ;;  %v574_v57 = vpop.permute.xlu1 %573 }
  0xb4   : > { %1700 = vmatmul.msk.f32.gmra.mxu0 %vm851_vm4, %v813_v56  ;;  %v799_v11 = vsel %vm301_vm0, %v403_v6, %v574_v57 }
  0xb5   : > { %1735 = vmatmul.msk.f32.gmra.mxu1 %vm851_vm4, %v813_v56 }
  0xb7   : > { %555 = vrot.lane.b32.xlu0 %v430_v58, %s1829_s25 }
  0xb8   : > { %695 = vrot.lane.b32.xlu2 %v464_v59, %s1830_s26 }
  0xb9   : > { %v534_v0 = vpop.permute.xlu0 %533  ;;  %559 = vrot.lane.b32.xlu1 %v432_v60, %s1829_s25  ;;  %v388_v60 = vld [vmem:[#allocation2 + $0xaf] sm:$0xff] }
  0xba   : > { %v576_v2 = vpop.permute.xlu2 %575  ;;  %v779_v3 = vsel %vm301_vm0, %v383_v63, %v534_v0 }
  0xbb   : > { %v816_v4 = vsel %vm809_vm3, %v779_v3, %v678_v54  ;;  %v536_v5 = vpop.permute.xlu1 %535  ;;  %v800_v20 = vsel %vm301_vm0, %v404_v14, %v576_v2  ;;  %v387_v54 = vld [vmem:[#allocation2 + $0xa7] sm:$0xff]  ;;  %v408_v2 = vld [vmem:[#allocation2 + $0x1ef] sm:$0xff] }
  0xbc   : > { %1701 = vmatmul.msk.f32.gmra.mxu0 %vm851_vm4, %v2094_v25  ;;  %1769 = vmatmul.msk.f32.gmra.mxu2 %vm851_vm4, %v816_v4  ;;  %v780_v22 = vsel %vm301_vm0, %v384_v17, %v536_v5  ;;  %v409_v17 = vld [vmem:[#allocation2 + $0x207] sm:$0xff] }
  0xbd   : > { %1736 = vmatmul.msk.f32.gmra.mxu1 %vm851_vm4, %v2094_v25 }
  0xbf   : > { %701 = vrot.lane.b32.xlu0 %v467_v7, %s1830_s26 }
  0xc0   : > { %697 = vrot.lane.b32.xlu2 %v465_v8, %s1830_s26 }
  0xc1   : > { %v718_v12 = vpop.permute.xlu0 %717  ;;  %705 = vrot.lane.b32.xlu1 %v469_v9, %s1830_s26  ;;  %v483_v9 = vld [vmem:[#allocation2 + $0x229] sm:$0xff] }
  0xc2   : > { %v538_v13 = vpop.permute.xlu2 %537  ;;  %v2151_v15 = vsel %vm809_vm3, %v799_v11, %v718_v12 }
  0xc3   : > { %1723 = vmatmul.msk.f32.vlgmr.msra.gmra.mxu3 %vm851_vm4, %v2151_v15  ;;  %v720_v16 = vpop.permute.xlu1 %719 }
  0xc4   : > { %1702 = vmatmul.msk.f32.gmra.mxu0 %vm851_vm4, %v2109_v39  ;;  %1807 = vmatpush.msk.msra.mxu3 %vm948_vm2, %v2056_v62  ;;  %v2167_v23 = vsel %vm809_vm3, %v800_v20, %v720_v16  ;;  %v385_v62 = vld [vmem:[#allocation2 + $0x87] sm:$0xff] }
  0xc5   : > { %1737 = vmatmul.msk.f32.gmra.mxu1 %vm851_vm4, %v2109_v39  ;;  %v781_v29 = vsel %vm301_vm0, %v385_v62, %v538_v13  ;;  %v434_v39 = vld [vmem:[#allocation2 + $0x150] sm:$0xff] }
  0xc6   : > { %1808 = vmatpush.msra.mxu3 %v2070_v1  ;;  %v390_v62 = vld [vmem:[#allocation2 + $0xcf] sm:$0xff] }
  0xc7   : > { %561 = vrot.lane.b32.xlu0 %v433_v18, %s1829_s25  ;;  %v448_v18 = vld [vmem:[#allocation2 + $0x230] sm:$0xff] }
  0xc8   : > { %557 = vrot.lane.b32.xlu2 %v431_v19, %s1829_s25 }
  0xc9   : > { %v680_v24 = vpop.permute.xlu0 %679  ;;  %565 = vrot.lane.b32.xlu1 %v435_v21, %s1829_s25 }
  0xca   : > { %v722_v25 = vpop.permute.xlu2 %721  ;;  %v817_v26 = vsel %vm809_vm3, %v780_v22, %v680_v24  ;;  %v410_v24 = vld [vmem:[#allocation2 + $0x20f] sm:$0xff] }
  0xcb   : > { %1770 = vmatmul.msk.f32.gmra.mxu2 %vm851_vm4, %v817_v26  ;;  %1724 = vmatmul.msk.f32.gmra.mxu3 %vm851_vm4, %v2167_v23  ;;  %v682_v1 = vpop.permute.xlu1 %681 }
  0xcc   : > { %1703 = vmatmul.msk.f32.gmra.mxu0 %vm851_vm4, %v816_v4  ;;  %v818_v32 = vsel %vm809_vm3, %v781_v29, %v682_v1  ;;  %v391_v29 = vld [vmem:[#allocation2 + $0xe7] sm:$0xff] }
  0xcd   : > { %1738 = vmatmul.msk.f32.gmra.mxu1 %vm851_vm4, %v816_v4 }
  0xcf   : > { %707 = vrot.lane.b32.xlu0 %v470_v27, %s1830_s26 }
  0xd0   : > { %703 = vrot.lane.b32.xlu2 %v468_v28, %s1830_s26 }
  0xd1   : > { %v578_v33 = vpop.permute.xlu0 %577  ;;  %711 = vrot.lane.b32.xlu1 %v472_v30, %s1830_s26 }
  0xd2   : > { %v684_v34 = vpop.permute.xlu2 %683  ;;  %v801_v35 = vsel %vm301_vm0, %v405_v31, %v578_v33  ;;  %v447_v33 = vld [vmem:[#allocation2 + $0x228] sm:$0xff] }
  0xd3   : > { %1771 = vmatmul.msk.f32.gmra.mxu2 %vm851_vm4, %v818_v32  ;;  %v2184_v36 = vsel %vm809_vm3, %v801_v35, %v722_v25  ;;  %v580_v37 = vpop.permute.xlu1 %579  ;;  %v401_v35 = vld [vmem:[#allocation2 + $0x187] sm:$0xff] }
  0xd4   : > { %1704 = vmatmul.msk.f32.gmra.mxu0 %vm851_vm4, %v817_v26  ;;  %1725 = vmatmul.msk.f32.gmra.mxu3 %vm851_vm4, %v2184_v36  ;;  %v802_v48 = vsel %vm301_vm0, %v406_v46, %v580_v37 }
  0xd5   : > { %1739 = vmatmul.msk.f32.gmra.mxu1 %vm851_vm4, %v817_v26 }
  0xd7   : > { %567 = vrot.lane.b32.xlu0 %v436_v38, %s1829_s25 }
  0xd8   : > { %563 = vrot.lane.b32.xlu2 %v434_v39, %s1829_s25 }
  0xd9   : > { %v540_v41 = vpop.permute.xlu0 %539  ;;  %591 = vrot.lane.b32.xlu1 %v448_v18, %s1829_s25 }
  0xda   : > { %v582_v42 = vpop.permute.xlu2 %581  ;;  %v782_v43 = vsel %vm301_vm0, %v386_v40, %v540_v41 }
  0xdb   : > { %v819_v44 = vsel %vm809_vm3, %v782_v43, %v684_v34  ;;  %v542_v45 = vpop.permute.xlu1 %541  ;;  %v803_v55 = vsel %vm301_vm0, %v407_v51, %v582_v42  ;;  %v484_v43 = vld [vmem:[#allocation2 + $0x231] sm:$0xff]  ;;  %v393_v51 = vld [vmem:[#allocation2 + $0x107] sm:$0xff] }
  0xdc   : > { %1705 = vmatmul.msk.f32.gmra.mxu0 %vm851_vm4, %v818_v32  ;;  %1772 = vmatmul.msk.f32.gmra.mxu2 %vm851_vm4, %v819_v44  ;;  %v783_v56 = vsel %vm301_vm0, %v387_v54, %v542_v45 }
  0xdd   : > { %1740 = vmatmul.msk.f32.gmra.mxu1 %vm851_vm4, %v818_v32 }
  0xdf   : > { %733 = vrot.lane.b32.xlu0 %v483_v9, %s1830_s26  ;;  %v395_v9 = vld [vmem:[#allocation2 + $0x127] sm:$0xff] }
  0xe0   : > { %709 = vrot.lane.b32.xlu2 %v471_v47, %s1830_s26 }
  0xe1   : > { %v724_v49 = vpop.permute.xlu0 %723 }
  0xe2   : > { %v544_v50 = vpop.permute.xlu2 %543  ;;  %v2200_v52 = vsel %vm809_vm3, %v802_v48, %v724_v49 }
  0xe3   : > { %1726 = vmatmul.msk.f32.gmra.mxu3 %vm851_vm4, %v2200_v52  ;;  %v726_v53 = vpop.permute.xlu1 %725  ;;  %v784_v0 = vsel %vm301_vm0, %v388_v60, %v544_v50 }
  0xe4   : > { %1706 = vmatmul.msk.f32.gmra.mxu0 %vm851_vm4, %v819_v44  ;;  %v2209_v57 = vsel %vm809_vm3, %v803_v55, %v726_v53  ;;  %v402_v55 = vld [vmem:[#allocation2 + $0x18f] sm:$0xff] }
  0xe5   : > { %1741 = vmatmul.msk.f32.gmra.mxu1 %vm851_vm4, %v819_v44  ;;  %v392_v44 = vld [vmem:[#allocation2 + $0xef] sm:$0xff] }
  0xe8   : > { %589 = vrot.lane.b32.xlu2 %v447_v33, %s1829_s25 }
  0xe9   : > { %v686_v58 = vpop.permute.xlu0 %685 }
  0xea   : > { %v728_v59 = vpop.permute.xlu2 %727  ;;  %v820_v61 = vsel %vm809_vm3, %v783_v56, %v686_v58 }
  0xeb   : > { %1773 = vmatmul.msk.f32.gmra.mxu2 %vm851_vm4, %v820_v61  ;;  %1727 = vmatmul.msk.f32.gmra.mxu3 %vm851_vm4, %v2209_v57  ;;  %v688_v63 = vpop.permute.xlu1 %687 }
  0xec   : > { %1707 = vmatmul.msk.f32.gmra.mxu0 %vm851_vm4, %v820_v61  ;;  %v821_v3 = vsel %vm809_vm3, %v784_v0, %v688_v63 }
  0xed   : > { %1742 = vmatmul.msk.f32.gmra.mxu1 %vm851_vm4, %v820_v61 }
  0xf0   : > { %735 = vrot.lane.b32.xlu2 %v484_v43, %s1830_s26 }
  0xf1   : > { %v584_v4 = vpop.permute.xlu0 %583 }
  0xf2   : > { %v690_v5 = vpop.permute.xlu2 %689  ;;  %v804_v6 = vsel %vm301_vm0, %v408_v2, %v584_v4 }
  0xf3   : > { %1774 = vmatmul.msk.f32.gmra.mxu2 %vm851_vm4, %v821_v3  ;;  %v2222_v7 = vsel %vm809_vm3, %v804_v6, %v728_v59  ;;  %v586_v8 = vpop.permute.xlu1 %585 }
  0xf4   : > { %1708 = vmatmul.msk.f32.gmra.mxu0 %vm851_vm4, %v821_v3  ;;  %1728 = vmatmul.msk.f32.gmra.mxu3 %vm851_vm4, %v2222_v7  ;;  %v805_v19 = vsel %vm301_vm0, %v409_v17, %v586_v8 }
  0xf5   : > { %1743 = vmatmul.msk.f32.gmra.mxu1 %vm851_vm4, %v821_v3  ;;  %v394_v3 = vld [vmem:[#allocation2 + $0x10f] sm:$0xff] }
  0xf9   : > { %v546_v11 = vpop.permute.xlu0 %545 }
  0xfa   : > { %v588_v12 = vpop.permute.xlu2 %587  ;;  %v785_v13 = vsel %vm301_vm0, %v389_v10, %v546_v11 }
  0xfb   : > { %v822_v14 = vsel %vm809_vm3, %v785_v13, %v690_v5  ;;  %v548_v16 = vpop.permute.xlu1 %547  ;;  %v806_v26 = vsel %vm301_vm0, %v410_v24, %v588_v12 }
  0xfc   : > { %1709 = vmatmul.msk.f32.gmra.mxu0 %vm851_vm4, %v822_v14  ;;  %1775 = vmatmul.msk.f32.gmra.mxu2 %vm851_vm4, %v822_v14  ;;  %v786_v1 = vsel %vm301_vm0, %v390_v62, %v548_v16 }
  0xfd   : > { %1744 = vmatmul.msk.f32.gmra.mxu1 %vm851_vm4, %v822_v14 }
 0x101   : > { %v730_v20 = vpop.permute.xlu0 %729 }
 0x102   : > { %v550_v21 = vpop.permute.xlu2 %549  ;;  %v2237_v22 = vsel %vm809_vm3, %v805_v19, %v730_v20  ;;  %v396_v19 = vld [vmem:[#allocation2 + $0x12f] sm:$0xff] }
 0x103   : > { %1729 = vmatmul.msk.f32.gmra.mxu3 %vm851_vm4, %v2237_v22  ;;  %v732_v25 = vpop.permute.xlu1 %731  ;;  %v787_v34 = vsel %vm301_vm0, %v391_v29, %v550_v21 }
 0x104   : > { %v2244_v28 = vsel %vm809_vm3, %v806_v26, %v732_v25 }
 0x106   : > { %v1091_v45 = vpop.f32.mrf.mxu1 }
 0x109   : > { %v692_v27 = vpop.permute.xlu0 %691 }
 0x10a   : > { %v823_v30 = vsel %vm809_vm3, %v786_v1, %v692_v27  ;;  %v714_v31 = vpop.permute.xlu2 %713  ;;  %v397_v27 = vld [vmem:[#allocation2 + $0x147] sm:$0xff] }
 0x10b   : > { %1710 = vmatmul.msk.f32.gmra.mxu0 %vm851_vm4, %v823_v30  ;;  %1776 = vmatmul.msk.f32.gmra.mxu2 %vm851_vm4, %v823_v30  ;;  %v694_v32 = vpop.permute.xlu1 %693 }
 0x10c   : > { %1730 = vmatmul.msk.f32.gmra.mxu3 %vm851_vm4, %v2244_v28  ;;  %1745 = vmatmul.msk.f32.gmra.mxu1 %vm851_vm4, %v823_v30  ;;  %v824_v37 = vsel %vm809_vm3, %v787_v34, %v694_v32 }
 0x111   : > { %v570_v38 = vpop.permute.xlu0 %569 }
 0x112   : > { %v797_v39 = vsel %vm301_vm0, %v401_v35, %v570_v38  ;;  %v696_v42 = vpop.permute.xlu2 %695 }
 0x113   : > { %v2257_v40 = vsel %vm809_vm3, %v797_v39, %v714_v31  ;;  %1711 = vmatmul.msk.f32.gmra.mxu0 %vm851_vm4, %v824_v37  ;;  %1777 = vmatmul.msk.f32.gmra.mxu2 %vm851_vm4, %v824_v37  ;;  %v572_v41 = vpop.permute.xlu1 %571  ;;  %v398_v39 = vld [vmem:[#allocation2 + $0x14f] sm:$0xff] }
 0x114   : > { %1756 = vmatmul.msk.f32.vlgmr.msrb.gmra.mxu3 %vm851_vm4, %v2257_v40  ;;  %1746 = vmatmul.msk.f32.gmra.mxu1 %vm851_vm4, %v824_v37  ;;  %v798_v60 = vsel %vm301_vm0, %v402_v55, %v572_v41 }
 0x119   : > { %v969_v46 = vpop.f32.mrf.mxu0  ;;  %v552_v47 = vpop.permute.xlu0 %551 }
 0x11a   : > { %v788_v48 = vsel %vm301_vm0, %v392_v44, %v552_v47  ;;  %v1092_v49 = vadd.f32 %v1091_v45, %v969_v46  ;;  %v698_v59 = vpop.permute.xlu2 %697  ;;  %v399_v47 = vld [vmem:[#allocation2 + $0x167] sm:$0xff] }
 0x11b   : > { %v825_v50 = vsel %vm809_vm3, %v788_v48, %v696_v42  ;;  %v554_v53 = vpop.permute.xlu1 %553  ;;  %v1216_v54 = vpop.f32.mrf.mxu2 }
 0x11c   : > { %1712 = vmatmul.msk.f32.gmra.mxu0 %vm851_vm4, %v825_v50  ;;  %1778 = vmatmul.msk.f32.gmra.mxu2 %vm851_vm4, %v825_v50  ;;  %v2276_v56 = vadd.f32 %v1216_v54, %v1092_v49  ;;  %v789_v58 = vsel %vm301_vm0, %v393_v51, %v554_v53 }
 0x11d   : > { %1747 = vmatmul.msk.f32.gmra.mxu1 %vm851_vm4, %v825_v50  ;;  %v826_v63 = vsel %vm809_vm3, %v789_v58, %v698_v59 }
 0x11e   : > { %1344 = vst.msk [vmem:[%s2272_s17] sm:$0xff] %vm809_vm3, %v2276_v56 }
 0x121   : > { %v716_v61 = vpop.permute.xlu0 %715 }
 0x122   : > { %v2286_v0 = vsel %vm809_vm3, %v798_v60, %v716_v61  ;;  %v1094_v2 = vpop.f32.mrf.mxu1  ;;  %v558_v10 = vpop.permute.xlu2 %557  ;;  %v400_v60 = vld [vmem:[#allocation2 + $0x16f] sm:$0xff] }
 0x123   : > { %1757 = vmatmul.msk.f32.gmra.mxu3 %vm851_vm4, %v2286_v0  ;;  %v700_v4 = vpop.permute.xlu1 %699  ;;  %v791_v12 = vsel %vm301_vm0, %v395_v9, %v558_v10 }
 0x124   : > { %1713 = vmatmul.msk.f32.gmra.mxu0 %vm851_vm4, %v826_v63  ;;  %1779 = vmatmul.msk.f32.gmra.mxu2 %vm851_vm4, %v826_v63  ;;  %v1219_v18 = vpop.f32.mrf.mxu2 }
 0x125   : > { %1748 = vmatmul.msk.f32.gmra.mxu1 %vm851_vm4, %v826_v63 }
 0x129   : > { %v556_v5 = vpop.permute.xlu0 %555 }
 0x12a   : > { %v790_v6 = vsel %vm301_vm0, %v394_v3, %v556_v5  ;;  %v1097_v11 = vpop.f32.mrf.mxu1  ;;  %v704_v25 = vpop.permute.xlu2 %703 }
 0x12b   : > { %1758 = vmatmul.msk.f32.gmra.mxu3 %vm851_vm4, %v2151_v15  ;;  %v827_v8 = vsel %vm809_vm3, %v790_v6, %v700_v4  ;;  %v560_v20 = vpop.permute.xlu1 %559 }
 0x12c   : > { %1714 = vmatmul.msk.f32.gmra.mxu0 %vm851_vm4, %v827_v8  ;;  %1780 = vmatmul.msk.f32.gmra.mxu2 %vm851_vm4, %v827_v8  ;;  %v792_v24 = vsel %vm301_vm0, %v396_v19, %v560_v20 }
 0x12d   : > { %1749 = vmatmul.msk.f32.gmra.mxu1 %vm851_vm4, %v827_v8  ;;  %v829_v1 = vsel %vm809_vm3, %v792_v24, %v704_v25 }
 0x131   : > { %v972_v13 = vpop.f32.mrf.mxu0  ;;  %v702_v14 = vpop.permute.xlu0 %701 }
 0x132   : > { %v1095_v16 = vadd.f32 %v1094_v2, %v972_v13  ;;  %v828_v17 = vsel %vm809_vm3, %v791_v12, %v702_v14  ;;  %v1100_v62 = vpop.f32.mrf.mxu1  ;;  %v564_v41 = vpop.permute.xlu2 %563 }
 0x133   : > { %1759 = vmatmul.msk.f32.gmra.mxu3 %vm851_vm4, %v2167_v23  ;;  %v706_v32 = vpop.permute.xlu1 %705  ;;  %v794_v42 = vsel %vm301_vm0, %v398_v39, %v564_v41  ;;  %v412_v39 = vld [vmem:[#allocation2 + $0x22f] sm:$0xff] }
 0x134   : > { %v2304_v21 = vadd.f32 %v1219_v18, %v1095_v16  ;;  %1715 = vmatmul.msk.f32.gmra.mxu0 %vm851_vm4, %v828_v17  ;;  %1781 = vmatmul.msk.f32.gmra.mxu2 %vm851_vm4, %v828_v17 }
 0x135   : > { %1750 = vmatmul.msk.f32.gmra.mxu1 %vm851_vm4, %v828_v17 }
 0x136   : > { %1345 = vst.msk [vmem:[%s2272_s17 + $0x8] sm:$0xff] %vm809_vm3, %v2304_v21 }
 0x139   : > { %v975_v26 = vpop.f32.mrf.mxu0  ;;  %v562_v29 = vpop.permute.xlu0 %561 }
 0x13a   : > { %v1098_v30 = vadd.f32 %v1097_v11, %v975_v26  ;;  %v793_v31 = vsel %vm301_vm0, %v397_v27, %v562_v29  ;;  %v1103_v37 = vpop.f32.mrf.mxu1  ;;  %v710_v53 = vpop.permute.xlu2 %709 }
 0x13b   : > { %1760 = vmatmul.msk.f32.gmra.mxu3 %vm851_vm4, %v2184_v36  ;;  %v830_v38 = vsel %vm809_vm3, %v793_v31, %v706_v32  ;;  %v566_v48 = vpop.permute.xlu1 %565  ;;  %v411_v31 = vld [vmem:[#allocation2 + $0x227] sm:$0xff] }
 0x13c   : > { %1716 = vmatmul.msk.f32.gmra.mxu0 %vm851_vm4, %v829_v1  ;;  %1782 = vmatmul.msk.f32.gmra.mxu2 %vm851_vm4, %v829_v1  ;;  %v795_v51 = vsel %vm301_vm0, %v399_v47, %v566_v48 }
 0x13d   : > { %1751 = vmatmul.msk.f32.gmra.mxu1 %vm851_vm4, %v829_v1  ;;  %v832_v58 = vsel %vm809_vm3, %v795_v51, %v710_v53 }
 0x13f   : > { %v1222_v33 = vpop.f32.mrf.mxu2 }
 0x140   : > { %v2320_v34 = vadd.f32 %v1222_v33, %v1098_v30 }
 0x141   : > { %v978_v35 = vpop.f32.mrf.mxu0  ;;  %v708_v43 = vpop.permute.xlu0 %707 }
 0x142   : > { %1346 = vst.msk [vmem:[%s2272_s17 + $0x10] sm:$0xff] %vm809_vm3, %v2320_v34  ;;  %v831_v45 = vsel %vm809_vm3, %v794_v42, %v708_v43  ;;  %v1106_v46 = vpop.f32.mrf.mxu1  ;;  %v1101_v49 = vadd.f32 %v1100_v62, %v978_v35  ;;  %v590_v32 = vpop.permute.xlu2 %589 }
 0x143   : > { %1761 = vmatmul.msk.f32.gmra.mxu3 %vm851_vm4, %v2200_v52  ;;  %v712_v5 = vpop.permute.xlu1 %711 }
 0x144   : > { %1717 = vmatmul.msk.f32.gmra.mxu0 %vm851_vm4, %v830_v38  ;;  %1783 = vmatmul.msk.f32.gmra.mxu2 %vm851_vm4, %v830_v38 }
 0x145   : > { %1752 = vmatmul.msk.f32.gmra.mxu1 %vm851_vm4, %v830_v38 }
 0x146   : > { %v2345_v59 = vpop.f32.mrf.mxu3 }
 0x149   : > { %v981_v44 = vpop.f32.mrf.mxu0  ;;  %v568_v61 = vpop.permute.xlu0 %567 }
 0x14a   : > { %v1104_v63 = vadd.f32 %v1103_v37, %v981_v44  ;;  %v1109_v2 = vpop.f32.mrf.mxu1  ;;  %v796_v4 = vsel %vm301_vm0, %v400_v60, %v568_v61  ;;  %v736_v44 = vpop.permute.xlu2 %735 }
 0x14b   : > { %1762 = vmatmul.msk.f32.gmra.mxu3 %vm851_vm4, %v2209_v57  ;;  %v833_v9 = vsel %vm809_vm3, %v796_v4, %v712_v5  ;;  %v592_v41 = vpop.permute.xlu1 %591 }
 0x14c   : > { %1718 = vmatmul.msk.f32.gmra.mxu0 %vm851_vm4, %v831_v45  ;;  %1784 = vmatmul.msk.f32.gmra.mxu2 %vm851_vm4, %v831_v45  ;;  %v808_v43 = vsel %vm301_vm0, %v412_v39, %v592_v41 }
 0x14d   : > { %1753 = vmatmul.msk.f32.gmra.mxu1 %vm851_vm4, %v831_v45  ;;  %v845_v47 = vsel %vm809_vm3, %v808_v43, %v736_v44 }
 0x14e   : > { %v1225_v50 = vpop.f32.mrf.mxu2  ;;  %v2361_v10 = vpop.f32.mrf.mxu3 }
 0x14f   : > { %v2339_v54 = vadd.f32 %v1225_v50, %v1101_v49 }
 0x151   : > { %1347 = vst.msk [vmem:[%s2272_s17 + $0x18] sm:$0xff] %vm809_vm3, %v2339_v54  ;;  %v984_v55 = vpop.f32.mrf.mxu0  ;;  %v734_v33 = vpop.permute.xlu0 %733 }
 0x152   : > { %v1107_v11 = vadd.f32 %v1106_v46, %v984_v55  ;;  %v1112_v12 = vpop.f32.mrf.mxu1 }
 0x153   : > { %1763 = vmatmul.msk.f32.gmra.mxu3 %vm851_vm4, %v2222_v7 }
 0x154   : > { %1719 = vmatmul.msk.f32.gmra.mxu0 %vm851_vm4, %v832_v58  ;;  %1785 = vmatmul.msk.f32.gmra.mxu2 %vm851_vm4, %v832_v58 }
 0x155   : > { %1754 = vmatmul.msk.f32.gmra.mxu1 %vm851_vm4, %v832_v58 }
 0x156   : > { %v1228_v3 = vpop.f32.mrf.mxu2 }
 0x157   : > { %v2353_v6 = vadd.f32 %v1228_v3, %v1104_v63 }
 0x159   : > { %1348 = vst.msk [vmem:[%s2272_s17 + $0x20] sm:$0xff] %vm809_vm3, %v2353_v6  ;;  %v987_v8 = vpop.f32.mrf.mxu0 }
 0x15a   : > { %v1115_v17 = vpop.f32.mrf.mxu1 }
 0x15b   : > { %1791 = vmatmul.msk.f32.vlgmr.msra.gmra.mxu3 %vm851_vm4, %v2184_v36  ;;  %v2377_v36 = vpop.f32.mrf.mxu3 }
 0x15c   : > { %1720 = vmatmul.msk.f32.gmra.mxu0 %vm851_vm4, %v833_v9  ;;  %1786 = vmatmul.msk.f32.gmra.mxu2 %vm851_vm4, %v833_v9 }
 0x15d   : > { %1755 = vmatmul.msk.f32.gmra.mxu1 %vm851_vm4, %v833_v9 }
 0x15f   : > { %v1231_v13 = vpop.f32.mrf.mxu2 }
 0x160   : > { %v2366_v14 = vadd.f32 %v1231_v13, %v1107_v11 }
 0x161   : > { %v990_v16 = vpop.f32.mrf.mxu0 }
 0x162   : > { %1349 = vst.msk [vmem:[%s2272_s17 + $0x28] sm:$0xff] %vm809_vm3, %v2366_v14 }
 0x163   : > { %1792 = vmatmul.msk.f32.gmra.mxu3 %vm851_vm4, %v2200_v52  ;;  %v1110_v52 = vadd.f32 %v1109_v2, %v987_v8 }
 0x164   : > { %1721 = vmatmul.msk.f32.gmra.mxu0 %vm851_vm4, %v2257_v40  ;;  %1787 = vmatmul.msk.f32.gmra.mxu2 %vm851_vm4, %v2257_v40  ;;  %v1118_v40 = vpop.f32.mrf.mxu1 }
 0x166   : > { %v2385_v19 = vpop.f32.mrf.mxu3 }
 0x169   : > { %v993_v18 = vpop.f32.mrf.mxu0 }
 0x16a   : > { %v1116_v1 = vadd.f32 %v1115_v17, %v993_v18 }
 0x16b   : > { %1793 = vmatmul.msk.f32.gmra.mxu3 %vm851_vm4, %v2209_v57  ;;  %v1113_v57 = vadd.f32 %v1112_v12, %v990_v16 }
 0x16c   : > { %1722 = vmatmul.msk.f32.gmra.mxu0 %vm851_vm4, %v2286_v0  ;;  %1788 = vmatmul.msk.f32.gmra.mxu2 %vm851_vm4, %v2286_v0 }
 0x16e   : > { %v1234_v20 = vpop.f32.mrf.mxu2  ;;  %v2398_v26 = vpop.f32.mrf.mxu3 }
 0x16f   : > { %v2387_v24 = vadd.f32 %v1234_v20, %v1110_v52 }
 0x171   : > { %1350 = vst.msk [vmem:[%s2272_s17 + $0x30] sm:$0xff] %vm809_vm3, %v2387_v24  ;;  %v996_v25 = vpop.f32.mrf.mxu0 }
 0x172   : > { %v1119_v42 = vadd.f32 %v1118_v40, %v996_v25 }
 0x173   : > { %1794 = vmatmul.msk.f32.gmra.mxu3 %vm851_vm4, %v2222_v7  ;;  %v1121_v7 = vpop.f32.mrf.mxu1 }
 0x174   : > { %1789 = vmatmul.msk.f32.gmra.mxu2 %vm851_vm4, %v2151_v15 }
 0x176   : > { %v1237_v0 = vpop.f32.mrf.mxu2 }
 0x177   : > { %v2396_v62 = vadd.f32 %v1237_v0, %v1113_v57  ;;  %v2409_v30 = vpop.f32.mrf.mxu3 }
 0x179   : > { %1351 = vst.msk [vmem:[%s2272_s17 + $0x38] sm:$0xff] %vm809_vm3, %v2396_v62  ;;  %v999_v15 = vpop.f32.mrf.mxu0 }
 0x17a   : > { %v1122_v50 = vadd.f32 %v1121_v7, %v999_v15 }
 0x17b   : > { %1795 = vmatmul.msk.f32.gmra.mxu3 %vm851_vm4, %v2237_v22  ;;  %v807_v22 = vsel %vm301_vm0, %v411_v31, %v590_v32 }
 0x17c   : > { %1790 = vmatmul.msk.f32.gmra.mxu2 %vm851_vm4, %v2167_v23  ;;  %v1124_v23 = vpop.f32.mrf.mxu1  ;;  %v844_v37 = vsel %vm809_vm3, %v807_v22, %v734_v33 }
 0x17f   : > { %v1240_v27 = vpop.f32.mrf.mxu2 }
 0x180   : > { %v2407_v29 = vadd.f32 %v1240_v27, %v1116_v1 }
 0x182   : > { %1352 = vst.msk [vmem:[%s2272_s17 + $0x40] sm:$0xff] %vm809_vm3, %v2407_v29 }
 0x183   : > { %1796 = vmatmul.msk.f32.gmra.mxu3 %vm851_vm4, %v2244_v28 }
 0x184   : > { %v1127_v48 = vpop.f32.mrf.mxu1 }
 0x186   : > { %v2418_v38 = vpop.f32.mrf.mxu3 }
 0x188   : > { %v1002_v35 = vpop.f32.mrf.mxu0 }
 0x189   : > { %v1125_v60 = vadd.f32 %v1124_v23, %v1002_v35 }
 0x18b   : > { %1797 = vmatmul.msk.f32.gmra.mxu3 %vm851_vm4, %v844_v37 }
 0x18c   : > { %v1130_v58 = vpop.f32.mrf.mxu1 }
 0x18e   : > { %v1243_v28 = vpop.f32.mrf.mxu2 }
 0x18f   : > { %v2422_v45 = vadd.f32 %v1243_v28, %v1119_v42  ;;  %v2429_v49 = vpop.f32.mrf.mxu3 }
 0x190   : > { %v1005_v46 = vpop.f32.mrf.mxu0 }
 0x191   : > { %1353 = vst.msk [vmem:[%s2272_s17 + $0x48] sm:$0xff] %vm809_vm3, %v2422_v45  ;;  %v1128_v5 = vadd.f32 %v1127_v48, %v1005_v46 }
 0x193   : > { %1798 = vmatmul.msk.f32.gmra.mxu3 %vm851_vm4, %v845_v47  ;;  %v1377_v47 = vsel %vm809_vm3, %v2304_v21, 0.0 }
 0x194   : > { %v1133_v4 = vpop.f32.mrf.mxu1 }
 0x196   : > { %v1246_v51 = vpop.f32.mrf.mxu2 }
 0x197   : > { %v2431_v53 = vadd.f32 %v1246_v51, %v1122_v50  ;;  %v1163_v61 = vpop.f32.mrf.mxu3  ;;  %v1376_v50 = vsel %vm809_vm3, %v2276_v56, 0.0  ;;  %v1379_v51 = vsel %vm809_vm3, %v2320_v34, 0.0 }
 0x199   : > { %1354 = vst.msk [vmem:[%s2272_s17 + $0x50] sm:$0xff] %vm809_vm3, %v2431_v53  ;;  %v1008_v55 = vpop.f32.mrf.mxu0 }
 0x19a   : > { %v1131_v13 = vadd.f32 %v1130_v58, %v1008_v55 }
 0x19c   : > { %v1136_v17 = vpop.f32.mrf.mxu1 }
 0x19f   : > { %v1249_v63 = vpop.f32.mrf.mxu2 }
 0x1a0   : > { %v2436_v2 = vadd.f32 %v1249_v63, %v1125_v60  ;;  %v1378_v60 = vadd.f32 %v1377_v47, %v1376_v50 }
 0x1a1   : > { %v1011_v3 = vpop.f32.mrf.mxu0 }
 0x1a2   : > { %1355 = vst.msk [vmem:[%s2272_s17 + $0x58] sm:$0xff] %vm809_vm3, %v2436_v2  ;;  %v1134_v40 = vadd.f32 %v1133_v4, %v1011_v3  ;;  %v1381_v3 = vsel %vm809_vm3, %v2339_v54, 0.0 }
 0x1a4   : > { %v1139_v25 = vpop.f32.mrf.mxu1 }
 0x1a6   : > { %v2441_v8 = vpop.f32.mrf.mxu3 }
 0x1a7   : > { %v1252_v9 = vpop.f32.mrf.mxu2 }
 0x1a8   : > { %v2443_v11 = vadd.f32 %v1252_v9, %v1128_v5  ;;  %v1380_v5 = vadd.f32 %v1379_v51, %v1378_v60  ;;  %v1383_v9 = vsel %vm809_vm3, %v2353_v6, 0.0 }
 0x1a9   : > { %v1014_v12 = vpop.f32.mrf.mxu0 }
 0x1aa   : > { %1356 = vst.msk [vmem:[%s2272_s17 + $0x60] sm:$0xff] %vm809_vm3, %v2443_v11  ;;  %v1137_v1 = vadd.f32 %v1136_v17, %v1014_v12  ;;  %v1382_v12 = vadd.f32 %v1381_v3, %v1380_v5 }
 0x1ac   : > { %v1142_v22 = vpop.f32.mrf.mxu1  ;;  %v1384_v17 = vadd.f32 %v1383_v9, %v1382_v12 }
 0x1ae   : > { %v2448_v16 = vpop.f32.mrf.mxu3 }
 0x1af   : > { %v1255_v18 = vpop.f32.mrf.mxu2 }
 0x1b0   : > { %v2450_v52 = vadd.f32 %v1255_v18, %v1131_v13  ;;  %v1385_v13 = vsel %vm809_vm3, %v2366_v14, 0.0  ;;  %v1164_v18 = vadd.f32 %v1163_v61, %v2345_v59  ;;  %v1391_v59 = vsel %vm809_vm3, %v2407_v29, 0.0 }
 0x1b1   : > { %v1017_v20 = vpop.f32.mrf.mxu0 }
 0x1b2   : > { %1357 = vst.msk [vmem:[%s2272_s17 + $0x68] sm:$0xff] %vm809_vm3, %v2450_v52  ;;  %v1140_v33 = vadd.f32 %v1139_v25, %v1017_v20  ;;  %v1401_v12 = vsel %vm809_vm3, %v2450_v52, 0.0 }
 0x1b4   : > { %v1145_v41 = vpop.f32.mrf.mxu1 }
 0x1b6   : > { %v2455_v57 = vpop.f32.mrf.mxu3 }
 0x1b7   : > { %v1258_v0 = vpop.f32.mrf.mxu2 }
 0x1b8   : > { %v2457_v7 = vadd.f32 %v1258_v0, %v1134_v40  ;;  %v1387_v40 = vsel %vm809_vm3, %v2387_v24, 0.0 }
 0x1b9   : > { %v1020_v15 = vpop.f32.mrf.mxu0 }
 0x1ba   : > { %1358 = vst.msk [vmem:[%s2272_s17 + $0x70] sm:$0xff] %vm809_vm3, %v2457_v7  ;;  %v1143_v42 = vadd.f32 %v1142_v22, %v1020_v15 }
 0x1bc   : > { %v1148_v48 = vpop.f32.mrf.mxu1 }
 0x1be   : > { %v2462_v27 = vpop.f32.mrf.mxu3 }
 0x1bf   : > { %v1261_v31 = vpop.f32.mrf.mxu2 }
 0x1c0   : > { %v2464_v32 = vadd.f32 %v1261_v31, %v1137_v1  ;;  %v1386_v1 = vadd.f32 %v1385_v13, %v1384_v17  ;;  %v1170_v17 = vadd.f32 %v2448_v16, %v2377_v36 }
 0x1c1   : > { %v1023_v39 = vpop.f32.mrf.mxu0 }
 0x1c2   : > { %1359 = vst.msk [vmem:[%s2272_s17 + $0x78] sm:$0xff] %vm809_vm3, %v2464_v32  ;;  %v1146_v55 = vadd.f32 %v1145_v41, %v1023_v39  ;;  %v1388_v39 = vadd.f32 %v1387_v40, %v1386_v1  ;;  %v1393_v41 = vsel %vm809_vm3, %v2422_v45, 0.0 }
 0x1c4   : > { %v1151_v15 = vpop.f32.mrf.mxu1 }
 0x1c6   : > { %v2469_v23 = vpop.f32.mrf.mxu3 }
 0x1c7   : > { %v1264_v35 = vpop.f32.mrf.mxu2 }
 0x1c8   : > { %v2471_v37 = vadd.f32 %v1264_v35, %v1140_v33  ;;  %v1389_v33 = vsel %vm809_vm3, %v2396_v62, 0.0 }
 0x1c9   : > { %v1026_v46 = vpop.f32.mrf.mxu0  ;;  %v1390_v61 = vadd.f32 %v1389_v33, %v1388_v39 }
 0x1ca   : > { %1360 = vst.msk [vmem:[%s2272_s17 + $0x80] sm:$0xff] %vm809_vm3, %v2471_v37  ;;  %v1149_v25 = vadd.f32 %v1148_v48, %v1026_v46  ;;  %v1395_v46 = vsel %vm809_vm3, %v2431_v53, 0.0  ;;  %v1407_v36 = vsel %vm809_vm3, %v2471_v37, 0.0 }
 0x1cc   : > { %v1154_v9 = vpop.f32.mrf.mxu1 }
 0x1ce   : > { %v2476_v43 = vpop.f32.mrf.mxu3 }
 0x1cf   : > { %v1267_v44 = vpop.f32.mrf.mxu2 }
 0x1d0   : > { %v2478_v28 = vadd.f32 %v1267_v44, %v1143_v42  ;;  %v1392_v42 = vadd.f32 %v1391_v59, %v1390_v61  ;;  %v1167_v44 = vadd.f32 %v2441_v8, %v2361_v10  ;;  %v1399_v10 = vsel %vm809_vm3, %v2443_v11, 0.0 }
 0x1d1   : > { %v1029_v20 = vpop.f32.mrf.mxu0 }
 0x1d2   : > { %1361 = vst.msk [vmem:[%s2272_s17 + $0x88] sm:$0xff] %vm809_vm3, %v2478_v28  ;;  %v1152_v47 = vadd.f32 %v1151_v15, %v1029_v20  ;;  %v1394_v50 = vadd.f32 %v1393_v41, %v1392_v42  ;;  %v1405_v15 = vsel %vm809_vm3, %v2464_v32, 0.0  ;;  %v1409_v61 = vsel %vm809_vm3, %v2478_v28, 0.0 }
 0x1d3   : > { %v1173_v41 = vadd.f32 %v2455_v57, %v2385_v19 }
 0x1d4   : > { %v1396_v5 = vadd.f32 %v1395_v46, %v1394_v50  ;;  %v1157_v59 = vpop.f32.mrf.mxu1 }
 0x1d6   : > { %v2489_v58 = vpop.f32.mrf.mxu3 }
 0x1d7   : > { %v1270_v63 = vpop.f32.mrf.mxu2 }
 0x1d8   : > { %v2493_v4 = vadd.f32 %v1270_v63, %v1146_v55  ;;  %v1397_v63 = vsel %vm809_vm3, %v2436_v2, 0.0 }
 0x1d9   : > { %v1032_v51 = vpop.f32.mrf.mxu0  ;;  %v1398_v8 = vadd.f32 %v1397_v63, %v1396_v5 }
 0x1da   : > { %1362 = vst.msk [vmem:[%s2272_s17 + $0x90] sm:$0xff] %vm809_vm3, %v2493_v4  ;;  %v1155_v20 = vadd.f32 %v1154_v9, %v1032_v51 }
 0x1db   : > { %v1400_v13 = vadd.f32 %v1399_v10, %v1398_v8  ;;  %v1176_v8 = vadd.f32 %v2462_v27, %v2398_v26  ;;  %v1179_v27 = vadd.f32 %v2469_v23, %v2409_v30  ;;  %v1182_v30 = vadd.f32 %v2476_v43, %v2418_v38 }
 0x1de   : > { %v1288_v0 = vpop.f32.mrf.mxu3 }
 0x1df   : > { %v2505_v31 = vadd.f32 %v1288_v0, %v1164_v18  ;;  %v1273_v22 = vpop.f32.mrf.mxu2  ;;  %v1403_v18 = vsel %vm809_vm3, %v2457_v7, 0.0 }
 0x1e0   : > { %v2509_v35 = vadd.f32 %v1273_v22, %v1149_v25  ;;  %v1402_v25 = vadd.f32 %v1401_v12, %v1400_v13  ;;  %v1160_v12 = vpop.f32.mrf.mxu1 }
 0x1e1   : > { %1368 = vst.msk [vmem:[%s2272_s17 + $0xc0] sm:$0xff] %vm809_vm3, %v2505_v31  ;;  %v1035_v39 = vpop.f32.mrf.mxu0  ;;  %v1423_v26 = vsel %vm809_vm3, %v2505_v31, 0.0 }
 0x1e2   : > { %1363 = vst.msk [vmem:[%s2272_s17 + $0x98] sm:$0xff] %vm809_vm3, %v2509_v35  ;;  %v1404_v33 = vadd.f32 %v1403_v18, %v1402_v25  ;;  %v1158_v46 = vadd.f32 %v1157_v59, %v1035_v39 }
 0x1e4   : > { %v1406_v16 = vadd.f32 %v1405_v15, %v1404_v33 }
 0x1e6   : > { %v1291_v48 = vpop.f32.mrf.mxu3  ;;  %v1408_v42 = vadd.f32 %v1407_v36, %v1406_v16 }
 0x1e7   : > { %v2525_v55 = vadd.f32 %v1291_v48, %v1167_v44  ;;  %v1276_v60 = vpop.f32.mrf.mxu2  ;;  %v1411_v44 = vsel %vm809_vm3, %v2493_v4, 0.0 }
 0x1e8   : > { %v2529_v3 = vadd.f32 %v1276_v60, %v1152_v47  ;;  %v1410_v48 = vadd.f32 %v1409_v61, %v1408_v42  ;;  %v1413_v60 = vsel %vm809_vm3, %v2509_v35, 0.0 }
 0x1e9   : > { %1369 = vst.msk [vmem:[%s2272_s17 + $0xc8] sm:$0xff] %vm809_vm3, %v2525_v55  ;;  %v1038_v9 = vpop.f32.mrf.mxu0  ;;  %v1425_v59 = vsel %vm809_vm3, %v2525_v55, 0.0 }
 0x1ea   : > { %1364 = vst.msk [vmem:[%s2272_s17 + $0xa0] sm:$0xff] %vm809_vm3, %v2529_v3  ;;  %v1412_v5 = vadd.f32 %v1411_v44, %v1410_v48  ;;  %v1415_v19 = vsel %vm809_vm3, %v2529_v3, 0.0 }
 0x1ec   : > { %v1414_v57 = vadd.f32 %v1413_v60, %v1412_v5 }
 0x1ee   : > { %v1294_v40 = vpop.f32.mrf.mxu3  ;;  %v1416_v13 = vadd.f32 %v1415_v19, %v1414_v57 }
 0x1ef   : > { %v2545_v0 = vadd.f32 %v1294_v40, %v1170_v17  ;;  %v1279_v1 = vpop.f32.mrf.mxu2  ;;  %v1161_v17 = vadd.f32 %v1160_v12, %v1038_v9  ;;  %v1185_v9 = vadd.f32 %v2489_v58, %v2429_v49 }
 0x1f0   : > { %v2549_v22 = vadd.f32 %v1279_v1, %v1155_v20 }
 0x1f1   : > { %1370 = vst.msk [vmem:[%s2272_s17 + $0xd0] sm:$0xff] %vm809_vm3, %v2545_v0  ;;  %v1427_v44 = vsel %vm809_vm3, %v2545_v0, 0.0 }
 0x1f2   : > { %1365 = vst.msk [vmem:[%s2272_s17 + $0xa8] sm:$0xff] %vm809_vm3, %v2549_v22  ;;  %v1417_v10 = vsel %vm809_vm3, %v2549_v22, 0.0 }
 0x1f3   : > { %v1418_v40 = vadd.f32 %v1417_v10, %v1416_v13 }
 0x1f6   : > { %v1297_v47 = vpop.f32.mrf.mxu3 }
 0x1f7   : > { %v2565_v50 = vadd.f32 %v1297_v47, %v1173_v41  ;;  %v1282_v51 = vpop.f32.mrf.mxu2 }
 0x1f8   : > { %v1334_v63 = vadd.f32 %v1282_v51, %v1158_v46 }
 0x1f9   : > { %1371 = vst.msk [vmem:[%s2272_s17 + $0xd8] sm:$0xff] %vm809_vm3, %v2565_v50  ;;  %v1429_v47 = vsel %vm809_vm3, %v2565_v50, 0.0 }
 0x1fa   : > { %1366 = vst.msk [vmem:[%s2272_s17 + $0xb0] sm:$0xff] %vm809_vm3, %v1334_v63  ;;  %v1419_v18 = vsel %vm809_vm3, %v1334_v63, 0.0 }
 0x1fb   : > { %v1420_v33 = vadd.f32 %v1419_v18, %v1418_v40 }
 0x1fe   : > { %v1300_v20 = vpop.f32.mrf.mxu3 }
 0x1ff   : > { %v1340_v25 = vadd.f32 %v1300_v20, %v1176_v8  ;;  %v1285_v1 = vpop.f32.mrf.mxu2 }
 0x200   : > { %v1335_v15 = vadd.f32 %v1285_v1, %v1161_v17 }
 0x201   : > { %1372 = vst.msk [vmem:[%s2272_s17 + $0xe0] sm:$0xff] %vm809_vm3, %v1340_v25  ;;  %v1431_v51 = vsel %vm809_vm3, %v1340_v25, 0.0 }
 0x202   : > { %1367 = vst.msk [vmem:[%s2272_s17 + $0xb8] sm:$0xff] %vm809_vm3, %v1335_v15  ;;  %v1421_v39 = vsel %vm809_vm3, %v1335_v15, 0.0 }
 0x203   : > { %v1422_v36 = vadd.f32 %v1421_v39, %v1420_v33 }
 0x205   : > { %v1424_v16 = vadd.f32 %v1423_v26, %v1422_v36 }
 0x206   : > { %v1303_v61 = vpop.f32.mrf.mxu3 }
 0x207   : > { %v1426_v41 = vadd.f32 %v1425_v59, %v1424_v16  ;;  %v1341_v42 = vadd.f32 %v1303_v61, %v1179_v27 }
 0x209   : > { %1373 = vst.msk [vmem:[%s2272_s17 + $0xe8] sm:$0xff] %vm809_vm3, %v1341_v42  ;;  %v1428_v46 = vadd.f32 %v1427_v44, %v1426_v41  ;;  %v1433_v19 = vsel %vm809_vm3, %v1341_v42, 0.0 }
 0x20b   : > { %v1430_v48 = vadd.f32 %v1429_v47, %v1428_v46 }
 0x20d   : > { %v1432_v5 = vadd.f32 %v1431_v51, %v1430_v48 }
 0x20e   : > { %v1306_v23 = vpop.f32.mrf.mxu3 }
 0x20f   : > { %v1342_v60 = vadd.f32 %v1306_v23, %v1182_v30  ;;  %v1434_v57 = vadd.f32 %v1433_v19, %v1432_v5 }
 0x211   : > { %1374 = vst.msk [vmem:[%s2272_s17 + $0xf0] sm:$0xff] %vm809_vm3, %v1342_v60  ;;  %v1435_v10 = vsel %vm809_vm3, %v1342_v60, 0.0 }
 0x212   : > { %v1436_v13 = vadd.f32 %v1435_v10, %v1434_v57 }
 0x216   : > { %v1309_v8 = vpop.f32.mrf.mxu3 }
 0x217   : > { %v1343_v12 = vadd.f32 %v1309_v8, %v1185_v9 }
 0x219   : > { %1375 = vst.msk [vmem:[%s2272_s17 + $0xf8] sm:$0xff] %vm809_vm3, %v1343_v12  ;;  %v1437_v38 = vsel %vm809_vm3, %v1343_v12, 0.0 }
 0x21a   : > { %v1438_v43 = vadd.f32 %v1437_v38, %v1436_v13 }
 0x21c   : > { %v1439_v17 = vrot.slane %v1438_v43, 4 }
 0x21e   : > { %v1440_v18 = vadd.f32 %v1439_v17, %v1438_v43 }
 0x220   : > { %v1441_v20 = vrot.slane %v1440_v18, 2 }
 0x222   : > { %v1442_v40 = vadd.f32 %v1441_v20, %v1440_v18 }
 0x224   : > { %v1443_v1 = vrot.slane %v1442_v40, 1 }
 0x226   : > { %v1444_v49 = vadd.f32 %v1443_v1, %v1442_v40 }
 0x228   : > { %1479 = vst.msk [vmem:[%s265_s20] sm:$0x1] %vm1478_vm5, %v1444_v49  ;;  %v2615_v58 = vmul.f32 0.00390625, %v1444_v49 }
 0x22a   : > { %v2619_v33 = vsub.f32 %v2549_v22, %v2615_v58  ;;  %v2622_v39 = vsub.f32 %v1334_v63, %v2615_v58  ;;  %v2625_v36 = vsub.f32 %v1335_v15, %v2615_v58  ;;  %v2629_v26 = vsub.f32 %v2545_v0, %v2615_v58 }
 0x22b   : > { %v2633_v27 = vsub.f32 %v2565_v50, %v2615_v58  ;;  %v2636_v16 = vsub.f32 %v1340_v25, %v2615_v58  ;;  %v2639_v22 = vsub.f32 %v1341_v42, %v2615_v58  ;;  %v2642_v63 = vsub.f32 %v1342_v60, %v2615_v58 }
 0x22c   : > { %v2645_v15 = vsub.f32 %v1343_v12, %v2615_v58  ;;  %v1446_v0 = vsub.f32 %v2276_v56, %v2615_v58  ;;  %v1447_v59 = vsub.f32 %v2304_v21, %v2615_v58  ;;  %v1448_v50 = vsub.f32 %v2320_v34, %v2615_v58 }
 0x22d   : > { %v1449_v25 = vsub.f32 %v2339_v54, %v2615_v58  ;;  %v1450_v42 = vsub.f32 %v2353_v6, %v2615_v58  ;;  %v1451_v46 = vsub.f32 %v2366_v14, %v2615_v58  ;;  %v1452_v34 = vsub.f32 %v2387_v24, %v2615_v58 }
 0x22e   : > { %v1480_v61 = vmul.f32 %v1446_v0, %v1446_v0  ;;  %v1481_v41 = vmul.f32 %v1447_v59, %v1447_v59  ;;  %v1482_v44 = vmul.f32 %v1448_v50, %v1448_v50  ;;  %v1453_v6 = vsub.f32 %v2396_v62, %v2615_v58 }
 0x22f   : > { %v1483_v47 = vmul.f32 %v1449_v25, %v1449_v25  ;;  %v1484_v30 = vmul.f32 %v1450_v42, %v1450_v42  ;;  %v1485_v51 = vmul.f32 %v1451_v46, %v1451_v46  ;;  %v1454_v5 = vsub.f32 %v2407_v29, %v2615_v58 }
 0x230   : > { %v1512_v56 = vsel %vm809_vm3, %v1480_v61, 0.0  ;;  %v1513_v21 = vsel %vm809_vm3, %v1481_v41, 0.0  ;;  %v1515_v54 = vsel %vm809_vm3, %v1482_v44, 0.0  ;;  %v1486_v19 = vmul.f32 %v1452_v34, %v1452_v34 }
 0x231   : > { %v1514_v48 = vadd.f32 %v1513_v21, %v1512_v56  ;;  %v1517_v60 = vsel %vm809_vm3, %v1483_v47, 0.0  ;;  %v1519_v57 = vsel %vm809_vm3, %v1484_v30, 0.0  ;;  %v1455_v24 = vsub.f32 %v2422_v45, %v2615_v58 }
 0x232   : > { %v1487_v10 = vmul.f32 %v1453_v6, %v1453_v6  ;;  %v1521_v8 = vsel %vm809_vm3, %v1485_v51, 0.0  ;;  %v1456_v62 = vsub.f32 %v2431_v53, %v2615_v58  ;;  %v1488_v13 = vmul.f32 %v1454_v5, %v1454_v5 }
 0x233   : > { %v1516_v23 = vadd.f32 %v1515_v54, %v1514_v48  ;;  %v1523_v38 = vsel %vm809_vm3, %v1486_v19, 0.0  ;;  %v1457_v29 = vsub.f32 %v2436_v2, %v2615_v58  ;;  %v1489_v17 = vmul.f32 %v1455_v24, %v1455_v24 }
 0x234   : > { %v1525_v18 = vsel %vm809_vm3, %v1487_v10, 0.0  ;;  %v1458_v45 = vsub.f32 %v2443_v11, %v2615_v58  ;;  %v1490_v40 = vmul.f32 %v1456_v62, %v1456_v62  ;;  %v1527_v1 = vsel %vm809_vm3, %v1488_v13, 0.0 }
 0x235   : > { %v1518_v14 = vadd.f32 %v1517_v60, %v1516_v23  ;;  %v1459_v53 = vsub.f32 %v2450_v52, %v2615_v58  ;;  %v1491_v0 = vmul.f32 %v1457_v29, %v1457_v29  ;;  %v1529_v59 = vsel %vm809_vm3, %v1489_v17, 0.0 }
 0x236   : > { %v1460_v2 = vsub.f32 %v2457_v7, %v2615_v58  ;;  %v1492_v25 = vmul.f32 %v1458_v45, %v1458_v45  ;;  %v1531_v61 = vsel %vm809_vm3, %v1490_v40, 0.0  ;;  %v1461_v11 = vsub.f32 %v2464_v32, %v2615_v58 }
 0x237   : > { %v1520_v9 = vadd.f32 %v1519_v57, %v1518_v14  ;;  %v1493_v42 = vmul.f32 %v1459_v53, %v1459_v53  ;;  %v1533_v44 = vsel %vm809_vm3, %v1491_v0, 0.0  ;;  %v1462_v52 = vsub.f32 %v2471_v37, %v2615_v58 }
 0x238   : > { %v1494_v47 = vmul.f32 %v1460_v2, %v1460_v2  ;;  %v1535_v56 = vsel %vm809_vm3, %v1492_v25, 0.0  ;;  %v1463_v7 = vsub.f32 %v2478_v28, %v2615_v58  ;;  %v1495_v48 = vmul.f32 %v1461_v11, %v1461_v11 }
 0x239   : > { %v1522_v12 = vadd.f32 %v1521_v8, %v1520_v9  ;;  %v1537_v34 = vsel %vm809_vm3, %v1493_v42, 0.0  ;;  %v1464_v32 = vsub.f32 %v2493_v4, %v2615_v58  ;;  %v1496_v54 = vmul.f32 %v1462_v52, %v1462_v52 }
 0x23a   : > { %v1539_v23 = vsel %vm809_vm3, %v1494_v47, 0.0  ;;  %v1465_v37 = vsub.f32 %v2509_v35, %v2615_v58  ;;  %v1497_v51 = vmul.f32 %v1463_v7, %v1463_v7  ;;  %v1541_v60 = vsel %vm809_vm3, %v1495_v48, 0.0 }
 0x23b   : > { %v1524_v43 = vadd.f32 %v1523_v38, %v1522_v12  ;;  %v1466_v28 = vsub.f32 %v2529_v3, %v2615_v58  ;;  %v1498_v5 = vmul.f32 %v1464_v32, %v1464_v32  ;;  %v1543_v19 = vsel %vm809_vm3, %v1496_v54, 0.0 }
 0x23c   : > { %v1499_v9 = vmul.f32 %v1465_v37, %v1465_v37  ;;  %v1545_v4 = vsel %vm809_vm3, %v1497_v51, 0.0  ;;  %v1501_v35 = vmul.f32 %v2619_v33, %v2619_v33  ;;  %v1470_v3 = vsub.f32 %v2505_v31, %v2615_v58 }
 0x23d   : > { %v1526_v20 = vadd.f32 %v1525_v18, %v1524_v43  ;;  %v1500_v10 = vmul.f32 %v1466_v28, %v1466_v28  ;;  %v1547_v8 = vsel %vm809_vm3, %v1498_v5, 0.0  ;;  %v1502_v38 = vmul.f32 %v2622_v39, %v2622_v39 }
 0x23e   : > { %v1549_v62 = vsel %vm809_vm3, %v1499_v9, 0.0  ;;  %v1471_v17 = vsub.f32 %v2525_v55, %v2615_v58  ;;  %v1503_v18 = vmul.f32 %v2625_v36, %v2625_v36  ;;  %v1553_v33 = vsel %vm809_vm3, %v1501_v35, 0.0 }
 0x23f   : > { %v1528_v49 = vadd.f32 %v1527_v1, %v1526_v20  ;;  %v1551_v43 = vsel %vm809_vm3, %v1500_v10, 0.0  ;;  %v1504_v45 = vmul.f32 %v1470_v3, %v1470_v3  ;;  %v1555_v40 = vsel %vm809_vm3, %v1502_v38, 0.0 }
 0x240   : > { %v1505_v31 = vmul.f32 %v1471_v17, %v1471_v17  ;;  %v1506_v53 = vmul.f32 %v2629_v26, %v2629_v26  ;;  %v1507_v58 = vmul.f32 %v2633_v27, %v2633_v27  ;;  %v1510_v11 = vmul.f32 %v2642_v63, %v2642_v63 }
 0x241   : > { %v1530_v50 = vadd.f32 %v1529_v59, %v1528_v49  ;;  %v1557_v49 = vsel %vm809_vm3, %v1503_v18, 0.0  ;;  %v1559_v0 = vsel %vm809_vm3, %v1504_v45, 0.0 }
 0x242   : > { %v1561_v36 = vsel %vm809_vm3, %v1505_v31, 0.0  ;;  %v1563_v2 = vsel %vm809_vm3, %v1506_v53, 0.0  ;;  %v1565_v26 = vsel %vm809_vm3, %v1507_v58, 0.0  ;;  %v1571_v52 = vsel %vm809_vm3, %v1510_v11, 0.0 }
 0x243   : > { %v1532_v41 = vadd.f32 %v1531_v61, %v1530_v50  ;;  %v1508_v50 = vmul.f32 %v2636_v16, %v2636_v16  ;;  %v1509_v61 = vmul.f32 %v2639_v22, %v2639_v22 }
 0x245   : > { %v1534_v46 = vadd.f32 %v1533_v44, %v1532_v41  ;;  %v1567_v27 = vsel %vm809_vm3, %v1508_v50, 0.0  ;;  %v1511_v44 = vmul.f32 %v2645_v15, %v2645_v15  ;;  %v1569_v16 = vsel %vm809_vm3, %v1509_v61, 0.0 }
 0x247   : > { %v1536_v21 = vadd.f32 %v1535_v56, %v1534_v46  ;;  %v1573_v22 = vsel %vm809_vm3, %v1511_v44, 0.0 }
 0x249   : > { %v1538_v30 = vadd.f32 %v1537_v34, %v1536_v21 }
 0x24b   : > { %v1540_v6 = vadd.f32 %v1539_v23, %v1538_v30 }
 0x24d   : > { %v1542_v14 = vadd.f32 %v1541_v60, %v1540_v6 }
 0x24f   : > { %v1544_v57 = vadd.f32 %v1543_v19, %v1542_v14 }
 0x251   : > { %v1546_v24 = vadd.f32 %v1545_v4, %v1544_v57 }
 0x253   : > { %v1548_v12 = vadd.f32 %v1547_v8, %v1546_v24 }
 0x255   : > { %v1550_v13 = vadd.f32 %v1549_v62, %v1548_v12 }
 0x257   : > { %v1552_v29 = vadd.f32 %v1551_v43, %v1550_v13 }
 0x259   : > { %v1554_v20 = vadd.f32 %v1553_v33, %v1552_v29 }
 0x25b   : > { %v1556_v1 = vadd.f32 %v1555_v40, %v1554_v20 }
 0x25d   : > { %v1558_v39 = vadd.f32 %v1557_v49, %v1556_v1 }
 0x25f   : > { %v1560_v55 = vadd.f32 %v1559_v0, %v1558_v39 }
 0x261   : > { %v1562_v59 = vadd.f32 %v1561_v36, %v1560_v55 }
 0x263   : > { %v1564_v25 = vadd.f32 %v1563_v2, %v1562_v59 }
 0x265   : > { %v1566_v41 = vadd.f32 %v1565_v26, %v1564_v25 }
 0x267   : > { %v1568_v42 = vadd.f32 %v1567_v27, %v1566_v41 }
 0x269   : > { %v1570_v46 = vadd.f32 %v1569_v16, %v1568_v42 }
 0x26b   : > { %v1572_v47 = vadd.f32 %v1571_v52, %v1570_v46 }
 0x26d   : > { %v1574_v56 = vadd.f32 %v1573_v22, %v1572_v47 }
 0x26f   : > { %v1575_v21 = vrot.slane %v1574_v56, 4 }
 0x271   : > { %v1576_v7 = vadd.f32 %v1575_v21, %v1574_v56 }
 0x273   : > { %v1577_v48 = vrot.slane %v1576_v7, 2 }
 0x275   : > { %v1578_v34 = vadd.f32 %v1577_v48, %v1576_v7 }
 0x277   : > { %v1579_v63 = vrot.slane %v1578_v34, 1 }
 0x279   : > { %v1580_v30 = vadd.f32 %v1579_v63, %v1578_v34 }
 0x27b   : > { %1581 = vst.msk [vmem:[%s268_s23] sm:$0x1] %vm1478_vm5, %v1580_v30 }
 0x27c PF: > { %s17_s21 = sadd.s32 1, %s1826_s21  }
 0x27d   : > { %p14_p4 = scmp.ge.s32.totalorder %s17_s21, 4  }
 0x27f   :  { %16 = sbr.rel (!%p14_p4) target bundleno = 1 (0x1), region = 94 }

// kernel: encoding_block_forward.4
= control target key start
LH: loop header
LB: loop body
LE: loop exit
PB: predicated region body
PF: predicated region fallthrough
CT: control target
= control target key end

     0   :  { %s1966_s21 = smov 0   ;;  %s2932_s0 = inlined_call_operand.vmem [shape: f32[2,16,16,8], index: 0, kind: input, shape index: {}]   ;;  %s2933_s1 = inlined_call_operand.vmem [shape: f32[1,8], index: 1, kind: input, shape index: {}]   ;;  %s2934_s2 = inlined_call_operand.vmem [shape: f32[1,8], index: 2, kind: input, shape index: {}]   ;;  %s2935_s3 = inlined_call_operand.vmem [shape: f32[3,24,8], index: 3, kind: input, shape index: {}]   ;;  %s2936_s4 = inlined_call_operand.vmem [shape: f32[2,256,8], index: 4, kind: output, shape index: {0}]   ;;  %s2937_s5 = inlined_call_operand.vmem [shape: f32[2,1,8], index: 5, kind: output, shape index: {1}]   ;;  %s2938_s6 = inlined_call_operand.vmem [shape: f32[2,1,8], index: 6, kind: output, shape index: {2}]  }
   0x1 LB: > { %s1783_s22 = sadd.s32 4294967295, %s1926_s21   ;;  %p1787_p0 = scmp.ge.s32.totalorder %s1926_s21, 1  ;;  %s1926_s21 = sphi %s1966_s21, %s17_s21  }
   0x2   : > { %p217_p1 = scmp.lt.s32.totalorder %s1926_s21, 3 }
   0x4   : > { %p218_p2 = pnand %p1787_p0, %p217_p1 }
   0x5   : > { %p253_p3 = scmp.lt.s32.totalorder (!%p218_p2), %s1783_s22, 1  ;;  %s1929_s7 = smov (!%p218_p2), 8  }
   0x6   : > { %221 = sbr.rel (%p218_p2) target bundleno = 636 (0x27c), region = 36  ;;  %s1930_s8 = smov (!%p218_p2), 16  }
   0xb   : > { %vm405_vm0 = vcmask 64512   ;;  %v1928_v0 = vmov 0.0   ;;  %s2940_s22 = smov (!%p253_p3, %s1783_s22), 1  ;;  %v1985_v1 = vld [vmem:[%s2933_s1] ss:$0 sm:$0xff]  ;;  %vm416_vm1 = vcmask 57344  }
   0xc   : > { %407 = vst.msk [vmem:[#allocation2 + $0x8] sm:$0xff] %vm405_vm0, %v1928_v0  ;;  %s1896_s25 = sshll.u32 %s2940_s22, 8  ;;  %v2002_v2 = vld [vmem:[%s2934_s2] ss:$0 sm:$0xff]  ;;  %vm913_vm2 = vcmask 130048   ;;  %vm957_vm3 = vcmask 195584   ;;  %s265_s10 = scalar_lea.vmem %s2937_s5, %s2940_s22 }
   0xd   : > { %406 = vst.msk [vmem:[#allocation2] sm:$0xff] %vm405_vm0, %v1928_v0  ;;  %s1997_s28 = scalar_lea.vmem %s2932_s0, %s1896_s25  ;;  %s268_s13 = scalar_lea.vmem %s2938_s6, %s2940_s22 }
   0xe   : > { %408 = vst.msk [vmem:[#allocation2 + $0x10] sm:$0xff] %vm405_vm0, %v1928_v0  ;;  %v271_v3 = vld [vmem:[%s1997_s28 + $0x10] sm:$0xff]  ;;  %v269_v4 = vld [vmem:[%s1997_s28] sm:$0xff]  ;;  %v272_v5 = vld [vmem:[%s1997_s28 + $0x18] sm:$0xff] }
   0xf   : > { %409 = vst.msk [vmem:[#allocation2 + $0x18] sm:$0xff] %vm405_vm0, %v1928_v0  ;;  %v307_v6 = vmul.f32 %v1985_v1, %v271_v3  ;;  %v305_v7 = vmul.f32 %v1985_v1, %v269_v4  ;;  %v308_v8 = vmul.f32 %v1985_v1, %v272_v5  ;;  %v270_v22 = vld [vmem:[%s1997_s28 + $0x8] sm:$0xff]  ;;  %v273_v23 = vld [vmem:[%s1997_s28 + $0x20] sm:$0xff]  ;;  %v295_v36 = vld [vmem:[%s1997_s28 + $0xd0] sm:$0xff] }
  0x10   : > { %411 = vst.msk [vmem:[#allocation2 + $0x220] sm:$0xff] %vm405_vm0, %v1928_v0  ;;  %v293_v24 = vld [vmem:[%s1997_s28 + $0xc0] sm:$0xff]  ;;  %v306_v25 = vmul.f32 %v1985_v1, %v270_v22  ;;  %v294_v26 = vld [vmem:[%s1997_s28 + $0xc8] sm:$0xff]  ;;  %v309_v27 = vmul.f32 %v1985_v1, %v273_v23  ;;  %v275_v37 = vld [vmem:[%s1997_s28 + $0x30] sm:$0xff]  ;;  %v331_v40 = vmul.f32 %v1985_v1, %v295_v36 }
  0x11   : > { %412 = vst.msk [vmem:[#allocation2 + $0x228] sm:$0xff] %vm405_vm0, %v1928_v0  ;;  %v343_v10 = vadd.f32 %v2002_v2, %v307_v6  ;;  %v341_v11 = vadd.f32 %v2002_v2, %v305_v7  ;;  %v344_v12 = vadd.f32 %v2002_v2, %v308_v8  ;;  %v274_v28 = vld [vmem:[%s1997_s28 + $0x28] sm:$0xff]  ;;  %v329_v30 = vmul.f32 %v1985_v1, %v293_v24  ;;  %v276_v38 = vld [vmem:[%s1997_s28 + $0x38] sm:$0xff]  ;;  %v277_v63 = vld [vmem:[%s1997_s28 + $0x40] sm:$0xff] }
  0x12   : > { %413 = vst.msk [vmem:[#allocation2 + $0x230] sm:$0xff] %vm405_vm0, %v1928_v0  ;;  %v330_v32 = vmul.f32 %v1985_v1, %v294_v26  ;;  %v342_v33 = vadd.f32 %v2002_v2, %v306_v25  ;;  %v310_v34 = vmul.f32 %v1985_v1, %v274_v28  ;;  %v345_v35 = vadd.f32 %v2002_v2, %v309_v27  ;;  %v296_v54 = vld [vmem:[%s1997_s28 + $0xd8] sm:$0xff]  ;;  %v278_v8 = vld [vmem:[%s1997_s28 + $0x48] sm:$0xff]  ;;  %v279_v26 = vld [vmem:[%s1997_s28 + $0x50] sm:$0xff] }
  0x13   : > { %v517_v9 = vld [vmem:[#allocation2 + $0x8] sm:$0xff]  ;;  %414 = vst.msk [vmem:[#allocation2 + $0x238] sm:$0xff] %vm405_vm0, %v1928_v0  ;;  %v375_v14 = vmax.f32 %v343_v10, 0.0  ;;  %v373_v15 = vmax.f32 %v341_v11, 0.0  ;;  %v376_v16 = vmax.f32 %v344_v12, 0.0  ;;  %v365_v39 = vadd.f32 %v2002_v2, %v329_v30  ;;  %v299_v28 = vld [vmem:[%s1997_s28 + $0xf0] sm:$0xff] }
  0x14   : > { %625 = vrot.lane.b32.xlu1 %v517_v9, %s1929_s7  ;;  %434 = vst.msk [vmem:[#allocation2 + $0x58] sm:$0x1] %vm416_vm1, %v1928_v0  ;;  %v311_v41 = vmul.f32 %v1985_v1, %v275_v37  ;;  %v366_v42 = vadd.f32 %v2002_v2, %v330_v32  ;;  %v312_v43 = vmul.f32 %v1985_v1, %v276_v38  ;;  %v374_v44 = vmax.f32 %v342_v33, 0.0  ;;  %v297_v9 = vld [vmem:[%s1997_s28 + $0xe0] sm:$0xff]  ;;  %v298_v10 = vld [vmem:[%s1997_s28 + $0xe8] sm:$0xff]  ;;  %v300_v37 = vld [vmem:[%s1997_s28 + $0xf8] sm:$0xff] }
  0x15   : > { %417 = vst.msk [vmem:[#allocation2 + $0x27] sm:$0x1] %vm416_vm1, %v1928_v0  ;;  %v553_v13 = vld [vmem:[#allocation2 + $0x9] sm:$0xff]  ;;  %v346_v45 = vadd.f32 %v2002_v2, %v310_v34  ;;  %v377_v46 = vmax.f32 %v345_v35, 0.0  ;;  %v367_v47 = vadd.f32 %v2002_v2, %v331_v40  ;;  %v397_v48 = vmax.f32 %v365_v39, 0.0  ;;  %v280_v38 = vld [vmem:[%s1997_s28 + $0x58] sm:$0xff] }
  0x16   : > { %418 = vst.msk [vmem:[#allocation2 + $0x47] sm:$0x1] %vm416_vm1, %v1928_v0  ;;  %769 = vrot.lane.b32.xlu2 %v553_v13, %s1930_s8  ;;  %v518_v17 = vld [vmem:[#allocation2 + $0x10] sm:$0xff]  ;;  %v347_v49 = vadd.f32 %v2002_v2, %v311_v41  ;;  %v398_v50 = vmax.f32 %v366_v42, 0.0  ;;  %v348_v51 = vadd.f32 %v2002_v2, %v312_v43  ;;  %v332_v56 = vmul.f32 %v1985_v1, %v296_v54  ;;  %v282_v54 = vld [vmem:[%s1997_s28 + $0x68] sm:$0xff] }
  0x17   : > { %419 = vst.msk [vmem:[#allocation2 + $0x67] sm:$0x1] %vm416_vm1, %v1928_v0  ;;  %v554_v31 = vld [vmem:[#allocation2 + $0x11] sm:$0xff]  ;;  %v378_v52 = vmax.f32 %v346_v45, 0.0  ;;  %v399_v53 = vmax.f32 %v367_v47, 0.0  ;;  %v314_v11 = vmul.f32 %v1985_v1, %v278_v8  ;;  %v333_v12 = vmul.f32 %v1985_v1, %v297_v9 }
  0x18   : > { %451 = vst.msk [vmem:[#allocation2 + $0x48] sm:$0xff] %vm405_vm0, %v375_v14  ;;  %v379_v55 = vmax.f32 %v347_v49, 0.0  ;;  %v380_v57 = vmax.f32 %v348_v51, 0.0  ;;  %v368_v58 = vadd.f32 %v2002_v2, %v332_v56  ;;  %v334_v13 = vmul.f32 %v1985_v1, %v298_v10  ;;  %v291_v51 = vld [vmem:[%s1997_s28 + $0xb0] sm:$0xff] }
  0x19   : > { %449 = vst.msk [vmem:[#allocation2 + $0x28] sm:$0xff] %vm405_vm0, %v373_v15  ;;  %v350_v14 = vadd.f32 %v2002_v2, %v314_v11  ;;  %v369_v15 = vadd.f32 %v2002_v2, %v333_v12  ;;  %v315_v27 = vmul.f32 %v1985_v1, %v279_v26  ;;  %v336_v39 = vmul.f32 %v1985_v1, %v300_v37 }
  0x1a   : > { %452 = vst.msk [vmem:[#allocation2 + $0x50] sm:$0xff] %vm405_vm0, %v376_v16  ;;  %v400_v59 = vmax.f32 %v368_v58, 0.0  ;;  %v370_v16 = vadd.f32 %v2002_v2, %v334_v13  ;;  %v316_v40 = vmul.f32 %v1985_v1, %v280_v38  ;;  %v318_v56 = vmul.f32 %v1985_v1, %v282_v54 }
  0x1b   : > { %420 = vst.msk [vmem:[#allocation2 + $0x87] sm:$0x1] %vm416_vm1, %v1928_v0  ;;  %v351_v30 = vadd.f32 %v2002_v2, %v315_v27  ;;  %v372_v41 = vadd.f32 %v2002_v2, %v336_v39 }
  0x1c   : > { %421 = vst.msk [vmem:[#allocation2 + $0xa7] sm:$0x1] %vm416_vm1, %v1928_v0  ;;  %v352_v42 = vadd.f32 %v2002_v2, %v316_v40  ;;  %v285_v40 = vld [vmem:[%s1997_s28 + $0x80] sm:$0xff] }
  0x1d   : > { %422 = vst.msk [vmem:[#allocation2 + $0xc7] sm:$0x1] %vm416_vm1, %v1928_v0  ;;  %v383_v34 = vmax.f32 %v351_v30, 0.0  ;;  %v404_v45 = vmax.f32 %v372_v41, 0.0  ;;  %v286_v41 = vld [vmem:[%s1997_s28 + $0x88] sm:$0xff] }
  0x1e   : > { %423 = vst.msk [vmem:[#allocation2 + $0xe7] sm:$0x1] %vm416_vm1, %v1928_v0  ;;  %627 = vrot.lane.b32.xlu2 %v518_v17, %s1929_s7 }
  0x1f   : > { %v521_v18 = vld [vmem:[#allocation2 + $0x48] sm:$0xff]  ;;  %424 = vst.msk [vmem:[#allocation2 + $0x107] sm:$0x1] %vm416_vm1, %v1928_v0 }
  0x20   : > { %633 = vrot.lane.b32.xlu0 %v521_v18, %s1929_s7  ;;  %v519_v19 = vld [vmem:[#allocation2 + $0x28] sm:$0xff]  ;;  %425 = vst.msk [vmem:[#allocation2 + $0x127] sm:$0x1] %vm416_vm1, %v1928_v0 }
  0x21   : > { %629 = vrot.lane.b32.xlu1 %v519_v19, %s1929_s7  ;;  %426 = vst.msk [vmem:[#allocation2 + $0x147] sm:$0x1] %vm416_vm1, %v1928_v0  ;;  %v557_v20 = vld [vmem:[#allocation2 + $0x49] sm:$0xff]  ;;  %v558_v21 = vld [vmem:[#allocation2 + $0x51] sm:$0xff]  ;;  %v382_v19 = vmax.f32 %v350_v14, 0.0  ;;  %v1793_v14 = vld [vmem:[%s2935_s3 + $0x20] sm:$0xff] }
  0x22   : > { %427 = vst.msk [vmem:[#allocation2 + $0x167] sm:$0x1] %vm416_vm1, %v1928_v0  ;;  %v522_v29 = vld [vmem:[#allocation2 + $0x50] sm:$0xff]  ;;  %v485_v54 = vld [vmem:[#allocation2 + $0x47] sm:$0xff] }
  0x23   : > { %428 = vst.msk [vmem:[#allocation2 + $0x187] sm:$0x1] %vm416_vm1, %v1928_v0 }
  0x24   : > { %429 = vst.msk [vmem:[#allocation2 + $0x1a7] sm:$0x1] %vm416_vm1, %v1928_v0 }
  0x25   : > { %430 = vst.msk [vmem:[#allocation2 + $0x1c7] sm:$0x1] %vm416_vm1, %v1928_v0 }
  0x26   : > { %431 = vst.msk [vmem:[#allocation2 + $0x1e7] sm:$0x1] %vm416_vm1, %v1928_v0 }
  0x27   : > { %432 = vst.msk [vmem:[#allocation2 + $0x207] sm:$0x1] %vm416_vm1, %v1928_v0 }
  0x28   : > { %777 = vrot.lane.b32.xlu0 %v557_v20, %s1930_s8  ;;  %433 = vst.msk [vmem:[#allocation2 + $0x38] sm:$0x1] %vm416_vm1, %v1928_v0  ;;  %v401_v20 = vmax.f32 %v369_v15, 0.0  ;;  %v951_v15 = vld [vmem:[%s2935_s3 + $0x8] sm:$0xff] }
  0x29   : > { %779 = vrot.lane.b32.xlu1 %v558_v21, %s1930_s8  ;;  %435 = vst.msk [vmem:[#allocation2 + $0x78] sm:$0x1] %vm416_vm1, %v1928_v0  ;;  %v402_v21 = vmax.f32 %v370_v16, 0.0  ;;  %v2225_v16 = vld [vmem:[%s2935_s3 + $0x38] sm:$0xff] }
  0x2a   : > { %436 = vst.msk [vmem:[#allocation2 + $0x98] sm:$0x1] %vm416_vm1, %v1928_v0 }
  0x2b   : > { %437 = vst.msk [vmem:[#allocation2 + $0xb8] sm:$0x1] %vm416_vm1, %v1928_v0 }
  0x2c   : > { %438 = vst.msk [vmem:[#allocation2 + $0xd8] sm:$0x1] %vm416_vm1, %v1928_v0 }
  0x2d   : > { %439 = vst.msk [vmem:[#allocation2 + $0xf8] sm:$0x1] %vm416_vm1, %v1928_v0 }
  0x2e   : > { %440 = vst.msk [vmem:[#allocation2 + $0x118] sm:$0x1] %vm416_vm1, %v1928_v0 }
  0x2f   : > { %441 = vst.msk [vmem:[#allocation2 + $0x138] sm:$0x1] %vm416_vm1, %v1928_v0 }
  0x30   : > { %442 = vst.msk [vmem:[#allocation2 + $0x158] sm:$0x1] %vm416_vm1, %v1928_v0  ;;  %635 = vrot.lane.b32.xlu0 %v522_v29, %s1929_s7  ;;  %v335_v29 = vmul.f32 %v1985_v1, %v299_v28 }
  0x31   : > { %443 = vst.msk [vmem:[#allocation2 + $0x178] sm:$0x1] %vm416_vm1, %v1928_v0  ;;  %771 = vrot.lane.b32.xlu1 %v554_v31, %s1930_s8 }
  0x32   : > { %444 = vst.msk [vmem:[#allocation2 + $0x198] sm:$0x1] %vm416_vm1, %v1928_v0  ;;  %v371_v33 = vadd.f32 %v2002_v2, %v335_v29 }
  0x33   : > { %445 = vst.msk [vmem:[#allocation2 + $0x1b8] sm:$0x1] %vm416_vm1, %v1928_v0 }
  0x34   : > { %446 = vst.msk [vmem:[#allocation2 + $0x1d8] sm:$0x1] %vm416_vm1, %v1928_v0  ;;  %v403_v36 = vmax.f32 %v371_v33, 0.0 }
  0x35   : > { %447 = vst.msk [vmem:[#allocation2 + $0x1f8] sm:$0x1] %vm416_vm1, %v1928_v0 }
  0x36   : > { %448 = vst.msk [vmem:[#allocation2 + $0x218] sm:$0x1] %vm416_vm1, %v1928_v0  ;;  %v313_v0 = vmul.f32 %v1985_v1, %v277_v63 }
  0x37   : > { %450 = vst.msk [vmem:[#allocation2 + $0x30] sm:$0xff] %vm405_vm0, %v374_v44 }
  0x38   : > { %453 = vst.msk [vmem:[#allocation2 + $0x68] sm:$0xff] %vm405_vm0, %v377_v46  ;;  %v349_v3 = vadd.f32 %v2002_v2, %v313_v0  ;;  %v384_v46 = vmax.f32 %v352_v42, 0.0 }
  0x39   : > { %473 = vst.msk [vmem:[#allocation2 + $0x1a8] sm:$0xff] %vm405_vm0, %v397_v48 }
  0x3a   : > { %474 = vst.msk [vmem:[#allocation2 + $0x1b0] sm:$0xff] %vm405_vm0, %v398_v50  ;;  %v381_v6 = vmax.f32 %v349_v3, 0.0 }
  0x3b   : > { %454 = vst.msk [vmem:[#allocation2 + $0x70] sm:$0xff] %vm405_vm0, %v378_v52  ;;  %v281_v52 = vld [vmem:[%s1997_s28 + $0x60] sm:$0xff] }
  0x3c   : > { %475 = vst.msk [vmem:[#allocation2 + $0x1c8] sm:$0xff] %vm405_vm0, %v399_v53  ;;  %v327_v53 = vmul.f32 %v1985_v1, %v291_v51 }
  0x3d   : > { %455 = vst.msk [vmem:[#allocation2 + $0x88] sm:$0xff] %vm405_vm0, %v379_v55  ;;  %v317_v55 = vmul.f32 %v1985_v1, %v281_v52 }
  0x3e   : > { %v520_v60 = vld [vmem:[#allocation2 + $0x30] sm:$0xff]  ;;  %456 = vst.msk [vmem:[#allocation2 + $0x90] sm:$0xff] %vm405_vm0, %v380_v57  ;;  %v363_v57 = vadd.f32 %v2002_v2, %v327_v53 }
  0x3f   : > { %v555_v61 = vld [vmem:[#allocation2 + $0x29] sm:$0xff]  ;;  %631 = vrot.lane.b32.xlu0 %v520_v60, %s1929_s7  ;;  %476 = vst.msk [vmem:[#allocation2 + $0x1d0] sm:$0xff] %vm405_vm0, %v400_v59  ;;  %v556_v5 = vld [vmem:[#allocation2 + $0x31] sm:$0xff]  ;;  %v353_v58 = vadd.f32 %v2002_v2, %v317_v55 }
  0x40   : > { %773 = vrot.lane.b32.xlu2 %v555_v61, %s1930_s8  ;;  %v543_v62 = vld [vmem:[#allocation2 + $0x1a8] sm:$0xff]  ;;  %457 = vst.msk [vmem:[#allocation2 + $0xa8] sm:$0xff] %vm405_vm0, %v381_v6  ;;  %v354_v61 = vadd.f32 %v2002_v2, %v318_v56  ;;  %v2207_v6 = vld [vmem:[%s2935_s3 + $0x40] sm:$0xff] }
  0x41   : > { %677 = vrot.lane.b32.xlu1 %v543_v62, %s1929_s7  ;;  %v523_v4 = vld [vmem:[#allocation2 + $0x68] sm:$0xff]  ;;  %v580_v22 = vld [vmem:[#allocation2 + $0x1b1] sm:$0xff]  ;;  %458 = vst.msk [vmem:[#allocation2 + $0xb0] sm:$0xff] %vm405_vm0, %v382_v19  ;;  %v395_v62 = vmax.f32 %v363_v57, 0.0  ;;  %v385_v63 = vmax.f32 %v353_v58, 0.0  ;;  %1309 = vmatpush.msra.mxu2 %v2207_v6 }
  0x42   : > { %v524_v7 = vld [vmem:[#allocation2 + $0x70] sm:$0xff]  ;;  %477 = vst.msk [vmem:[#allocation2 + $0x1e8] sm:$0xff] %vm405_vm0, %v401_v20  ;;  %v386_v3 = vmax.f32 %v354_v61, 0.0 }
  0x43   : > { %v579_v17 = vld [vmem:[#allocation2 + $0x1a9] sm:$0xff]  ;;  %478 = vst.msk [vmem:[#allocation2 + $0x1f0] sm:$0xff] %vm405_vm0, %v402_v21  ;;  %v560_v23 = vld [vmem:[#allocation2 + $0x71] sm:$0xff]  ;;  %1310 = vmatpush.msra.mxu2 %v2225_v16 }
  0x44   : > { %v559_v18 = vld [vmem:[#allocation2 + $0x69] sm:$0xff]  ;;  %459 = vst.msk [vmem:[#allocation2 + $0xc8] sm:$0xff] %vm405_vm0, %v383_v34 }
  0x45   : > { %v544_v24 = vld [vmem:[#allocation2 + $0x1b0] sm:$0xff]  ;;  %v545_v31 = vld [vmem:[#allocation2 + $0x1c8] sm:$0xff]  ;;  %479 = vst.msk [vmem:[#allocation2 + $0x208] sm:$0xff] %vm405_vm0, %v403_v36 }
  0x46   : > { %v561_v25 = vld [vmem:[#allocation2 + $0x89] sm:$0xff]  ;;  %480 = vst.msk [vmem:[#allocation2 + $0x210] sm:$0xff] %vm405_vm0, %v404_v45  ;;  %v582_v48 = vld [vmem:[#allocation2 + $0x1d1] sm:$0xff] }
  0x47   : > { %637 = vrot.lane.b32.xlu0 %v523_v4, %s1929_s7  ;;  %v525_v32 = vld [vmem:[#allocation2 + $0x88] sm:$0xff]  ;;  %v546_v35 = vld [vmem:[#allocation2 + $0x1d0] sm:$0xff]  ;;  %460 = vst.msk [vmem:[#allocation2 + $0xd0] sm:$0xff] %vm405_vm0, %v384_v46 }
  0x48   : > { %775 = vrot.lane.b32.xlu2 %v556_v5, %s1930_s8  ;;  %v526_v43 = vld [vmem:[#allocation2 + $0x90] sm:$0xff]  ;;  %v527_v47 = vld [vmem:[#allocation2 + $0xa8] sm:$0xff]  ;;  %471 = vst.msk [vmem:[#allocation2 + $0x188] sm:$0xff] %vm405_vm0, %v395_v62 }
  0x49   : > { %639 = vrot.lane.b32.xlu1 %v524_v7, %s1929_s7  ;;  %v581_v44 = vld [vmem:[#allocation2 + $0x1c9] sm:$0xff]  ;;  %v562_v49 = vld [vmem:[#allocation2 + $0x91] sm:$0xff]  ;;  %461 = vst.msk [vmem:[#allocation2 + $0xe8] sm:$0xff] %vm405_vm0, %v385_v63 }
  0x4a   : > { %v583_v50 = vld [vmem:[#allocation2 + $0x1e9] sm:$0xff]  ;;  %v564_v0 = vld [vmem:[#allocation2 + $0xb1] sm:$0xff]  ;;  %462 = vst.msk [vmem:[#allocation2 + $0xf0] sm:$0xff] %vm405_vm0, %v386_v3 }
  0x4b   : > { %v563_v59 = vld [vmem:[#allocation2 + $0xa9] sm:$0xff]  ;;  %v292_v7 = vld [vmem:[%s1997_s28 + $0xb8] sm:$0xff] }
  0x4c   : > { %v547_v60 = vld [vmem:[#allocation2 + $0x1e8] sm:$0xff]  ;;  %v952_v5 = vld [vmem:[%s2935_s3 + $0x10] sm:$0xff]  ;;  %v328_v8 = vmul.f32 %v1985_v1, %v292_v7 }
  0x4d   : > { %v1794_v4 = vld [vmem:[%s2935_s3 + $0x28] sm:$0xff]  ;;  %1186 = vmatpush.msra.mxu1 %v952_v5  ;;  %v548_v9 = vld [vmem:[#allocation2 + $0x1f0] sm:$0xff] }
  0x4e   : > { %1067 = vmatpush.msra.mxu0 %v1794_v4  ;;  %1898 = vmatpush.msra.mxu3 %v1794_v4  ;;  %v528_v10 = vld [vmem:[#allocation2 + $0xb0] sm:$0xff]  ;;  %v364_v11 = vadd.f32 %v2002_v2, %v328_v8  ;;  %v549_v12 = vld [vmem:[#allocation2 + $0x208] sm:$0xff] }
  0x4f   : > { %821 = vrot.lane.b32.xlu0 %v579_v17, %s1930_s8  ;;  %1187 = vmatpush.msra.mxu1 %v951_v15  ;;  %v1792_v17 = vld [vmem:[%s2935_s3 + $0x18] sm:$0xff]  ;;  %v2239_v19 = vld [vmem:[%s2935_s3 + $0x30] sm:$0xff]  ;;  %v541_v62 = vld [vmem:[#allocation2 + $0x188] sm:$0xff] }
  0x50   : > { %781 = vrot.lane.b32.xlu2 %v559_v18, %s1930_s8  ;;  %v396_v13 = vmax.f32 %v364_v11, 0.0  ;;  %1068 = vmatpush.msra.mxu0 %v1793_v14  ;;  %v950_v18 = vld [vmem:[%s2935_s3] sm:$0xff]  ;;  %v283_v20 = vld [vmem:[%s1997_s28 + $0x70] sm:$0xff]  ;;  %v531_v63 = vld [vmem:[#allocation2 + $0xe8] sm:$0xff] }
  0x51   : > { %823 = vrot.lane.b32.xlu1 %v580_v22, %s1930_s8  ;;  %1188 = vmatpush.msra.mxu1 %v950_v18  ;;  %v319_v21 = vmul.f32 %v1985_v1, %v283_v20  ;;  %v529_v22 = vld [vmem:[#allocation2 + $0xc8] sm:$0xff]  ;;  %v530_v27 = vld [vmem:[#allocation2 + $0xd0] sm:$0xff] }
  0x52   : > { %472 = vst.msk [vmem:[#allocation2 + $0x190] sm:$0xff] %vm405_vm0, %v396_v13  ;;  %1069 = vmatpush.msra.mxu0 %v1792_v17  ;;  %1311 = vmatpush.msra.mxu2 %v2239_v19  ;;  %v565_v36 = vld [vmem:[#allocation2 + $0xc9] sm:$0xff]  ;;  %v586_v38 = vld [vmem:[#allocation2 + $0x211] sm:$0xff] }
  0x53   : > { %1899 = vmatpush.msra.mxu3 %v1793_v14  ;;  %v355_v26 = vadd.f32 %v2002_v2, %v319_v21  ;;  %v566_v46 = vld [vmem:[#allocation2 + $0xd1] sm:$0xff]  ;;  %v567_v51 = vld [vmem:[#allocation2 + $0xe9] sm:$0xff] }
  0x54   : > { %v486_v4 = vld [vmem:[#allocation2 + $0x4f] sm:$0xff] }
  0x55   : > { %1900 = vmatpush.msra.mxu3 %v1792_v17  ;;  %v387_v30 = vmax.f32 %v355_v26, 0.0  ;;  %v532_v17 = vld [vmem:[#allocation2 + $0xf0] sm:$0xff] }
  0x57   : > { %783 = vrot.lane.b32.xlu0 %v560_v23, %s1930_s8  ;;  %v481_v23 = vld [vmem:[#allocation2 + $0x7] sm:$0xff]  ;;  %1901 = vmatpush.msrb.mxu3 %v952_v5  ;;  %463 = vst.msk [vmem:[#allocation2 + $0x108] sm:$0xff] %vm405_vm0, %v387_v30  ;;  %v287_v5 = vld [vmem:[%s1997_s28 + $0x90] sm:$0xff] }
  0x58   : > { %679 = vrot.lane.b32.xlu2 %v544_v24, %s1929_s7  ;;  %v584_v24 = vld [vmem:[#allocation2 + $0x1f1] sm:$0xff] }
  0x59   : > { %785 = vrot.lane.b32.xlu1 %v561_v25, %s1930_s8  ;;  %1902 = vmatpush.msrb.mxu3 %v951_v15  ;;  %v542_v3 = vld [vmem:[#allocation2 + $0x190] sm:$0xff] }
  0x5a   : > { %v577_v21 = vld [vmem:[#allocation2 + $0x189] sm:$0xff] }
  0x5b   : > { %1903 = vmatpush.msrb.mxu3 %v950_v18  ;;  %v484_v30 = vld [vmem:[#allocation2 + $0x2f] sm:$0xff] }
  0x5f   : > { %681 = vrot.lane.b32.xlu0 %v545_v31, %s1929_s7 }
  0x60   : > { %641 = vrot.lane.b32.xlu2 %v525_v32, %s1929_s7  ;;  %v284_v32 = vld [vmem:[%s1997_s28 + $0x78] sm:$0xff] }
  0x61   : > { %683 = vrot.lane.b32.xlu1 %v546_v35, %s1929_s7  ;;  %v320_v33 = vmul.f32 %v1985_v1, %v284_v32  ;;  %v585_v35 = vld [vmem:[#allocation2 + $0x209] sm:$0xff] }
  0x63   : > { %v356_v34 = vadd.f32 %v2002_v2, %v320_v33 }
  0x65   : > { %v388_v37 = vmax.f32 %v356_v34, 0.0 }
  0x67   : > { %643 = vrot.lane.b32.xlu0 %v526_v43, %s1929_s7  ;;  %464 = vst.msk [vmem:[#allocation2 + $0x110] sm:$0xff] %vm405_vm0, %v388_v37  ;;  %v321_v43 = vmul.f32 %v1985_v1, %v285_v40 }
  0x68   : > { %825 = vrot.lane.b32.xlu2 %v581_v44, %s1930_s8  ;;  %v322_v44 = vmul.f32 %v1985_v1, %v286_v41 }
  0x69   : > { %645 = vrot.lane.b32.xlu1 %v527_v47, %s1929_s7  ;;  %v483_v47 = vld [vmem:[#allocation2 + $0x27] sm:$0xff] }
  0x6e   : > { %v569_v40 = vld [vmem:[#allocation2 + $0x109] sm:$0xff] }
  0x6f   : > { %827 = vrot.lane.b32.xlu0 %v582_v48, %s1930_s8  ;;  %v550_v48 = vld [vmem:[#allocation2 + $0x210] sm:$0xff] }
  0x70   : > { %787 = vrot.lane.b32.xlu2 %v562_v49, %s1930_s8  ;;  %v770_v25 = vpop.permute.xlu2 %769  ;;  %v357_v49 = vadd.f32 %v2002_v2, %v321_v43  ;;  %v487_v43 = vld [vmem:[#allocation2 + $0x67] sm:$0xff] }
  0x71   : > { %829 = vrot.lane.b32.xlu1 %v583_v50, %s1930_s8  ;;  %v358_v50 = vadd.f32 %v2002_v2, %v322_v44  ;;  %v290_v44 = vld [vmem:[%s1997_s28 + $0xa8] sm:$0xff] }
  0x72   : > { %v389_v52 = vmax.f32 %v357_v49, 0.0 }
  0x73   : > { %v390_v53 = vmax.f32 %v358_v50, 0.0 }
  0x74   : > { %465 = vst.msk [vmem:[#allocation2 + $0x128] sm:$0xff] %vm405_vm0, %v389_v52  ;;  %v507_v52 = vld [vmem:[#allocation2 + $0x1a7] sm:$0xff] }
  0x75   : > { %466 = vst.msk [vmem:[#allocation2 + $0x130] sm:$0xff] %vm405_vm0, %v390_v53 }
  0x77   : > { %789 = vrot.lane.b32.xlu0 %v563_v59, %s1930_s8 }
  0x78   : > { %685 = vrot.lane.b32.xlu2 %v547_v60, %s1929_s7  ;;  %v628_v39 = vpop.permute.xlu2 %627 }
  0x79   : > { %791 = vrot.lane.b32.xlu1 %v564_v0, %s1930_s8  ;;  %v482_v0 = vld [vmem:[#allocation2 + $0xf] sm:$0xff] }
  0x7a   : > { %v878_v7 = vsel %vm405_vm0, %v482_v0, %v628_v39  ;;  %v534_v39 = vld [vmem:[#allocation2 + $0x110] sm:$0xff] }
  0x7c   : > { %v571_v53 = vld [vmem:[#allocation2 + $0x129] sm:$0xff] }
  0x7f   : > { %687 = vrot.lane.b32.xlu0 %v548_v9, %s1929_s7  ;;  %v323_v9 = vmul.f32 %v1985_v1, %v287_v5 }
  0x80   : > { %647 = vrot.lane.b32.xlu2 %v528_v10, %s1929_s7  ;;  %v288_v10 = vld [vmem:[%s1997_s28 + $0x98] sm:$0xff] }
  0x81   : > { %689 = vrot.lane.b32.xlu1 %v549_v12, %s1929_s7  ;;  %v324_v12 = vmul.f32 %v1985_v1, %v288_v10  ;;  %v359_v15 = vadd.f32 %v2002_v2, %v323_v9 }
  0x86   : > { %v626_v28 = vpop.permute.xlu1 %625 }
  0x87   : > { %649 = vrot.lane.b32.xlu0 %v529_v22, %s1929_s7  ;;  %v877_v29 = vsel %vm405_vm0, %v481_v23, %v626_v28  ;;  %v360_v22 = vadd.f32 %v2002_v2, %v324_v12  ;;  %v391_v23 = vmax.f32 %v359_v15, 0.0  ;;  %v568_v28 = vld [vmem:[#allocation2 + $0xf1] sm:$0xff] }
  0x88   : > { %831 = vrot.lane.b32.xlu2 %v584_v24, %s1930_s8  ;;  %v914_v31 = vsel %vm913_vm2, %v877_v29, %v770_v25  ;;  %v533_v24 = vld [vmem:[#allocation2 + $0x108] sm:$0xff]  ;;  %v570_v29 = vld [vmem:[#allocation2 + $0x111] sm:$0xff] }
  0x89   : > { %651 = vrot.lane.b32.xlu1 %v530_v27, %s1929_s7  ;;  %1827 = vmatmul.msk.f32.vlgmr.msra.gmra.mxu1 %vm957_vm3, %v914_v31  ;;  %v392_v25 = vmax.f32 %v360_v22, 0.0  ;;  %467 = vst.msk [vmem:[#allocation2 + $0x148] sm:$0xff] %vm405_vm0, %v391_v23  ;;  %v578_v27 = vld [vmem:[#allocation2 + $0x191] sm:$0xff]  ;;  %v289_v31 = vld [vmem:[%s1997_s28 + $0xa0] sm:$0xff] }
  0x8a   : > { %v325_v34 = vmul.f32 %v1985_v1, %v289_v31 }
  0x8b   : > { %468 = vst.msk [vmem:[#allocation2 + $0x150] sm:$0xff] %vm405_vm0, %v392_v25 }
  0x8f   : > { %833 = vrot.lane.b32.xlu0 %v585_v35, %s1930_s8 }
  0x90   : > { %793 = vrot.lane.b32.xlu2 %v565_v36, %s1930_s8 }
  0x91   : > { %835 = vrot.lane.b32.xlu1 %v586_v38, %s1930_s8  ;;  %v361_v38 = vadd.f32 %v2002_v2, %v325_v34 }
  0x92   : > { %v634_v42 = vpop.permute.xlu0 %633  ;;  %v574_v10 = vld [vmem:[#allocation2 + $0x151] sm:$0xff] }
  0x93   : > { %v630_v45 = vpop.permute.xlu1 %629  ;;  %v881_v57 = vsel %vm405_vm0, %v485_v54, %v634_v42  ;;  %v393_v41 = vmax.f32 %v361_v38, 0.0  ;;  %v536_v42 = vld [vmem:[#allocation2 + $0x130] sm:$0xff]  ;;  %v535_v54 = vld [vmem:[#allocation2 + $0x128] sm:$0xff] }
  0x94   : > { %v879_v55 = vsel %vm405_vm0, %v483_v47, %v630_v45  ;;  %v326_v47 = vmul.f32 %v1985_v1, %v290_v44  ;;  %v573_v1 = vld [vmem:[#allocation2 + $0x149] sm:$0xff] }
  0x95   : > { %469 = vst.msk [vmem:[#allocation2 + $0x168] sm:$0xff] %vm405_vm0, %v393_v41 }
  0x97   : > { %795 = vrot.lane.b32.xlu0 %v566_v46, %s1930_s8 }
  0x98   : > { %691 = vrot.lane.b32.xlu2 %v550_v48, %s1929_s7 }
  0x99   : > { %797 = vrot.lane.b32.xlu1 %v567_v51, %s1930_s8  ;;  %v362_v51 = vadd.f32 %v2002_v2, %v326_v47  ;;  %v512_v47 = vld [vmem:[#allocation2 + $0x1ef] sm:$0xff] }
  0x9a   : > { %v774_v56 = vpop.permute.xlu2 %773  ;;  %v778_v58 = vpop.permute.xlu0 %777 }
  0x9b   : > { %v916_v59 = vsel %vm913_vm2, %v879_v55, %v774_v56  ;;  %v780_v60 = vpop.permute.xlu1 %779  ;;  %v2275_v61 = vsel %vm913_vm2, %v881_v57, %v778_v58  ;;  %v394_v55 = vmax.f32 %v362_v51, 0.0  ;;  %v508_v58 = vld [vmem:[#allocation2 + $0x1af] sm:$0xff] }
  0x9c   : > { %1795 = vmatmul.msk.f32.vlgmr.msra.gmra.mxu0 %vm957_vm3, %v916_v59  ;;  %1862 = vmatmul.msk.f32.vlgmr.msra.gmra.mxu2 %vm957_vm3, %v2275_v61 }
  0x9d   : > { %470 = vst.msk [vmem:[#allocation2 + $0x170] sm:$0xff] %vm405_vm0, %v394_v55  ;;  %v493_v55 = vld [vmem:[#allocation2 + $0xc7] sm:$0xff] }
  0x9f   : > { %673 = vrot.lane.b32.xlu0 %v541_v62, %s1929_s7  ;;  %v537_v62 = vld [vmem:[#allocation2 + $0x148] sm:$0xff] }
  0xa0   : > { %653 = vrot.lane.b32.xlu2 %v531_v63, %s1929_s7  ;;  %v572_v63 = vld [vmem:[#allocation2 + $0x131] sm:$0xff] }
  0xa1   : > { %675 = vrot.lane.b32.xlu1 %v542_v3, %s1929_s7  ;;  %v539_v3 = vld [vmem:[#allocation2 + $0x168] sm:$0xff] }
  0xa2   : > { %v776_v8 = vpop.permute.xlu2 %775  ;;  %v636_v11 = vpop.permute.xlu0 %635 }
  0xa3   : > { %v882_v13 = vsel %vm405_vm0, %v486_v4, %v636_v11  ;;  %v772_v14 = vpop.permute.xlu1 %771  ;;  %v538_v11 = vld [vmem:[#allocation2 + $0x150] sm:$0xff] }
  0xa4   : > { %v915_v18 = vsel %vm913_vm2, %v878_v7, %v772_v14  ;;  %v2291_v20 = vsel %vm913_vm2, %v882_v13, %v780_v60  ;;  %v509_v13 = vld [vmem:[#allocation2 + $0x1c7] sm:$0xff]  ;;  %v540_v22 = vld [vmem:[#allocation2 + $0x170] sm:$0xff] }
  0xa5   : > { %1828 = vmatmul.msk.f32.gmra.mxu1 %vm957_vm3, %v915_v18  ;;  %1863 = vmatmul.msk.f32.gmra.mxu2 %vm957_vm3, %v2291_v20  ;;  %v575_v23 = vld [vmem:[#allocation2 + $0x169] sm:$0xff] }
  0xa7   : > { %655 = vrot.lane.b32.xlu0 %v532_v17, %s1929_s7 }
  0xa8   : > { %817 = vrot.lane.b32.xlu2 %v577_v21, %s1930_s8 }
  0xa9   : > { %657 = vrot.lane.b32.xlu1 %v533_v24, %s1929_s7  ;;  %v490_v24 = vld [vmem:[#allocation2 + $0x8f] sm:$0xff] }
  0xaa   : > { %v782_v26 = vpop.permute.xlu2 %781 }
  0xad   : > { %1829 = vmatmul.msk.f32.gmra.mxu1 %vm957_vm3, %v916_v59 }
  0xaf   : > { %819 = vrot.lane.b32.xlu0 %v578_v27, %s1930_s8 }
  0xb0   : > { %799 = vrot.lane.b32.xlu2 %v568_v28, %s1930_s8 }
  0xb1   : > { %v632_v32 = vpop.permute.xlu0 %631  ;;  %803 = vrot.lane.b32.xlu1 %v570_v29, %s1930_s8 }
  0xb2   : > { %v680_v33 = vpop.permute.xlu2 %679  ;;  %v880_v35 = vsel %vm405_vm0, %v484_v30, %v632_v32  ;;  %v510_v30 = vld [vmem:[#allocation2 + $0x1cf] sm:$0xff] }
  0xb3   : > { %v917_v36 = vsel %vm913_vm2, %v880_v35, %v776_v8  ;;  %v678_v37 = vpop.permute.xlu1 %677  ;;  %v904_v0 = vsel %vm405_vm0, %v508_v58, %v680_v33  ;;  %v489_v8 = vld [vmem:[#allocation2 + $0x87] sm:$0xff] }
  0xb4   : > { %1796 = vmatmul.msk.f32.gmra.mxu0 %vm957_vm3, %v917_v36  ;;  %v903_v56 = vsel %vm405_vm0, %v507_v52, %v678_v37  ;;  %v511_v33 = vld [vmem:[#allocation2 + $0x1e7] sm:$0xff] }
  0xb5   : > { %1830 = vmatmul.msk.f32.gmra.mxu1 %vm957_vm3, %v917_v36  ;;  %v491_v37 = vld [vmem:[#allocation2 + $0xa7] sm:$0xff] }
  0xb6   : > { %v513_v58 = vld [vmem:[#allocation2 + $0x207] sm:$0xff] }
  0xb7   : > { %659 = vrot.lane.b32.xlu0 %v534_v39, %s1929_s7 }
  0xb8   : > { %801 = vrot.lane.b32.xlu2 %v569_v40, %s1930_s8 }
  0xb9   : > { %v638_v45 = vpop.permute.xlu0 %637  ;;  %663 = vrot.lane.b32.xlu1 %v536_v42, %s1929_s7  ;;  %v492_v42 = vld [vmem:[#allocation2 + $0xaf] sm:$0xff] }
  0xba   : > { %v642_v46 = vpop.permute.xlu2 %641  ;;  %v883_v48 = vsel %vm405_vm0, %v487_v43, %v638_v45 }
  0xbb   : > { %v920_v49 = vsel %vm913_vm2, %v883_v48, %v782_v26  ;;  %v640_v50 = vpop.permute.xlu1 %639  ;;  %v885_v12 = vsel %vm405_vm0, %v489_v8, %v642_v46 }
  0xbc   : > { %1797 = vmatmul.msk.f32.gmra.mxu0 %vm957_vm3, %v2275_v61  ;;  %1864 = vmatmul.msk.f32.gmra.mxu2 %vm957_vm3, %v920_v49 }
  0xbd   : > { %1831 = vmatmul.msk.f32.gmra.mxu1 %vm957_vm3, %v2275_v61  ;;  %v488_v61 = vld [vmem:[#allocation2 + $0x6f] sm:$0xff] }
  0xbe   : > { %v884_v4 = vsel %vm405_vm0, %v488_v61, %v640_v50 }
  0xbf   : > { %805 = vrot.lane.b32.xlu0 %v571_v53, %s1930_s8  ;;  %v587_v53 = vld [vmem:[#allocation2 + $0x229] sm:$0xff] }
  0xc0   : > { %661 = vrot.lane.b32.xlu2 %v535_v54, %s1929_s7 }
  0xc1   : > { %v822_v2 = vpop.permute.xlu0 %821  ;;  %809 = vrot.lane.b32.xlu1 %v573_v1, %s1930_s8 }
  0xc2   : > { %v826_v57 = vpop.permute.xlu2 %825  ;;  %v2333_v59 = vsel %vm913_vm2, %v903_v56, %v822_v2 }
  0xc3   : > { %1819 = vmatmul.msk.f32.vlgmr.msra.gmra.mxu3 %vm957_vm3, %v2333_v59  ;;  %v824_v60 = vpop.permute.xlu1 %823 }
  0xc4   : > { %1798 = vmatmul.msk.f32.gmra.mxu0 %vm957_vm3, %v2291_v20  ;;  %1904 = vmatpush.msra.mxu3 %v2207_v6  ;;  %v2348_v5 = vsel %vm913_vm2, %v904_v0, %v824_v60  ;;  %v552_v60 = vld [vmem:[#allocation2 + $0x230] sm:$0xff] }
  0xc5   : > { %1832 = vmatmul.msk.f32.gmra.mxu1 %vm957_vm3, %v2291_v20 }
  0xc6   : > { %1905 = vmatpush.msra.mxu3 %v2225_v16 }
  0xc7   : > { %665 = vrot.lane.b32.xlu0 %v537_v62, %s1929_s7 }
  0xc8   : > { %807 = vrot.lane.b32.xlu2 %v572_v63, %s1930_s8  ;;  %1906 = vmatpush.msra.mxu3 %v2239_v19  ;;  %v576_v19 = vld [vmem:[#allocation2 + $0x171] sm:$0xff] }
  0xc9   : > { %v784_v6 = vpop.permute.xlu0 %783  ;;  %669 = vrot.lane.b32.xlu1 %v539_v3, %s1929_s7  ;;  %v514_v3 = vld [vmem:[#allocation2 + $0x20f] sm:$0xff] }
  0xca   : > { %v788_v7 = vpop.permute.xlu2 %787  ;;  %v921_v9 = vsel %vm913_vm2, %v884_v4, %v784_v6  ;;  %v494_v6 = vld [vmem:[#allocation2 + $0xcf] sm:$0xff] }
  0xcb   : > { %1865 = vmatmul.msk.f32.gmra.mxu2 %vm957_vm3, %v921_v9  ;;  %1820 = vmatmul.msk.f32.gmra.mxu3 %vm957_vm3, %v2348_v5  ;;  %v786_v16 = vpop.permute.xlu1 %785 }
  0xcc   : > { %1799 = vmatmul.msk.f32.gmra.mxu0 %vm957_vm3, %v920_v49  ;;  %v922_v14 = vsel %vm913_vm2, %v885_v12, %v786_v16 }
  0xcd   : > { %1833 = vmatmul.msk.f32.gmra.mxu1 %vm957_vm3, %v920_v49 }
  0xcf   : > { %811 = vrot.lane.b32.xlu0 %v574_v10, %s1930_s8  ;;  %v495_v10 = vld [vmem:[#allocation2 + $0xe7] sm:$0xff] }
  0xd0   : > { %667 = vrot.lane.b32.xlu2 %v538_v11, %s1929_s7 }
  0xd1   : > { %v682_v15 = vpop.permute.xlu0 %681  ;;  %815 = vrot.lane.b32.xlu1 %v576_v19, %s1930_s8 }
  0xd2   : > { %v686_v17 = vpop.permute.xlu2 %685  ;;  %v905_v18 = vsel %vm405_vm0, %v509_v13, %v682_v15  ;;  %v505_v15 = vld [vmem:[#allocation2 + $0x187] sm:$0xff] }
  0xd3   : > { %1866 = vmatmul.msk.f32.gmra.mxu2 %vm957_vm3, %v922_v14  ;;  %v2366_v20 = vsel %vm913_vm2, %v905_v18, %v826_v57  ;;  %v684_v21 = vpop.permute.xlu1 %683  ;;  %v907_v38 = vsel %vm405_vm0, %v511_v33, %v686_v17 }
  0xd4   : > { %1800 = vmatmul.msk.f32.gmra.mxu0 %vm957_vm3, %v921_v9  ;;  %1821 = vmatmul.msk.f32.gmra.mxu3 %vm957_vm3, %v2366_v20  ;;  %v906_v31 = vsel %vm405_vm0, %v510_v30, %v684_v21 }
  0xd5   : > { %1834 = vmatmul.msk.f32.gmra.mxu1 %vm957_vm3, %v921_v9 }
  0xd7   : > { %671 = vrot.lane.b32.xlu0 %v540_v22, %s1929_s7 }
  0xd8   : > { %813 = vrot.lane.b32.xlu2 %v575_v23, %s1930_s8 }
  0xd9   : > { %v644_v25 = vpop.permute.xlu0 %643  ;;  %695 = vrot.lane.b32.xlu1 %v552_v60, %s1929_s7 }
  0xda   : > { %v648_v26 = vpop.permute.xlu2 %647  ;;  %v886_v27 = vsel %vm405_vm0, %v490_v24, %v644_v25  ;;  %v588_v25 = vld [vmem:[#allocation2 + $0x231] sm:$0xff] }
  0xdb   : > { %v923_v28 = vsel %vm913_vm2, %v886_v27, %v788_v7  ;;  %v646_v29 = vpop.permute.xlu1 %645  ;;  %v888_v46 = vsel %vm405_vm0, %v492_v42, %v648_v26  ;;  %v496_v26 = vld [vmem:[#allocation2 + $0xef] sm:$0xff] }
  0xdc   : > { %1801 = vmatmul.msk.f32.gmra.mxu0 %vm957_vm3, %v922_v14  ;;  %1867 = vmatmul.msk.f32.gmra.mxu2 %vm957_vm3, %v923_v28  ;;  %v887_v39 = vsel %vm405_vm0, %v491_v37, %v646_v29 }
  0xdd   : > { %1835 = vmatmul.msk.f32.gmra.mxu1 %vm957_vm3, %v922_v14  ;;  %v551_v14 = vld [vmem:[#allocation2 + $0x228] sm:$0xff] }
  0xdf   : > { %837 = vrot.lane.b32.xlu0 %v587_v53, %s1930_s8  ;;  %v499_v53 = vld [vmem:[#allocation2 + $0x127] sm:$0xff] }
  0xe0   : > { %693 = vrot.lane.b32.xlu2 %v551_v14, %s1929_s7 }
  0xe1   : > { %v828_v32 = vpop.permute.xlu0 %827 }
  0xe2   : > { %v2381_v34 = vsel %vm913_vm2, %v906_v31, %v828_v32  ;;  %v832_v35 = vpop.permute.xlu2 %831  ;;  %v497_v32 = vld [vmem:[#allocation2 + $0x107] sm:$0xff] }
  0xe3   : > { %1822 = vmatmul.msk.f32.gmra.mxu3 %vm957_vm3, %v2381_v34  ;;  %v830_v36 = vpop.permute.xlu1 %829 }
  0xe4   : > { %1802 = vmatmul.msk.f32.gmra.mxu0 %vm957_vm3, %v923_v28  ;;  %v2390_v40 = vsel %vm913_vm2, %v907_v38, %v830_v36 }
  0xe5   : > { %1836 = vmatmul.msk.f32.gmra.mxu1 %vm957_vm3, %v923_v28 }
  0xe8   : > { %839 = vrot.lane.b32.xlu2 %v588_v25, %s1930_s8  ;;  %s2458_s8 = scalar_lea.vmem %s2936_s4, %s1896_s25 }
  0xe9   : > { %v790_v41 = vpop.permute.xlu0 %789 }
  0xea   : > { %v924_v43 = vsel %vm913_vm2, %v887_v39, %v790_v41  ;;  %v794_v45 = vpop.permute.xlu2 %793 }
  0xeb   : > { %1868 = vmatmul.msk.f32.gmra.mxu2 %vm957_vm3, %v924_v43  ;;  %1823 = vmatmul.msk.f32.gmra.mxu3 %vm957_vm3, %v2390_v40  ;;  %v792_v44 = vpop.permute.xlu1 %791 }
  0xec   : > { %1803 = vmatmul.msk.f32.gmra.mxu0 %vm957_vm3, %v924_v43  ;;  %v925_v48 = vsel %vm913_vm2, %v888_v46, %v792_v44 }
  0xed   : > { %1837 = vmatmul.msk.f32.gmra.mxu1 %vm957_vm3, %v924_v43 }
  0xf1   : > { %v688_v49 = vpop.permute.xlu0 %687 }
  0xf2   : > { %v908_v50 = vsel %vm405_vm0, %v512_v47, %v688_v49  ;;  %v692_v54 = vpop.permute.xlu2 %691  ;;  %v498_v47 = vld [vmem:[#allocation2 + $0x10f] sm:$0xff] }
  0xf3   : > { %1869 = vmatmul.msk.f32.gmra.mxu2 %vm957_vm3, %v925_v48  ;;  %v2403_v51 = vsel %vm913_vm2, %v908_v50, %v832_v35  ;;  %v690_v52 = vpop.permute.xlu1 %689  ;;  %v910_v7 = vsel %vm405_vm0, %v514_v3, %v692_v54  ;;  %v506_v35 = vld [vmem:[#allocation2 + $0x18f] sm:$0xff] }
  0xf4   : > { %1804 = vmatmul.msk.f32.gmra.mxu0 %vm957_vm3, %v925_v48  ;;  %1824 = vmatmul.msk.f32.gmra.mxu3 %vm957_vm3, %v2403_v51  ;;  %v909_v61 = vsel %vm405_vm0, %v513_v58, %v690_v52 }
  0xf5   : > { %1838 = vmatmul.msk.f32.gmra.mxu1 %vm957_vm3, %v925_v48 }
  0xf9   : > { %v650_v1 = vpop.permute.xlu0 %649 }
  0xfa   : > { %v889_v56 = vsel %vm405_vm0, %v493_v55, %v650_v1  ;;  %v654_v62 = vpop.permute.xlu2 %653 }
  0xfb   : > { %v926_v2 = vsel %vm913_vm2, %v889_v56, %v794_v45  ;;  %v652_v57 = vpop.permute.xlu1 %651  ;;  %v891_v13 = vsel %vm405_vm0, %v495_v10, %v654_v62 }
  0xfc   : > { %1805 = vmatmul.msk.f32.gmra.mxu0 %vm957_vm3, %v926_v2  ;;  %1870 = vmatmul.msk.f32.gmra.mxu2 %vm957_vm3, %v926_v2  ;;  %v890_v8 = vsel %vm405_vm0, %v494_v6, %v652_v57 }
  0xfd   : > { %1839 = vmatmul.msk.f32.gmra.mxu1 %vm957_vm3, %v926_v2 }
 0x101   : > { %v834_v63 = vpop.permute.xlu0 %833 }
 0x102   : > { %v2418_v0 = vsel %vm913_vm2, %v909_v61, %v834_v63  ;;  %v818_v12 = vpop.permute.xlu2 %817  ;;  %v500_v61 = vld [vmem:[#allocation2 + $0x12f] sm:$0xff] }
 0x103   : > { %1825 = vmatmul.msk.f32.gmra.mxu3 %vm957_vm3, %v2418_v0  ;;  %v836_v4 = vpop.permute.xlu1 %835 }
 0x104   : > { %v2425_v16 = vsel %vm913_vm2, %v910_v7, %v836_v4 }
 0x106   : > { %v1190_v29 = vpop.f32.mrf.mxu1 }
 0x109   : > { %v796_v9 = vpop.permute.xlu0 %795 }
 0x10a   : > { %v927_v11 = vsel %vm913_vm2, %v890_v8, %v796_v9  ;;  %v800_v24 = vpop.permute.xlu2 %799  ;;  %v501_v9 = vld [vmem:[#allocation2 + $0x147] sm:$0xff] }
 0x10b   : > { %1806 = vmatmul.msk.f32.gmra.mxu0 %vm957_vm3, %v927_v11  ;;  %1840 = vmatmul.msk.f32.gmra.mxu1 %vm957_vm3, %v927_v11  ;;  %v798_v19 = vpop.permute.xlu1 %797 }
 0x10c   : > { %1871 = vmatmul.msk.f32.gmra.mxu2 %vm957_vm3, %v927_v11  ;;  %1826 = vmatmul.msk.f32.gmra.mxu3 %vm957_vm3, %v2425_v16  ;;  %v928_v17 = vsel %vm913_vm2, %v891_v13, %v798_v19 }
 0x111   : > { %v674_v18 = vpop.permute.xlu0 %673 }
 0x112   : > { %v901_v21 = vsel %vm405_vm0, %v505_v15, %v674_v18  ;;  %v802_v38 = vpop.permute.xlu2 %801 }
 0x113   : > { %v2438_v22 = vsel %vm913_vm2, %v901_v21, %v818_v12  ;;  %1807 = vmatmul.msk.f32.gmra.mxu0 %vm957_vm3, %v928_v17  ;;  %1841 = vmatmul.msk.f32.gmra.mxu1 %vm957_vm3, %v928_v17  ;;  %v676_v23 = vpop.permute.xlu1 %675  ;;  %v502_v21 = vld [vmem:[#allocation2 + $0x14f] sm:$0xff] }
 0x114   : > { %1872 = vmatmul.msk.f32.gmra.mxu2 %vm957_vm3, %v928_v17  ;;  %1851 = vmatmul.msk.f32.vlgmr.msrb.gmra.mxu3 %vm957_vm3, %v2438_v22  ;;  %v902_v39 = vsel %vm405_vm0, %v506_v35, %v676_v23 }
 0x119   : > { %v656_v27 = vpop.permute.xlu0 %655  ;;  %v1071_v31 = vpop.f32.mrf.mxu0 }
 0x11a   : > { %v892_v28 = vsel %vm405_vm0, %v496_v26, %v656_v27  ;;  %v1191_v36 = vadd.f32 %v1190_v29, %v1071_v31  ;;  %v662_v54 = vpop.permute.xlu2 %661 }
 0x11b   : > { %v929_v30 = vsel %vm913_vm2, %v892_v28, %v800_v24  ;;  %v658_v33 = vpop.permute.xlu1 %657  ;;  %v895_v1 = vsel %vm405_vm0, %v499_v53, %v662_v54  ;;  %v503_v28 = vld [vmem:[#allocation2 + $0x167] sm:$0xff] }
 0x11c   : > { %1808 = vmatmul.msk.f32.gmra.mxu0 %vm957_vm3, %v929_v30  ;;  %1842 = vmatmul.msk.f32.gmra.mxu1 %vm957_vm3, %v929_v30  ;;  %v893_v37 = vsel %vm405_vm0, %v497_v32, %v658_v33 }
 0x11d   : > { %1873 = vmatmul.msk.f32.gmra.mxu2 %vm957_vm3, %v929_v30  ;;  %v930_v44 = vsel %vm913_vm2, %v893_v37, %v802_v38 }
 0x11f   : > { %v1313_v41 = vpop.f32.mrf.mxu2 }
 0x120   : > { %v2460_v42 = vadd.f32 %v1313_v41, %v1191_v36  ;;  %v504_v41 = vld [vmem:[#allocation2 + $0x16f] sm:$0xff] }
 0x121   : > { %v820_v43 = vpop.permute.xlu0 %819 }
 0x122   : > { %v2464_v45 = vsel %vm913_vm2, %v902_v39, %v820_v43  ;;  %1441 = vst.msk [vmem:[%s2458_s8] sm:$0xff] %vm405_vm0, %v2460_v42  ;;  %v1193_v46 = vpop.f32.mrf.mxu1  ;;  %v808_v4 = vpop.permute.xlu2 %807 }
 0x123   : > { %1852 = vmatmul.msk.f32.gmra.mxu3 %vm957_vm3, %v2464_v45  ;;  %v804_v48 = vpop.permute.xlu1 %803 }
 0x124   : > { %1809 = vmatmul.msk.f32.gmra.mxu0 %vm957_vm3, %v930_v44  ;;  %1843 = vmatmul.msk.f32.gmra.mxu1 %vm957_vm3, %v930_v44 }
 0x125   : > { %1874 = vmatmul.msk.f32.gmra.mxu2 %vm957_vm3, %v930_v44 }
 0x128   : > { %v1316_v60 = vpop.f32.mrf.mxu2 }
 0x129   : > { %v660_v49 = vpop.permute.xlu0 %659 }
 0x12a   : > { %v894_v50 = vsel %vm405_vm0, %v498_v47, %v660_v49  ;;  %v1196_v55 = vpop.f32.mrf.mxu1  ;;  %v668_v23 = vpop.permute.xlu2 %667 }
 0x12b   : > { %1853 = vmatmul.msk.f32.gmra.mxu3 %vm957_vm3, %v2333_v59  ;;  %v931_v52 = vsel %vm913_vm2, %v894_v50, %v804_v48  ;;  %v664_v62 = vpop.permute.xlu1 %663  ;;  %v898_v24 = vsel %vm405_vm0, %v502_v21, %v668_v23  ;;  %v516_v21 = vld [vmem:[#allocation2 + $0x22f] sm:$0xff] }
 0x12c   : > { %1810 = vmatmul.msk.f32.gmra.mxu0 %vm957_vm3, %v931_v52  ;;  %1844 = vmatmul.msk.f32.gmra.mxu1 %vm957_vm3, %v931_v52  ;;  %v896_v3 = vsel %vm405_vm0, %v500_v61, %v664_v62 }
 0x12d   : > { %1875 = vmatmul.msk.f32.gmra.mxu2 %vm957_vm3, %v931_v52  ;;  %v933_v8 = vsel %vm913_vm2, %v896_v3, %v808_v4 }
 0x131   : > { %v1074_v56 = vpop.f32.mrf.mxu0  ;;  %v806_v2 = vpop.permute.xlu0 %805 }
 0x132   : > { %v1194_v57 = vadd.f32 %v1193_v46, %v1074_v56  ;;  %v932_v58 = vsel %vm913_vm2, %v895_v1, %v806_v2  ;;  %v1199_v6 = vpop.f32.mrf.mxu1  ;;  %v814_v35 = vpop.permute.xlu2 %813 }
 0x133   : > { %1854 = vmatmul.msk.f32.gmra.mxu3 %vm957_vm3, %v2348_v5  ;;  %v810_v19 = vpop.permute.xlu1 %809 }
 0x134   : > { %v2485_v63 = vadd.f32 %v1316_v60, %v1194_v57  ;;  %1811 = vmatmul.msk.f32.gmra.mxu0 %vm957_vm3, %v932_v58  ;;  %1845 = vmatmul.msk.f32.gmra.mxu1 %vm957_vm3, %v932_v58 }
 0x135   : > { %1876 = vmatmul.msk.f32.gmra.mxu2 %vm957_vm3, %v932_v58 }
 0x136   : > { %1442 = vst.msk [vmem:[%s2458_s8 + $0x8] sm:$0xff] %vm405_vm0, %v2485_v63 }
 0x139   : > { %v1077_v7 = vpop.f32.mrf.mxu0  ;;  %v666_v10 = vpop.permute.xlu0 %665 }
 0x13a   : > { %v1197_v11 = vadd.f32 %v1196_v55, %v1077_v7  ;;  %v897_v12 = vsel %vm405_vm0, %v501_v9, %v666_v10  ;;  %v1202_v18 = vpop.f32.mrf.mxu1 }
 0x13b   : > { %1855 = vmatmul.msk.f32.gmra.mxu3 %vm957_vm3, %v2366_v20  ;;  %v934_v17 = vsel %vm913_vm2, %v897_v12, %v810_v19  ;;  %v670_v29 = vpop.permute.xlu1 %669  ;;  %v515_v12 = vld [vmem:[#allocation2 + $0x227] sm:$0xff]  ;;  %v694_v19 = vpop.permute.xlu2 %693 }
 0x13c   : > { %1812 = vmatmul.msk.f32.gmra.mxu0 %vm957_vm3, %v933_v8  ;;  %1846 = vmatmul.msk.f32.gmra.mxu1 %vm957_vm3, %v933_v8  ;;  %v899_v33 = vsel %vm405_vm0, %v503_v28, %v670_v29 }
 0x13d   : > { %1877 = vmatmul.msk.f32.gmra.mxu2 %vm957_vm3, %v933_v8  ;;  %v936_v38 = vsel %vm913_vm2, %v899_v33, %v814_v35 }
 0x13f   : > { %v1319_v13 = vpop.f32.mrf.mxu2 }
 0x140   : > { %v2501_v14 = vadd.f32 %v1319_v13, %v1197_v11 }
 0x141   : > { %v1080_v15 = vpop.f32.mrf.mxu0  ;;  %v812_v25 = vpop.permute.xlu0 %811 }
 0x142   : > { %1443 = vst.msk [vmem:[%s2458_s8 + $0x10] sm:$0xff] %vm405_vm0, %v2501_v14  ;;  %v935_v27 = vsel %vm913_vm2, %v898_v24, %v812_v25  ;;  %v1205_v30 = vpop.f32.mrf.mxu1  ;;  %v1200_v31 = vadd.f32 %v1199_v6, %v1080_v15 }
 0x143   : > { %1856 = vmatmul.msk.f32.gmra.mxu3 %vm957_vm3, %v2381_v34  ;;  %v816_v46 = vpop.permute.xlu1 %815  ;;  %v840_v25 = vpop.permute.xlu2 %839 }
 0x144   : > { %1813 = vmatmul.msk.f32.gmra.mxu0 %vm957_vm3, %v934_v17  ;;  %1847 = vmatmul.msk.f32.gmra.mxu1 %vm957_vm3, %v934_v17 }
 0x145   : > { %1878 = vmatmul.msk.f32.gmra.mxu2 %vm957_vm3, %v934_v17 }
 0x146   : > { %v2526_v39 = vpop.f32.mrf.mxu3 }
 0x149   : > { %v1083_v26 = vpop.f32.mrf.mxu0  ;;  %v672_v43 = vpop.permute.xlu0 %671 }
 0x14a   : > { %v1203_v44 = vadd.f32 %v1202_v18, %v1083_v26  ;;  %v1208_v47 = vpop.f32.mrf.mxu1  ;;  %v900_v49 = vsel %vm405_vm0, %v504_v41, %v672_v43 }
 0x14b   : > { %1857 = vmatmul.msk.f32.gmra.mxu3 %vm957_vm3, %v2390_v40  ;;  %v937_v53 = vsel %vm913_vm2, %v900_v49, %v816_v46  ;;  %v696_v23 = vpop.permute.xlu1 %695 }
 0x14c   : > { %1814 = vmatmul.msk.f32.gmra.mxu0 %vm957_vm3, %v935_v27  ;;  %1848 = vmatmul.msk.f32.gmra.mxu1 %vm957_vm3, %v935_v27  ;;  %v912_v24 = vsel %vm405_vm0, %v516_v21, %v696_v23 }
 0x14d   : > { %1879 = vmatmul.msk.f32.gmra.mxu2 %vm957_vm3, %v935_v27  ;;  %v949_v29 = vsel %vm913_vm2, %v912_v24, %v840_v25 }
 0x14e   : > { %v1322_v32 = vpop.f32.mrf.mxu2  ;;  %v2542_v54 = vpop.f32.mrf.mxu3 }
 0x14f   : > { %v2520_v36 = vadd.f32 %v1322_v32, %v1200_v31 }
 0x151   : > { %1444 = vst.msk [vmem:[%s2458_s8 + $0x18] sm:$0xff] %vm405_vm0, %v2520_v36  ;;  %v1086_v37 = vpop.f32.mrf.mxu0  ;;  %v838_v13 = vpop.permute.xlu0 %837 }
 0x152   : > { %v1206_v55 = vadd.f32 %v1205_v30, %v1086_v37  ;;  %v1211_v56 = vpop.f32.mrf.mxu1 }
 0x153   : > { %1858 = vmatmul.msk.f32.gmra.mxu3 %vm957_vm3, %v2403_v51 }
 0x154   : > { %1815 = vmatmul.msk.f32.gmra.mxu0 %vm957_vm3, %v936_v38  ;;  %1849 = vmatmul.msk.f32.gmra.mxu1 %vm957_vm3, %v936_v38 }
 0x155   : > { %1880 = vmatmul.msk.f32.gmra.mxu2 %vm957_vm3, %v936_v38 }
 0x156   : > { %v1325_v48 = vpop.f32.mrf.mxu2 }
 0x157   : > { %v2534_v50 = vadd.f32 %v1325_v48, %v1203_v44 }
 0x159   : > { %1445 = vst.msk [vmem:[%s2458_s8 + $0x20] sm:$0xff] %vm405_vm0, %v2534_v50  ;;  %v1089_v52 = vpop.f32.mrf.mxu0 }
 0x15a   : > { %v1214_v58 = vpop.f32.mrf.mxu1  ;;  %v1209_v61 = vadd.f32 %v1208_v47, %v1089_v52 }
 0x15b   : > { %1886 = vmatmul.msk.f32.vlgmr.msra.gmra.mxu3 %vm957_vm3, %v2366_v20  ;;  %v2558_v20 = vpop.f32.mrf.mxu3 }
 0x15c   : > { %1816 = vmatmul.msk.f32.gmra.mxu0 %vm957_vm3, %v937_v53  ;;  %1850 = vmatmul.msk.f32.gmra.mxu1 %vm957_vm3, %v937_v53 }
 0x15d   : > { %1881 = vmatmul.msk.f32.gmra.mxu2 %vm957_vm3, %v937_v53 }
 0x15f   : > { %v1328_v1 = vpop.f32.mrf.mxu2 }
 0x160   : > { %v2547_v2 = vadd.f32 %v1328_v1, %v1206_v55 }
 0x161   : > { %v1092_v57 = vpop.f32.mrf.mxu0 }
 0x162   : > { %1446 = vst.msk [vmem:[%s2458_s8 + $0x28] sm:$0xff] %vm405_vm0, %v2547_v2 }
 0x163   : > { %1887 = vmatmul.msk.f32.gmra.mxu3 %vm957_vm3, %v2381_v34 }
 0x164   : > { %1817 = vmatmul.msk.f32.gmra.mxu0 %vm957_vm3, %v2438_v22 }
 0x165   : > { %1882 = vmatmul.msk.f32.gmra.mxu2 %vm957_vm3, %v2438_v22  ;;  %v1212_v22 = vadd.f32 %v1211_v56, %v1092_v57 }
 0x166   : > { %v2566_v34 = vpop.f32.mrf.mxu3 }
 0x169   : > { %v1095_v60 = vpop.f32.mrf.mxu0 }
 0x16b   : > { %1888 = vmatmul.msk.f32.gmra.mxu3 %vm957_vm3, %v2390_v40  ;;  %v1217_v40 = vpop.f32.mrf.mxu1 }
 0x16c   : > { %1818 = vmatmul.msk.f32.gmra.mxu0 %vm957_vm3, %v2464_v45 }
 0x16d   : > { %1883 = vmatmul.msk.f32.gmra.mxu2 %vm957_vm3, %v2464_v45 }
 0x16e   : > { %v1331_v62 = vpop.f32.mrf.mxu2  ;;  %v2579_v7 = vpop.f32.mrf.mxu3 }
 0x16f   : > { %v2568_v3 = vadd.f32 %v1331_v62, %v1209_v61 }
 0x171   : > { %1447 = vst.msk [vmem:[%s2458_s8 + $0x30] sm:$0xff] %vm405_vm0, %v2568_v3  ;;  %v1098_v4 = vpop.f32.mrf.mxu0 }
 0x172   : > { %v1218_v26 = vadd.f32 %v1217_v40, %v1098_v4 }
 0x173   : > { %1889 = vmatmul.msk.f32.gmra.mxu3 %vm957_vm3, %v2403_v51  ;;  %v1215_v51 = vadd.f32 %v1214_v58, %v1095_v60  ;;  %v1220_v8 = vpop.f32.mrf.mxu1 }
 0x175   : > { %1884 = vmatmul.msk.f32.gmra.mxu2 %vm957_vm3, %v2333_v59 }
 0x176   : > { %v1334_v6 = vpop.f32.mrf.mxu2 }
 0x177   : > { %v2577_v45 = vadd.f32 %v1334_v6, %v1212_v22  ;;  %v2590_v11 = vpop.f32.mrf.mxu3 }
 0x179   : > { %1448 = vst.msk [vmem:[%s2458_s8 + $0x38] sm:$0xff] %vm405_vm0, %v2577_v45  ;;  %v1101_v10 = vpop.f32.mrf.mxu0 }
 0x17a   : > { %v1221_v32 = vadd.f32 %v1220_v8, %v1101_v10 }
 0x17b   : > { %1890 = vmatmul.msk.f32.gmra.mxu3 %vm957_vm3, %v2418_v0  ;;  %v911_v0 = vsel %vm405_vm0, %v515_v12, %v694_v19 }
 0x17c   : > { %v948_v17 = vsel %vm913_vm2, %v911_v0, %v838_v13 }
 0x17d   : > { %1885 = vmatmul.msk.f32.gmra.mxu2 %vm957_vm3, %v2348_v5  ;;  %v1223_v5 = vpop.f32.mrf.mxu1 }
 0x17f   : > { %v1337_v9 = vpop.f32.mrf.mxu2 }
 0x180   : > { %v2588_v59 = vadd.f32 %v1337_v9, %v1215_v51 }
 0x182   : > { %1449 = vst.msk [vmem:[%s2458_s8 + $0x40] sm:$0xff] %vm405_vm0, %v2588_v59 }
 0x183   : > { %1891 = vmatmul.msk.f32.gmra.mxu3 %vm957_vm3, %v2425_v16 }
 0x185   : > { %v1226_v30 = vpop.f32.mrf.mxu1 }
 0x186   : > { %v2599_v18 = vpop.f32.mrf.mxu3 }
 0x188   : > { %v1104_v15 = vpop.f32.mrf.mxu0 }
 0x189   : > { %v1224_v43 = vadd.f32 %v1223_v5, %v1104_v15 }
 0x18b   : > { %1892 = vmatmul.msk.f32.gmra.mxu3 %vm957_vm3, %v948_v17 }
 0x18d   : > { %v1229_v38 = vpop.f32.mrf.mxu1 }
 0x18f   : > { %v1340_v16 = vpop.f32.mrf.mxu2  ;;  %v2610_v31 = vpop.f32.mrf.mxu3 }
 0x190   : > { %v2603_v27 = vadd.f32 %v1340_v16, %v1218_v26  ;;  %v1107_v28 = vpop.f32.mrf.mxu0 }
 0x191   : > { %v1227_v52 = vadd.f32 %v1226_v30, %v1107_v28 }
 0x192   : > { %1450 = vst.msk [vmem:[%s2458_s8 + $0x48] sm:$0xff] %vm405_vm0, %v2603_v27 }
 0x193   : > { %1893 = vmatmul.msk.f32.gmra.mxu3 %vm957_vm3, %v949_v29  ;;  %v1474_v29 = vsel %vm405_vm0, %v2485_v63, 0.0 }
 0x195   : > { %v1232_v48 = vpop.f32.mrf.mxu1 }
 0x197   : > { %v1343_v33 = vpop.f32.mrf.mxu2  ;;  %v1262_v41 = vpop.f32.mrf.mxu3 }
 0x198   : > { %v2612_v35 = vadd.f32 %v1343_v33, %v1221_v32  ;;  %v1473_v33 = vsel %vm405_vm0, %v2460_v42, 0.0 }
 0x199   : > { %v1110_v37 = vpop.f32.mrf.mxu0 }
 0x19a   : > { %1451 = vst.msk [vmem:[%s2458_s8 + $0x50] sm:$0xff] %vm405_vm0, %v2612_v35  ;;  %v1230_v57 = vadd.f32 %v1229_v38, %v1110_v37  ;;  %v1476_v37 = vsel %vm405_vm0, %v2501_v14, 0.0 }
 0x19d   : > { %v1235_v58 = vpop.f32.mrf.mxu1 }
 0x1a0   : > { %v1346_v44 = vpop.f32.mrf.mxu2 }
 0x1a1   : > { %v2617_v46 = vadd.f32 %v1346_v44, %v1224_v43  ;;  %v1113_v47 = vpop.f32.mrf.mxu0  ;;  %v1475_v43 = vadd.f32 %v1474_v29, %v1473_v33  ;;  %v1492_v29 = vsel %vm405_vm0, %v2612_v35, 0.0 }
 0x1a2   : > { %v1233_v22 = vadd.f32 %v1232_v48, %v1113_v47  ;;  %v1478_v47 = vsel %vm405_vm0, %v2520_v36, 0.0 }
 0x1a3   : > { %1452 = vst.msk [vmem:[%s2458_s8 + $0x58] sm:$0xff] %vm405_vm0, %v2617_v46 }
 0x1a5   : > { %v1238_v4 = vpop.f32.mrf.mxu1 }
 0x1a6   : > { %v2622_v49 = vpop.f32.mrf.mxu3 }
 0x1a8   : > { %v1349_v53 = vpop.f32.mrf.mxu2 }
 0x1a9   : > { %v2624_v55 = vadd.f32 %v1349_v53, %v1227_v52  ;;  %v1116_v1 = vpop.f32.mrf.mxu0  ;;  %v1477_v52 = vadd.f32 %v1476_v37, %v1475_v43  ;;  %v1480_v53 = vsel %vm405_vm0, %v2534_v50, 0.0 }
 0x1aa   : > { %v1236_v9 = vadd.f32 %v1235_v58, %v1116_v1  ;;  %v1263_v58 = vadd.f32 %v1262_v41, %v2526_v39  ;;  %v1488_v41 = vsel %vm405_vm0, %v2588_v59, 0.0 }
 0x1ab   : > { %1453 = vst.msk [vmem:[%s2458_s8 + $0x60] sm:$0xff] %vm405_vm0, %v2624_v55  ;;  %v1479_v1 = vadd.f32 %v1478_v47, %v1477_v52  ;;  %v1496_v52 = vsel %vm405_vm0, %v2624_v55, 0.0 }
 0x1ad   : > { %v1241_v0 = vpop.f32.mrf.mxu1 }
 0x1ae   : > { %v2629_v56 = vpop.f32.mrf.mxu3 }
 0x1b0   : > { %v1352_v60 = vpop.f32.mrf.mxu2 }
 0x1b1   : > { %v2631_v61 = vadd.f32 %v1352_v60, %v1230_v57  ;;  %v1119_v62 = vpop.f32.mrf.mxu0  ;;  %v1482_v57 = vsel %vm405_vm0, %v2547_v2, 0.0  ;;  %v1481_v60 = vadd.f32 %v1480_v53, %v1479_v1  ;;  %v1269_v1 = vadd.f32 %v2629_v56, %v2558_v20 }
 0x1b2   : > { %v1239_v5 = vadd.f32 %v1238_v4, %v1119_v62  ;;  %v1484_v4 = vsel %vm405_vm0, %v2568_v3, 0.0 }
 0x1b3   : > { %1454 = vst.msk [vmem:[%s2458_s8 + $0x68] sm:$0xff] %vm405_vm0, %v2631_v61 }
 0x1b5   : > { %v1244_v23 = vpop.f32.mrf.mxu1 }
 0x1b6   : > { %v2636_v40 = vpop.f32.mrf.mxu3 }
 0x1b8   : > { %v1355_v6 = vpop.f32.mrf.mxu2 }
 0x1b9   : > { %v2638_v51 = vadd.f32 %v1355_v6, %v1233_v22  ;;  %v1122_v10 = vpop.f32.mrf.mxu0 }
 0x1ba   : > { %v1242_v25 = vadd.f32 %v1241_v0, %v1122_v10  ;;  %v1483_v10 = vadd.f32 %v1482_v57, %v1481_v60  ;;  %v1498_v57 = vsel %vm405_vm0, %v2631_v61, 0.0 }
 0x1bb   : > { %1455 = vst.msk [vmem:[%s2458_s8 + $0x70] sm:$0xff] %vm405_vm0, %v2638_v51 }
 0x1bc   : > { %v1485_v39 = vadd.f32 %v1484_v4, %v1483_v10 }
 0x1bd   : > { %v1247_v30 = vpop.f32.mrf.mxu1 }
 0x1be   : > { %v2643_v8 = vpop.f32.mrf.mxu3 }
 0x1c0   : > { %v1358_v12 = vpop.f32.mrf.mxu2 }
 0x1c1   : > { %v2645_v19 = vadd.f32 %v1358_v12, %v1236_v9  ;;  %v1125_v21 = vpop.f32.mrf.mxu0 }
 0x1c2   : > { %v1245_v38 = vadd.f32 %v1244_v23, %v1125_v21  ;;  %v1490_v23 = vsel %vm405_vm0, %v2603_v27, 0.0 }
 0x1c3   : > { %1456 = vst.msk [vmem:[%s2458_s8 + $0x78] sm:$0xff] %vm405_vm0, %v2645_v19 }
 0x1c5   : > { %v1250_v12 = vpop.f32.mrf.mxu1 }
 0x1c6   : > { %v2650_v13 = vpop.f32.mrf.mxu3 }
 0x1c8   : > { %v1361_v15 = vpop.f32.mrf.mxu2 }
 0x1c9   : > { %v2652_v17 = vadd.f32 %v1361_v15, %v1239_v5  ;;  %v1128_v28 = vpop.f32.mrf.mxu0  ;;  %v1486_v5 = vsel %vm405_vm0, %v2577_v45, 0.0 }
 0x1ca   : > { %v1248_v6 = vadd.f32 %v1247_v30, %v1128_v28  ;;  %v1487_v21 = vadd.f32 %v1486_v5, %v1485_v39 }
 0x1cb   : > { %1457 = vst.msk [vmem:[%s2458_s8 + $0x80] sm:$0xff] %vm405_vm0, %v2652_v17  ;;  %v1504_v5 = vsel %vm405_vm0, %v2652_v17, 0.0 }
 0x1ce   : > { %v2657_v24 = vpop.f32.mrf.mxu3 }
 0x1d0   : > { %v1364_v26 = vpop.f32.mrf.mxu2 }
 0x1d1   : > { %v2659_v16 = vadd.f32 %v1364_v26, %v1242_v25  ;;  %v1131_v62 = vpop.f32.mrf.mxu0  ;;  %v1266_v25 = vadd.f32 %v2622_v49, %v2542_v54  ;;  %v1489_v26 = vadd.f32 %v1488_v41, %v1487_v21  ;;  %v1253_v49 = vpop.f32.mrf.mxu1  ;;  %v1272_v21 = vadd.f32 %v2636_v40, %v2566_v34 }
 0x1d2   : > { %v1251_v30 = vadd.f32 %v1250_v12, %v1131_v62  ;;  %v1500_v62 = vsel %vm405_vm0, %v2638_v51, 0.0  ;;  %v1502_v12 = vsel %vm405_vm0, %v2645_v19, 0.0 }
 0x1d3   : > { %1458 = vst.msk [vmem:[%s2458_s8 + $0x88] sm:$0xff] %vm405_vm0, %v2659_v16  ;;  %v1491_v37 = vadd.f32 %v1490_v23, %v1489_v26  ;;  %v1506_v23 = vsel %vm405_vm0, %v2659_v16, 0.0 }
 0x1d5   : > { %v1493_v54 = vadd.f32 %v1492_v29, %v1491_v37 }
 0x1d6   : > { %v2666_v32 = vpop.f32.mrf.mxu3 }
 0x1d8   : > { %v1367_v44 = vpop.f32.mrf.mxu2 }
 0x1d9   : > { %v2674_v48 = vadd.f32 %v1367_v44, %v1245_v38  ;;  %v1134_v38 = vpop.f32.mrf.mxu0  ;;  %v1494_v44 = vsel %vm405_vm0, %v2617_v46, 0.0  ;;  %v1256_v41 = vpop.f32.mrf.mxu1 }
 0x1da   : > { %v1495_v53 = vadd.f32 %v1494_v44, %v1493_v54 }
 0x1db   : > { %1459 = vst.msk [vmem:[%s2458_s8 + $0x90] sm:$0xff] %vm405_vm0, %v2674_v48 }
 0x1de   : > { %v1385_v22 = vpop.f32.mrf.mxu3 }
 0x1df   : > { %v2686_v9 = vadd.f32 %v1385_v22, %v1263_v58  ;;  %v1497_v58 = vadd.f32 %v1496_v52, %v1495_v53  ;;  %v1254_v22 = vadd.f32 %v1253_v49, %v1134_v38  ;;  %v1275_v52 = vadd.f32 %v2643_v8, %v2579_v7 }
 0x1e0   : > { %v1370_v0 = vpop.f32.mrf.mxu2 }
 0x1e1   : > { %1465 = vst.msk [vmem:[%s2458_s8 + $0xc0] sm:$0xff] %vm405_vm0, %v2686_v9  ;;  %v2693_v15 = vadd.f32 %v1370_v0, %v1248_v6  ;;  %v1499_v6 = vadd.f32 %v1498_v57, %v1497_v58  ;;  %v1137_v0 = vpop.f32.mrf.mxu0 }
 0x1e2   : > { %v1257_v29 = vadd.f32 %v1256_v41, %v1137_v0  ;;  %v1278_v0 = vadd.f32 %v2650_v13, %v2590_v11 }
 0x1e3   : > { %1460 = vst.msk [vmem:[%s2458_s8 + $0x98] sm:$0xff] %vm405_vm0, %v2693_v15  ;;  %v1501_v56 = vadd.f32 %v1500_v62, %v1499_v6 }
 0x1e5   : > { %v1503_v39 = vadd.f32 %v1502_v12, %v1501_v56 }
 0x1e6   : > { %v1388_v28 = vpop.f32.mrf.mxu3 }
 0x1e7   : > { %v2706_v33 = vadd.f32 %v1388_v28, %v1266_v25  ;;  %v1505_v25 = vadd.f32 %v1504_v5, %v1503_v39  ;;  %v1508_v28 = vsel %vm405_vm0, %v2674_v48, 0.0  ;;  %v1520_v5 = vsel %vm405_vm0, %v2686_v9, 0.0 }
 0x1e8   : > { %v1373_v43 = vpop.f32.mrf.mxu2 }
 0x1e9   : > { %1466 = vst.msk [vmem:[%s2458_s8 + $0xc8] sm:$0xff] %vm405_vm0, %v2706_v33  ;;  %v2713_v47 = vadd.f32 %v1373_v43, %v1251_v30  ;;  %v1507_v37 = vadd.f32 %v1506_v23, %v1505_v25  ;;  %v1510_v43 = vsel %vm405_vm0, %v2693_v15, 0.0  ;;  %v1140_v49 = vpop.f32.mrf.mxu0 }
 0x1eb   : > { %1461 = vst.msk [vmem:[%s2458_s8 + $0xa0] sm:$0xff] %vm405_vm0, %v2713_v47  ;;  %v1509_v40 = vadd.f32 %v1508_v28, %v1507_v37  ;;  %v1512_v44 = vsel %vm405_vm0, %v2713_v47, 0.0 }
 0x1ed   : > { %v1511_v54 = vadd.f32 %v1510_v43, %v1509_v40 }
 0x1ee   : > { %v1391_v60 = vpop.f32.mrf.mxu3 }
 0x1ef   : > { %v2726_v4 = vadd.f32 %v1391_v60, %v1269_v1  ;;  %v1259_v1 = vpop.f32.mrf.mxu1  ;;  %v1513_v57 = vadd.f32 %v1512_v44, %v1511_v54 }
 0x1f0   : > { %v1376_v10 = vpop.f32.mrf.mxu2  ;;  %v1260_v60 = vadd.f32 %v1259_v1, %v1140_v49  ;;  %v1284_v49 = vadd.f32 %v2666_v32, %v2610_v31 }
 0x1f1   : > { %1467 = vst.msk [vmem:[%s2458_s8 + $0xd0] sm:$0xff] %vm405_vm0, %v2726_v4  ;;  %v2733_v20 = vadd.f32 %v1376_v10, %v1254_v22 }
 0x1f3   : > { %1462 = vst.msk [vmem:[%s2458_s8 + $0xa8] sm:$0xff] %vm405_vm0, %v2733_v20  ;;  %v1514_v53 = vsel %vm405_vm0, %v2733_v20, 0.0 }
 0x1f4   : > { %v1515_v6 = vadd.f32 %v1514_v53, %v1513_v57 }
 0x1f6   : > { %v1394_v26 = vpop.f32.mrf.mxu3 }
 0x1f7   : > { %v2746_v30 = vadd.f32 %v1394_v26, %v1272_v21  ;;  %v1522_v21 = vsel %vm405_vm0, %v2706_v33, 0.0  ;;  %v1524_v26 = vsel %vm405_vm0, %v2726_v4, 0.0 }
 0x1f8   : > { %v1379_v38 = vpop.f32.mrf.mxu2 }
 0x1f9   : > { %1468 = vst.msk [vmem:[%s2458_s8 + $0xd8] sm:$0xff] %vm405_vm0, %v2746_v30  ;;  %v1431_v34 = vadd.f32 %v1379_v38, %v1257_v29  ;;  %v1526_v11 = vsel %vm405_vm0, %v2746_v30, 0.0  ;;  %v1281_v29 = vadd.f32 %v2657_v24, %v2599_v18 }
 0x1fb   : > { %1463 = vst.msk [vmem:[%s2458_s8 + $0xb0] sm:$0xff] %vm405_vm0, %v1431_v34  ;;  %v1516_v62 = vsel %vm405_vm0, %v1431_v34, 0.0 }
 0x1fc   : > { %v1517_v56 = vadd.f32 %v1516_v62, %v1515_v6 }
 0x1fe   : > { %v1397_v58 = vpop.f32.mrf.mxu3 }
 0x1ff   : > { %v1437_v22 = vadd.f32 %v1397_v58, %v1275_v52 }
 0x200   : > { %v1382_v10 = vpop.f32.mrf.mxu2 }
 0x201   : > { %1469 = vst.msk [vmem:[%s2458_s8 + $0xe0] sm:$0xff] %vm405_vm0, %v1437_v22  ;;  %v1432_v12 = vadd.f32 %v1382_v10, %v1260_v60  ;;  %v1528_v38 = vsel %vm405_vm0, %v1437_v22, 0.0 }
 0x203   : > { %1464 = vst.msk [vmem:[%s2458_s8 + $0xb8] sm:$0xff] %vm405_vm0, %v1432_v12  ;;  %v1518_v7 = vsel %vm405_vm0, %v1432_v12, 0.0 }
 0x204   : > { %v1519_v8 = vadd.f32 %v1518_v7, %v1517_v56 }
 0x206   : > { %v1521_v39 = vadd.f32 %v1520_v5, %v1519_v8  ;;  %v1400_v41 = vpop.f32.mrf.mxu3 }
 0x207   : > { %v1438_v23 = vadd.f32 %v1400_v41, %v1278_v0 }
 0x208   : > { %v1523_v25 = vadd.f32 %v1522_v21, %v1521_v39 }
 0x209   : > { %1470 = vst.msk [vmem:[%s2458_s8 + $0xe8] sm:$0xff] %vm405_vm0, %v1438_v23  ;;  %v1530_v44 = vsel %vm405_vm0, %v1438_v23, 0.0 }
 0x20a   : > { %v1525_v28 = vadd.f32 %v1524_v26, %v1523_v25 }
 0x20c   : > { %v1527_v13 = vadd.f32 %v1526_v11, %v1525_v28 }
 0x20e   : > { %v1403_v37 = vpop.f32.mrf.mxu3  ;;  %v1529_v40 = vadd.f32 %v1528_v38, %v1527_v13 }
 0x20f   : > { %v1439_v43 = vadd.f32 %v1403_v37, %v1281_v29 }
 0x210   : > { %v1531_v54 = vadd.f32 %v1530_v44, %v1529_v40 }
 0x211   : > { %1471 = vst.msk [vmem:[%s2458_s8 + $0xf0] sm:$0xff] %vm405_vm0, %v1439_v43  ;;  %v1532_v52 = vsel %vm405_vm0, %v1439_v43, 0.0 }
 0x212   : > { %v1533_v57 = vadd.f32 %v1532_v52, %v1531_v54 }
 0x216   : > { %v1406_v53 = vpop.f32.mrf.mxu3 }
 0x217   : > { %v1440_v1 = vadd.f32 %v1406_v53, %v1284_v49 }
 0x219   : > { %1472 = vst.msk [vmem:[%s2458_s8 + $0xf8] sm:$0xff] %vm405_vm0, %v1440_v1  ;;  %v1534_v18 = vsel %vm405_vm0, %v1440_v1, 0.0 }
 0x21a   : > { %v1535_v24 = vadd.f32 %v1534_v18, %v1533_v57 }
 0x21c   : > { %v1536_v58 = vrot.slane %v1535_v24, 4 }
 0x21e   : > { %v1537_v60 = vadd.f32 %v1536_v58, %v1535_v24 }
 0x220   : > { %v1538_v62 = vrot.slane %v1537_v60, 2 }
 0x222   : > { %v1539_v6 = vadd.f32 %v1538_v62, %v1537_v60 }
 0x224   : > { %v1540_v10 = vrot.slane %v1539_v6, 1 }
 0x226   : > { %v1541_v31 = vadd.f32 %v1540_v10, %v1539_v6 }
 0x228   : > { %1575 = vst.msk [vmem:[%s265_s10] sm:$0x1] %vm416_vm1, %v1541_v31  ;;  %v2796_v32 = vmul.f32 0.00390625, %v1541_v31 }
 0x22a   : > { %v2800_v56 = vsub.f32 %v2733_v20, %v2796_v32  ;;  %v2803_v7 = vsub.f32 %v1431_v34, %v2796_v32  ;;  %v2806_v8 = vsub.f32 %v1432_v12, %v2796_v32  ;;  %v2810_v0 = vsub.f32 %v2726_v4, %v2796_v32 }
 0x22b   : > { %v2814_v5 = vsub.f32 %v2746_v30, %v2796_v32  ;;  %v2817_v39 = vsub.f32 %v1437_v22, %v2796_v32  ;;  %v2820_v20 = vsub.f32 %v1438_v23, %v2796_v32  ;;  %v2823_v34 = vsub.f32 %v1439_v43, %v2796_v32 }
 0x22c   : > { %v2826_v12 = vsub.f32 %v1440_v1, %v2796_v32  ;;  %v1543_v4 = vsub.f32 %v2460_v42, %v2796_v32  ;;  %v1544_v41 = vsub.f32 %v2485_v63, %v2796_v32  ;;  %v1545_v30 = vsub.f32 %v2501_v14, %v2796_v32 }
 0x22d   : > { %v1546_v22 = vsub.f32 %v2520_v36, %v2796_v32  ;;  %v1547_v25 = vsub.f32 %v2534_v50, %v2796_v32  ;;  %v1548_v28 = vsub.f32 %v2547_v2, %v2796_v32  ;;  %v1549_v14 = vsub.f32 %v2568_v3, %v2796_v32 }
 0x22e   : > { %v1576_v21 = vmul.f32 %v1543_v4, %v1543_v4  ;;  %v1577_v23 = vmul.f32 %v1544_v41, %v1544_v41  ;;  %v1578_v26 = vmul.f32 %v1545_v30, %v1545_v30  ;;  %v1550_v50 = vsub.f32 %v2577_v45, %v2796_v32 }
 0x22f   : > { %v1579_v11 = vmul.f32 %v1546_v22, %v1546_v22  ;;  %v1580_v29 = vmul.f32 %v1547_v25, %v1547_v25  ;;  %v1581_v38 = vmul.f32 %v1548_v28, %v1548_v28  ;;  %v1551_v40 = vsub.f32 %v2588_v59, %v2796_v32 }
 0x230   : > { %v1608_v42 = vsel %vm405_vm0, %v1576_v21, 0.0  ;;  %v1609_v63 = vsel %vm405_vm0, %v1577_v23, 0.0  ;;  %v1611_v36 = vsel %vm405_vm0, %v1578_v26, 0.0  ;;  %v1582_v44 = vmul.f32 %v1549_v14, %v1549_v14 }
 0x231   : > { %v1610_v13 = vadd.f32 %v1609_v63, %v1608_v42  ;;  %v1613_v43 = vsel %vm405_vm0, %v1579_v11, 0.0  ;;  %v1615_v54 = vsel %vm405_vm0, %v1580_v29, 0.0  ;;  %v1552_v3 = vsub.f32 %v2603_v27, %v2796_v32 }
 0x232   : > { %v1583_v52 = vmul.f32 %v1550_v50, %v1550_v50  ;;  %v1617_v53 = vsel %vm405_vm0, %v1581_v38, 0.0  ;;  %v1553_v45 = vsub.f32 %v2612_v35, %v2796_v32  ;;  %v1584_v57 = vmul.f32 %v1551_v40, %v1551_v40 }
 0x233   : > { %v1612_v37 = vadd.f32 %v1611_v36, %v1610_v13  ;;  %v1619_v18 = vsel %vm405_vm0, %v1582_v44, 0.0  ;;  %v1554_v59 = vsub.f32 %v2617_v46, %v2796_v32  ;;  %v1585_v58 = vmul.f32 %v1552_v3, %v1552_v3 }
 0x234   : > { %v1621_v60 = vsel %vm405_vm0, %v1583_v52, 0.0  ;;  %v1555_v27 = vsub.f32 %v2624_v55, %v2796_v32  ;;  %v1586_v6 = vmul.f32 %v1553_v45, %v1553_v45  ;;  %v1623_v10 = vsel %vm405_vm0, %v1584_v57, 0.0 }
 0x235   : > { %v1614_v2 = vadd.f32 %v1613_v43, %v1612_v37  ;;  %v1556_v35 = vsub.f32 %v2631_v61, %v2796_v32  ;;  %v1587_v4 = vmul.f32 %v1554_v59, %v1554_v59  ;;  %v1625_v41 = vsel %vm405_vm0, %v1585_v58, 0.0 }
 0x236   : > { %v1557_v46 = vsub.f32 %v2638_v51, %v2796_v32  ;;  %v1588_v22 = vmul.f32 %v1555_v27, %v1555_v27  ;;  %v1627_v21 = vsel %vm405_vm0, %v1586_v6, 0.0  ;;  %v1558_v55 = vsub.f32 %v2645_v19, %v2796_v32 }
 0x237   : > { %v1616_v49 = vadd.f32 %v1615_v54, %v1614_v2  ;;  %v1589_v25 = vmul.f32 %v1556_v35, %v1556_v35  ;;  %v1629_v26 = vsel %vm405_vm0, %v1587_v4, 0.0  ;;  %v1559_v61 = vsub.f32 %v2652_v17, %v2796_v32 }
 0x238   : > { %v1590_v11 = vmul.f32 %v1557_v46, %v1557_v46  ;;  %v1631_v42 = vsel %vm405_vm0, %v1588_v22, 0.0  ;;  %v1560_v51 = vsub.f32 %v2659_v16, %v2796_v32  ;;  %v1591_v13 = vmul.f32 %v1558_v55, %v1558_v55 }
 0x239   : > { %v1618_v1 = vadd.f32 %v1617_v53, %v1616_v49  ;;  %v1633_v14 = vsel %vm405_vm0, %v1589_v25, 0.0  ;;  %v1561_v19 = vsub.f32 %v2674_v48, %v2796_v32  ;;  %v1592_v36 = vmul.f32 %v1559_v61, %v1559_v61 }
 0x23a   : > { %v1635_v37 = vsel %vm405_vm0, %v1590_v11, 0.0  ;;  %v1562_v17 = vsub.f32 %v2693_v15, %v2796_v32  ;;  %v1593_v38 = vmul.f32 %v1560_v51, %v1560_v51  ;;  %v1637_v43 = vsel %vm405_vm0, %v1591_v13, 0.0 }
 0x23b   : > { %v1620_v24 = vadd.f32 %v1619_v18, %v1618_v1  ;;  %v1563_v16 = vsub.f32 %v2713_v47, %v2796_v32  ;;  %v1594_v40 = vmul.f32 %v1561_v19, %v1561_v19  ;;  %v1639_v44 = vsel %vm405_vm0, %v1592_v36, 0.0 }
 0x23c   : > { %v1595_v49 = vmul.f32 %v1562_v17, %v1562_v17  ;;  %v1641_v48 = vsel %vm405_vm0, %v1593_v38, 0.0  ;;  %v1597_v15 = vmul.f32 %v2800_v56, %v2800_v56  ;;  %v1567_v47 = vsub.f32 %v2686_v9, %v2796_v32 }
 0x23d   : > { %v1622_v62 = vadd.f32 %v1621_v60, %v1620_v24  ;;  %v1596_v52 = vmul.f32 %v1563_v16, %v1563_v16  ;;  %v1643_v53 = vsel %vm405_vm0, %v1594_v40, 0.0  ;;  %v1598_v18 = vmul.f32 %v2803_v7, %v2803_v7 }
 0x23e   : > { %v1645_v45 = vsel %vm405_vm0, %v1595_v49, 0.0  ;;  %v1568_v58 = vsub.f32 %v2706_v33, %v2796_v32  ;;  %v1599_v60 = vmul.f32 %v2806_v8, %v2806_v8  ;;  %v1649_v56 = vsel %vm405_vm0, %v1597_v15, 0.0 }
 0x23f   : > { %v1624_v31 = vadd.f32 %v1623_v10, %v1622_v62  ;;  %v1647_v24 = vsel %vm405_vm0, %v1596_v52, 0.0  ;;  %v1600_v27 = vmul.f32 %v1567_v47, %v1567_v47  ;;  %v1651_v6 = vsel %vm405_vm0, %v1598_v18, 0.0 }
 0x240   : > { %v1601_v9 = vmul.f32 %v1568_v58, %v1568_v58  ;;  %v1602_v35 = vmul.f32 %v2810_v0, %v2810_v0  ;;  %v1603_v32 = vmul.f32 %v2814_v5, %v2814_v5  ;;  %v1606_v55 = vmul.f32 %v2823_v34, %v2823_v34 }
 0x241   : > { %v1626_v30 = vadd.f32 %v1625_v41, %v1624_v31  ;;  %v1653_v31 = vsel %vm405_vm0, %v1599_v60, 0.0  ;;  %v1655_v4 = vsel %vm405_vm0, %v1600_v27, 0.0 }
 0x242   : > { %v1657_v8 = vsel %vm405_vm0, %v1601_v9, 0.0  ;;  %v1659_v46 = vsel %vm405_vm0, %v1602_v35, 0.0  ;;  %v1661_v0 = vsel %vm405_vm0, %v1603_v32, 0.0  ;;  %v1667_v61 = vsel %vm405_vm0, %v1606_v55, 0.0 }
 0x243   : > { %v1628_v23 = vadd.f32 %v1627_v21, %v1626_v30  ;;  %v1604_v30 = vmul.f32 %v2817_v39, %v2817_v39  ;;  %v1605_v21 = vmul.f32 %v2820_v20, %v2820_v20 }
 0x245   : > { %v1630_v28 = vadd.f32 %v1629_v26, %v1628_v23  ;;  %v1663_v5 = vsel %vm405_vm0, %v1604_v30, 0.0  ;;  %v1607_v26 = vmul.f32 %v2826_v12, %v2826_v12  ;;  %v1665_v39 = vsel %vm405_vm0, %v1605_v21, 0.0 }
 0x247   : > { %v1632_v63 = vadd.f32 %v1631_v42, %v1630_v28  ;;  %v1669_v20 = vsel %vm405_vm0, %v1607_v26, 0.0 }
 0x249   : > { %v1634_v29 = vadd.f32 %v1633_v14, %v1632_v63 }
 0x24b   : > { %v1636_v50 = vadd.f32 %v1635_v37, %v1634_v29 }
 0x24d   : > { %v1638_v2 = vadd.f32 %v1637_v43, %v1636_v50 }
 0x24f   : > { %v1640_v54 = vadd.f32 %v1639_v44, %v1638_v2 }
 0x251   : > { %v1642_v3 = vadd.f32 %v1641_v48, %v1640_v54 }
 0x253   : > { %v1644_v1 = vadd.f32 %v1643_v53, %v1642_v3 }
 0x255   : > { %v1646_v57 = vadd.f32 %v1645_v45, %v1644_v1 }
 0x257   : > { %v1648_v59 = vadd.f32 %v1647_v24, %v1646_v57 }
 0x259   : > { %v1650_v62 = vadd.f32 %v1649_v56, %v1648_v59 }
 0x25b   : > { %v1652_v10 = vadd.f32 %v1651_v6, %v1650_v62 }
 0x25d   : > { %v1654_v7 = vadd.f32 %v1653_v31, %v1652_v10 }
 0x25f   : > { %v1656_v33 = vadd.f32 %v1655_v4, %v1654_v7 }
 0x261   : > { %v1658_v41 = vadd.f32 %v1657_v8, %v1656_v33 }
 0x263   : > { %v1660_v22 = vadd.f32 %v1659_v46, %v1658_v41 }
 0x265   : > { %v1662_v23 = vadd.f32 %v1661_v0, %v1660_v22 }
 0x267   : > { %v1664_v25 = vadd.f32 %v1663_v5, %v1662_v23 }
 0x269   : > { %v1666_v28 = vadd.f32 %v1665_v39, %v1664_v25 }
 0x26b   : > { %v1668_v11 = vadd.f32 %v1667_v61, %v1666_v28 }
 0x26d   : > { %v1670_v42 = vadd.f32 %v1669_v20, %v1668_v11 }
 0x26f   : > { %v1671_v63 = vrot.slane %v1670_v42, 4 }
 0x271   : > { %v1672_v51 = vadd.f32 %v1671_v63, %v1670_v42 }
 0x273   : > { %v1673_v13 = vrot.slane %v1672_v51, 2 }
 0x275   : > { %v1674_v14 = vadd.f32 %v1673_v13, %v1672_v51 }
 0x277   : > { %v1675_v34 = vrot.slane %v1674_v14, 1 }
 0x279   : > { %v1676_v29 = vadd.f32 %v1675_v34, %v1674_v14 }
 0x27b   : > { %1677 = vst.msk [vmem:[%s268_s13] sm:$0x1] %vm416_vm1, %v1676_v29 }
 0x27c PF: > { %s17_s21 = sadd.s32 1, %s1926_s21  }
 0x27d   : > { %p14_p4 = scmp.ge.s32.totalorder %s17_s21, 4  }
 0x27f   :  { %16 = sbr.rel (!%p14_p4) target bundleno = 1 (0x1), region = 94 }

</bundles_post_ra>
